<compile_context>
chip_gen: v5e
topology: v5e:2x2
jax: 0.10.0
libtpu: 0.0.40
codegen_flags: <defaults>
</compile_context>

<pallas_src>
import functools

import jax
import jax.numpy as jnp
from jax.experimental import pallas as pl
from jax.experimental.pallas import tpu as pltpu


# ----------------------------------------------------------------------------
# Kernel: one grid step processes TB windows packed into a (TB*N, C) slab.
# ----------------------------------------------------------------------------
def _window_attn_kernel(x_ref, wqkv_ref, bqkv_ref, bias_ref, wproj_ref,
                        bproj_ref, o_ref, *, num_heads, dim, scale,
                        compute_dtype):
    # Shapes inside the kernel:
    #   x_ref:     (R, C)      R = TB*N, compute_dtype
    #   wqkv_ref:  (C, 3C)     bqkv_ref:  (1, 3C)  f32
    #   bias_ref:  (H, R, R)   fused rel-pos bias + window mask + block-diag
    #                          (-1e9 cross-window) mask, f32, resident
    #   wproj_ref: (C, C)      bproj_ref: (1, C)   f32
    #   o_ref:     (R, C)      f32
    C = dim
    hd = C // num_heads

    x = x_ref[...]                                                  # (R, C)

    # qkv projection: dense (R, C) @ (C, 3C) on the MXU, f32 accumulation.
    qkv = jnp.dot(x, wqkv_ref[...], preferred_element_type=jnp.float32)
    qkv = qkv + bqkv_ref[0]                                         # (R, 3C) f32

    q = (qkv[:, 0 * C:1 * C] * scale).astype(compute_dtype)
    k = qkv[:, 1 * C:2 * C].astype(compute_dtype)
    v = qkv[:, 2 * C:3 * C].astype(compute_dtype)

    head_outs = []
    for h in range(num_heads):                  # short static loop (H small)
        qh = q[:, h * hd:(h + 1) * hd]          # (R, hd)
        kh = k[:, h * hd:(h + 1) * hd]
        vh = v[:, h * hd:(h + 1) * hd]

        # Dense (R, R) scores for all TB windows at once; cross-window entries
        # are killed by the -1e9 block-diagonal mask baked into bias_ref.
        s = jnp.einsum("qd,kd->qk", qh, kh,
                       preferred_element_type=jnp.float32)          # (R, R)
        s = s + bias_ref[h]

        # numerically-stable softmax along the key axis (f32)
        m = jnp.max(s, axis=-1, keepdims=True)
        p = jnp.exp(s - m)
        p = p * pl.reciprocal(jnp.sum(p, axis=-1, keepdims=True), approx=True)

        head_outs.append(
            jnp.dot(p.astype(compute_dtype), vh,
                    preferred_element_type=jnp.float32))            # (R, hd)

    out = jnp.concatenate(head_outs, axis=-1)                       # (R, C) f32

    # output projection
    out = jnp.dot(out.astype(compute_dtype), wproj_ref[...],
                  preferred_element_type=jnp.float32)
    out = out + bproj_ref[0]
    o_ref[...] = out.astype(o_ref.dtype)


# ----------------------------------------------------------------------------
# Wrapper
# ----------------------------------------------------------------------------
def _choose_tb(b_windows, seq, n_masks):
    """Window-batch size: divides B_, multiple of nW, and TB*N >= 128 rows
    (keeps the MXU M dim full while keeping the dense score matrix small)."""
    cands = [t for t in range(1, b_windows + 1)
             if b_windows % t == 0 and t % n_masks == 0]
    good = [t for t in cands
            if t * seq >= 128 and (t == b_windows or (t * seq) % 8 == 0)]
    if good:
        return good[0]
    return cands[-1]


def _relative_position_bias(table, window_size, num_heads):
    """Same gather as the PyTorch module; done once in the wrapper."""
    Wh, Ww = window_size
    N = Wh * Ww
    coords = jnp.stack(jnp.meshgrid(jnp.arange(Wh), jnp.arange(Ww),
                                    indexing="ij"))                  # (2,Wh,Ww)
    cf = coords.reshape(2, -1)                                       # (2, N)
    rel = (cf[:, :, None] - cf[:, None, :]).transpose(1, 2, 0)       # (N, N, 2)
    rel = rel.at[:, :, 0].add(Wh - 1)
    rel = rel.at[:, :, 1].add(Ww - 1)
    rel = rel.at[:, :, 0].multiply(2 * Ww - 1)
    rel_index = rel.sum(-1)                                          # (N, N)
    bias = table[rel_index.reshape(-1)].reshape(N, N, num_heads)
    return jnp.transpose(bias, (2, 0, 1)).astype(jnp.float32)        # (H, N, N)


def window_attention_pallas(x, params, window_size, num_heads, mask=None,
                            qk_scale=None, compute_dtype=jnp.float32):
    """x: (B_, N, C); mask: (nW, N, N) additive (0 / -large) or None."""
    B_, N, C = x.shape
    Wh, Ww = window_size
    assert N == Wh * Ww
    assert C % num_heads == 0, "dim must be divisible by num_heads"
    hd = C // num_heads
    scale = qk_scale if qk_scale is not None else hd ** (-0.5)

    if mask is not None:
        nW = mask.shape[0]
        assert B_ % nW == 0
    else:
        nW = 1
    TB = _choose_tb(B_, N, nW)
    R = TB * N
    grid = B_ // TB

    # ---- fuse rel-pos bias + window mask; build the block-diagonal tensor.
    # Window i inside any block has global index b*TB + i and uses mask
    # (b*TB + i) % nW == i % nW (since TB % nW == 0), so the fused tensor is
    # block-independent and stays resident in VMEM across all grid steps.
    rel_bias = _relative_position_bias(
        params["relative_position_bias_table"], window_size, num_heads)   # (H,N,N)
    if mask is not None:
        fused = rel_bias[None] + mask.astype(jnp.float32)[:, None]        # (nW,H,N,N)
    else:
        fused = rel_bias[None]                                            # (1,H,N,N)
    fused = jnp.tile(fused, (TB // fused.shape[0], 1, 1, 1))              # (TB,H,N,N)

    bias_big = jnp.full((num_heads, R, R), -1e9, dtype=jnp.float32)
    for i in range(TB):
        bias_big = bias_big.at[:, i * N:(i + 1) * N,
                               i * N:(i + 1) * N].set(fused[i])           # (H,R,R)

    # PyTorch Linear weights are (out, in); transpose for (in, out) matmuls.
    wqkv = jnp.transpose(params["qkv_weight"]).astype(compute_dtype)      # (C, 3C)
    wproj = jnp.transpose(params["proj_weight"]).astype(compute_dtype)    # (C, C)
    qkv_bias = params.get("qkv_bias")
    if qkv_bias is None:
        qkv_bias = jnp.zeros((3 * C,), jnp.float32)
    bqkv = qkv_bias.reshape(1, 3 * C).astype(jnp.float32)
    proj_bias = params.get("proj_bias")
    if proj_bias is None:
        proj_bias = jnp.zeros((C,), jnp.float32)
    bproj = proj_bias.reshape(1, C).astype(jnp.float32)

    x2 = x.reshape(B_ * N, C).astype(compute_dtype)        # flat 2-D slab

    kernel = functools.partial(_window_attn_kernel, num_heads=num_heads,
                               dim=C, scale=scale, compute_dtype=compute_dtype)

    out2 = pl.pallas_call(
        kernel,
        out_shape=jax.ShapeDtypeStruct((B_ * N, C), jnp.float32),
        grid_spec=pltpu.PrefetchScalarGridSpec(
            num_scalar_prefetch=0,
            grid=(grid,),
            in_specs=[
                pl.BlockSpec((R, C), lambda b: (b, 0)),                   # x slab
                pl.BlockSpec((C, 3 * C), lambda b: (0, 0)),               # wqkv
                pl.BlockSpec((1, 3 * C), lambda b: (0, 0)),               # bqkv
                pl.BlockSpec((num_heads, R, R), lambda b: (0, 0, 0)),     # bias+mask
                pl.BlockSpec((C, C), lambda b: (0, 0)),                   # wproj
                pl.BlockSpec((1, C), lambda b: (0, 0)),                   # bproj
            ],
            out_specs=pl.BlockSpec((R, C), lambda b: (b, 0)),
        ),
        compiler_params=pltpu.CompilerParams(
            dimension_semantics=("parallel",)),                 # v7x: 2 TCs
    )(x2, wqkv, bqkv, bias_big, wproj, bproj)
    return out2.reshape(B_, N, C)


# ----------------------------------------------------------------------------
# Pure-JAX reference (mirrors the PyTorch forward exactly)
# ----------------------------------------------------------------------------
def window_attention_ref(x, params, window_size, num_heads, mask=None,
                         qk_scale=None):
    B_, N, C = x.shape
    Wh, Ww = window_size
    hd = C // num_heads
    scale = qk_scale if qk_scale is not None else hd ** (-0.5)

    qkv = x @ params["qkv_weight"].T + params["qkv_bias"]
    qkv = qkv.reshape(B_, N, 3, num_heads, hd).transpose(2, 0, 3, 1, 4)
    q, k, v = qkv[0], qkv[1], qkv[2]
    q = q * scale
    attn = jnp.einsum("bhnd,bhmd->bhnm", q, k)

    bias = _relative_position_bias(params["relative_position_bias_table"],
                                   window_size, num_heads)
    attn = attn + bias[None]

    if mask is not None:
        nW = mask.shape[0]
        attn = attn.reshape(B_ // nW, nW, num_heads, N, N) + mask[None, :, None]
        attn = attn.reshape(-1, num_heads, N, N)
    attn = jax.nn.softmax(attn, axis=-1)
    out = jnp.einsum("bhnm,bhmd->bhnd", attn, v)
    out = out.transpose(0, 2, 1, 3).reshape(B_, N, C)
    out = out @ params["proj_weight"].T + params["proj_bias"]
    return out


if __name__ == "__main__":
    # Small config: dim=32, heads=4, window 4x4 -> N=16; B=2, nW=4 -> B_=8.
    dim, num_heads = 32, 4
    window_size = (4, 4)
    Wh, Ww = window_size
    N = Wh * Ww
    B, nW = 2, 4
    B_ = B * nW

    key = jax.random.PRNGKey(0)
    ks = jax.random.split(key, 7)

    params = {
        "relative_position_bias_table":
            0.02 * jax.random.normal(
                ks[0], ((2 * Wh - 1) * (2 * Ww - 1), num_heads), jnp.float32),
        "qkv_weight": 0.1 * jax.random.normal(ks[1], (3 * dim, dim), jnp.float32),
        "qkv_bias":   0.1 * jax.random.normal(ks[2], (3 * dim,), jnp.float32),
        "proj_weight": 0.1 * jax.random.normal(ks[3], (dim, dim), jnp.float32),
        "proj_bias":   0.1 * jax.random.normal(ks[4], (dim,), jnp.float32),
    }

    x = jax.random.normal(ks[5], (B_, N, dim), jnp.float32)
    # shifted-window style additive mask: 0 where allowed, -100 where blocked
    mask_bits = jax.random.bernoulli(ks[6], 0.25, (nW, N, N))
    mask = jnp.where(mask_bits, -100.0, 0.0).astype(jnp.float32)

    # f32 path with mask (tolerance covers the EUP approx reciprocal)
    out = jax.block_until_ready(
        window_attention_pallas(x, params, window_size, num_heads, mask=mask))
    ref = window_attention_ref(x, params, window_size, num_heads, mask=mask)
    assert out.shape == (B_, N, dim)
    assert jnp.allclose(out, ref, atol=5e-3, rtol=5e-3), (
        f"max abs err {jnp.max(jnp.abs(out - ref))}")

    # mask=None path
    out2 = jax.block_until_ready(
        window_attention_pallas(x, params, window_size, num_heads, mask=None))
    ref2 = window_attention_ref(x, params, window_size, num_heads, mask=None)
    assert jnp.allclose(out2, ref2, atol=5e-3, rtol=5e-3), (
        f"max abs err {jnp.max(jnp.abs(out2 - ref2))}")

    # optional bf16 matmul path (f32 accumulation / softmax), looser tolerance
    out3 = jax.block_until_ready(
        window_attention_pallas(x, params, window_size, num_heads, mask=mask,
                                compute_dtype=jnp.bfloat16))
    assert jnp.allclose(out3, ref, atol=5e-2, rtol=5e-2), (
        f"max abs err (bf16) {jnp.max(jnp.abs(out3 - ref))}")

    print("KERNEL_OK")
</pallas_src>

<mosaic_0001>
module attributes {stable_mosaic.version = 11 : i64} {
  func.func @_window_attn_kernel(%arg0: i32, %arg1: memref<128x32xf32, #tpu.memory_space<vmem>>, %arg2: memref<32x96xf32, #tpu.memory_space<vmem>>, %arg3: memref<1x96xf32, #tpu.memory_space<vmem>>, %arg4: memref<4x128x128xf32, #tpu.memory_space<vmem>>, %arg5: memref<32x32xf32, #tpu.memory_space<vmem>>, %arg6: memref<1x32xf32, #tpu.memory_space<vmem>>, %arg7: memref<128x32xf32, #tpu.memory_space<vmem>>) attributes {dimension_semantics = [#tpu.dimension_semantics<parallel>], iteration_bounds = array<i64: 1>, scalar_prefetch = 0 : i64, scratch_operands = 0 : i64, tpu.core_type = #tpu.core_type<tc>, window_params = [{transform_indices = @transform_0, window_bounds = array<i64: 128, 32>}, {pipeline_mode = #tpu.pipeline_mode<synchronous>, transform_indices = @transform_1, window_bounds = array<i64: 32, 96>}, {pipeline_mode = #tpu.pipeline_mode<synchronous>, transform_indices = @transform_2, window_bounds = array<i64: 1, 96>}, {pipeline_mode = #tpu.pipeline_mode<synchronous>, transform_indices = @transform_3, window_bounds = array<i64: 4, 128, 128>}, {pipeline_mode = #tpu.pipeline_mode<synchronous>, transform_indices = @transform_4, window_bounds = array<i64: 32, 32>}, {pipeline_mode = #tpu.pipeline_mode<synchronous>, transform_indices = @transform_5, window_bounds = array<i64: 1, 32>}, {transform_indices = @transform_6, window_bounds = array<i64: 128, 32>}]} {
    %c0 = arith.constant 0 : index
    %c0_0 = arith.constant 0 : index
    %0 = vector.load %arg1[%c0, %c0_0] : memref<128x32xf32, #tpu.memory_space<vmem>>, vector<128x32xf32>
    %c0_1 = arith.constant 0 : index
    %c0_2 = arith.constant 0 : index
    %1 = vector.load %arg2[%c0_1, %c0_2] : memref<32x96xf32, #tpu.memory_space<vmem>>, vector<32x96xf32>
    %cst = arith.constant dense<0.000000e+00> : vector<128x96xf32>
    %2 = tpu.matmul %0, %1, %cst {dimension_numbers = #tpu.dot_dimension_numbers<[1], [0], [0], [1], [0, 0, 1, 1], [], []>} : vector<128x32xf32>, vector<32x96xf32>, vector<128x96xf32> -> vector<128x96xf32>
    %c0_3 = arith.constant 0 : index
    %c0_4 = arith.constant 0 : index
    %3 = vector.load %arg3[%c0_3, %c0_4] : memref<1x96xf32, #tpu.memory_space<vmem>>, vector<1x96xf32>
    %4 = vector.shape_cast %3 : vector<1x96xf32> to vector<96xf32>
    %5 = vector.shape_cast %4 : vector<96xf32> to vector<1x96xf32>
    %6 = vector.broadcast %5 : vector<1x96xf32> to vector<128x96xf32>
    %7 = arith.addf %2, %6 : vector<128x96xf32>
    %8 = vector.extract_strided_slice %7 {offsets = [0, 0], sizes = [128, 32], strides = [1, 1]} : vector<128x96xf32> to vector<128x32xf32>
    %cst_5 = arith.constant 0.353553385 : f32
    %9 = vector.broadcast %cst_5 : f32 to vector<128x32xf32>
    %10 = arith.mulf %8, %9 : vector<128x32xf32>
    %11 = vector.extract_strided_slice %7 {offsets = [0, 32], sizes = [128, 32], strides = [1, 1]} : vector<128x96xf32> to vector<128x32xf32>
    %12 = vector.extract_strided_slice %7 {offsets = [0, 64], sizes = [128, 32], strides = [1, 1]} : vector<128x96xf32> to vector<128x32xf32>
    %13 = vector.extract_strided_slice %10 {offsets = [0, 0], sizes = [128, 8], strides = [1, 1]} : vector<128x32xf32> to vector<128x8xf32>
    %14 = vector.extract_strided_slice %11 {offsets = [0, 0], sizes = [128, 8], strides = [1, 1]} : vector<128x32xf32> to vector<128x8xf32>
    %15 = vector.extract_strided_slice %12 {offsets = [0, 0], sizes = [128, 8], strides = [1, 1]} : vector<128x32xf32> to vector<128x8xf32>
    "tpu.trace_start"() <{level = 10 : i32, message = "qd,kd->qk"}> : () -> ()
    %cst_6 = arith.constant dense<0.000000e+00> : vector<128x128xf32>
    %16 = tpu.matmul %13, %14, %cst_6 {dimension_numbers = #tpu.dot_dimension_numbers<[1], [1], [0], [0], [0, 0, 1, 0], [], []>} : vector<128x8xf32>, vector<128x8xf32>, vector<128x128xf32> -> vector<128x128xf32>
    "tpu.trace_stop"() : () -> ()
    %c0_7 = arith.constant 0 : index
    %c0_8 = arith.constant 0 : index
    %c0_9 = arith.constant 0 : index
    %17 = vector.load %arg4[%c0_7, %c0_8, %c0_9] : memref<4x128x128xf32, #tpu.memory_space<vmem>>, vector<1x128x128xf32>
    %18 = vector.shape_cast %17 : vector<1x128x128xf32> to vector<128x128xf32>
    %19 = arith.addf %16, %18 : vector<128x128xf32>
    %cst_10 = arith.constant dense<0xFF800000> : vector<128xf32>
    %20 = vector.multi_reduction <maximumf>, %19, %cst_10 [1] : vector<128x128xf32> to vector<128xf32>
    %21 = vector.shape_cast %20 : vector<128xf32> to vector<128x1xf32>
    %22 = vector.broadcast %21 : vector<128x1xf32> to vector<128x128xf32>
    %23 = arith.subf %19, %22 : vector<128x128xf32>
    %24 = math.exp %23 : vector<128x128xf32>
    %cst_11 = arith.constant dense<0.000000e+00> : vector<128xf32>
    %25 = vector.multi_reduction <add>, %24, %cst_11 [1] : vector<128x128xf32> to vector<128xf32>
    %26 = vector.shape_cast %25 : vector<128xf32> to vector<128x1xf32>
    %27 = tpu.reciprocal %26 {approx = true} : vector<128x1xf32> -> vector<128x1xf32>
    %28 = vector.broadcast %27 : vector<128x1xf32> to vector<128x128xf32>
    %29 = arith.mulf %24, %28 : vector<128x128xf32>
    %cst_12 = arith.constant dense<0.000000e+00> : vector<128x8xf32>
    %30 = tpu.matmul %29, %15, %cst_12 {dimension_numbers = #tpu.dot_dimension_numbers<[1], [0], [0], [1], [0, 0, 1, 1], [], []>} : vector<128x128xf32>, vector<128x8xf32>, vector<128x8xf32> -> vector<128x8xf32>
    %31 = vector.extract_strided_slice %10 {offsets = [0, 8], sizes = [128, 8], strides = [1, 1]} : vector<128x32xf32> to vector<128x8xf32>
    %32 = vector.extract_strided_slice %11 {offsets = [0, 8], sizes = [128, 8], strides = [1, 1]} : vector<128x32xf32> to vector<128x8xf32>
    %33 = vector.extract_strided_slice %12 {offsets = [0, 8], sizes = [128, 8], strides = [1, 1]} : vector<128x32xf32> to vector<128x8xf32>
    "tpu.trace_start"() <{level = 10 : i32, message = "qd,kd->qk"}> : () -> ()
    %cst_13 = arith.constant dense<0.000000e+00> : vector<128x128xf32>
    %34 = tpu.matmul %31, %32, %cst_13 {dimension_numbers = #tpu.dot_dimension_numbers<[1], [1], [0], [0], [0, 0, 1, 0], [], []>} : vector<128x8xf32>, vector<128x8xf32>, vector<128x128xf32> -> vector<128x128xf32>
    "tpu.trace_stop"() : () -> ()
    %c1 = arith.constant 1 : index
    %c0_14 = arith.constant 0 : index
    %c0_15 = arith.constant 0 : index
    %35 = vector.load %arg4[%c1, %c0_14, %c0_15] : memref<4x128x128xf32, #tpu.memory_space<vmem>>, vector<1x128x128xf32>
    %36 = vector.shape_cast %35 : vector<1x128x128xf32> to vector<128x128xf32>
    %37 = arith.addf %34, %36 : vector<128x128xf32>
    %cst_16 = arith.constant dense<0xFF800000> : vector<128xf32>
    %38 = vector.multi_reduction <maximumf>, %37, %cst_16 [1] : vector<128x128xf32> to vector<128xf32>
    %39 = vector.shape_cast %38 : vector<128xf32> to vector<128x1xf32>
    %40 = vector.broadcast %39 : vector<128x1xf32> to vector<128x128xf32>
    %41 = arith.subf %37, %40 : vector<128x128xf32>
    %42 = math.exp %41 : vector<128x128xf32>
    %cst_17 = arith.constant dense<0.000000e+00> : vector<128xf32>
    %43 = vector.multi_reduction <add>, %42, %cst_17 [1] : vector<128x128xf32> to vector<128xf32>
    %44 = vector.shape_cast %43 : vector<128xf32> to vector<128x1xf32>
    %45 = tpu.reciprocal %44 {approx = true} : vector<128x1xf32> -> vector<128x1xf32>
    %46 = vector.broadcast %45 : vector<128x1xf32> to vector<128x128xf32>
    %47 = arith.mulf %42, %46 : vector<128x128xf32>
    %cst_18 = arith.constant dense<0.000000e+00> : vector<128x8xf32>
    %48 = tpu.matmul %47, %33, %cst_18 {dimension_numbers = #tpu.dot_dimension_numbers<[1], [0], [0], [1], [0, 0, 1, 1], [], []>} : vector<128x128xf32>, vector<128x8xf32>, vector<128x8xf32> -> vector<128x8xf32>
    %49 = vector.extract_strided_slice %10 {offsets = [0, 16], sizes = [128, 8], strides = [1, 1]} : vector<128x32xf32> to vector<128x8xf32>
    %50 = vector.extract_strided_slice %11 {offsets = [0, 16], sizes = [128, 8], strides = [1, 1]} : vector<128x32xf32> to vector<128x8xf32>
    %51 = vector.extract_strided_slice %12 {offsets = [0, 16], sizes = [128, 8], strides = [1, 1]} : vector<128x32xf32> to vector<128x8xf32>
    "tpu.trace_start"() <{level = 10 : i32, message = "qd,kd->qk"}> : () -> ()
    %cst_19 = arith.constant dense<0.000000e+00> : vector<128x128xf32>
    %52 = tpu.matmul %49, %50, %cst_19 {dimension_numbers = #tpu.dot_dimension_numbers<[1], [1], [0], [0], [0, 0, 1, 0], [], []>} : vector<128x8xf32>, vector<128x8xf32>, vector<128x128xf32> -> vector<128x128xf32>
    "tpu.trace_stop"() : () -> ()
    %c2 = arith.constant 2 : index
    %c0_20 = arith.constant 0 : index
    %c0_21 = arith.constant 0 : index
    %53 = vector.load %arg4[%c2, %c0_20, %c0_21] : memref<4x128x128xf32, #tpu.memory_space<vmem>>, vector<1x128x128xf32>
    %54 = vector.shape_cast %53 : vector<1x128x128xf32> to vector<128x128xf32>
    %55 = arith.addf %52, %54 : vector<128x128xf32>
    %cst_22 = arith.constant dense<0xFF800000> : vector<128xf32>
    %56 = vector.multi_reduction <maximumf>, %55, %cst_22 [1] : vector<128x128xf32> to vector<128xf32>
    %57 = vector.shape_cast %56 : vector<128xf32> to vector<128x1xf32>
    %58 = vector.broadcast %57 : vector<128x1xf32> to vector<128x128xf32>
    %59 = arith.subf %55, %58 : vector<128x128xf32>
    %60 = math.exp %59 : vector<128x128xf32>
    %cst_23 = arith.constant dense<0.000000e+00> : vector<128xf32>
    %61 = vector.multi_reduction <add>, %60, %cst_23 [1] : vector<128x128xf32> to vector<128xf32>
    %62 = vector.shape_cast %61 : vector<128xf32> to vector<128x1xf32>
    %63 = tpu.reciprocal %62 {approx = true} : vector<128x1xf32> -> vector<128x1xf32>
    %64 = vector.broadcast %63 : vector<128x1xf32> to vector<128x128xf32>
    %65 = arith.mulf %60, %64 : vector<128x128xf32>
    %cst_24 = arith.constant dense<0.000000e+00> : vector<128x8xf32>
    %66 = tpu.matmul %65, %51, %cst_24 {dimension_numbers = #tpu.dot_dimension_numbers<[1], [0], [0], [1], [0, 0, 1, 1], [], []>} : vector<128x128xf32>, vector<128x8xf32>, vector<128x8xf32> -> vector<128x8xf32>
    %67 = vector.extract_strided_slice %10 {offsets = [0, 24], sizes = [128, 8], strides = [1, 1]} : vector<128x32xf32> to vector<128x8xf32>
    %68 = vector.extract_strided_slice %11 {offsets = [0, 24], sizes = [128, 8], strides = [1, 1]} : vector<128x32xf32> to vector<128x8xf32>
    %69 = vector.extract_strided_slice %12 {offsets = [0, 24], sizes = [128, 8], strides = [1, 1]} : vector<128x32xf32> to vector<128x8xf32>
    "tpu.trace_start"() <{level = 10 : i32, message = "qd,kd->qk"}> : () -> ()
    %cst_25 = arith.constant dense<0.000000e+00> : vector<128x128xf32>
    %70 = tpu.matmul %67, %68, %cst_25 {dimension_numbers = #tpu.dot_dimension_numbers<[1], [1], [0], [0], [0, 0, 1, 0], [], []>} : vector<128x8xf32>, vector<128x8xf32>, vector<128x128xf32> -> vector<128x128xf32>
    "tpu.trace_stop"() : () -> ()
    %c3 = arith.constant 3 : index
    %c0_26 = arith.constant 0 : index
    %c0_27 = arith.constant 0 : index
    %71 = vector.load %arg4[%c3, %c0_26, %c0_27] : memref<4x128x128xf32, #tpu.memory_space<vmem>>, vector<1x128x128xf32>
    %72 = vector.shape_cast %71 : vector<1x128x128xf32> to vector<128x128xf32>
    %73 = arith.addf %70, %72 : vector<128x128xf32>
    %cst_28 = arith.constant dense<0xFF800000> : vector<128xf32>
    %74 = vector.multi_reduction <maximumf>, %73, %cst_28 [1] : vector<128x128xf32> to vector<128xf32>
    %75 = vector.shape_cast %74 : vector<128xf32> to vector<128x1xf32>
    %76 = vector.broadcast %75 : vector<128x1xf32> to vector<128x128xf32>
    %77 = arith.subf %73, %76 : vector<128x128xf32>
    %78 = math.exp %77 : vector<128x128xf32>
    %cst_29 = arith.constant dense<0.000000e+00> : vector<128xf32>
    %79 = vector.multi_reduction <add>, %78, %cst_29 [1] : vector<128x128xf32> to vector<128xf32>
    %80 = vector.shape_cast %79 : vector<128xf32> to vector<128x1xf32>
    %81 = tpu.reciprocal %80 {approx = true} : vector<128x1xf32> -> vector<128x1xf32>
    %82 = vector.broadcast %81 : vector<128x1xf32> to vector<128x128xf32>
    %83 = arith.mulf %78, %82 : vector<128x128xf32>
    %cst_30 = arith.constant dense<0.000000e+00> : vector<128x8xf32>
    %84 = tpu.matmul %83, %69, %cst_30 {dimension_numbers = #tpu.dot_dimension_numbers<[1], [0], [0], [1], [0, 0, 1, 1], [], []>} : vector<128x128xf32>, vector<128x8xf32>, vector<128x8xf32> -> vector<128x8xf32>
    %85 = tpu.concatenate %30, %48, %66, %84 in 1 : vector<128x8xf32>, vector<128x8xf32>, vector<128x8xf32>, vector<128x8xf32> -> vector<128x32xf32>
    %c0_31 = arith.constant 0 : index
    %c0_32 = arith.constant 0 : index
    %86 = vector.load %arg5[%c0_31, %c0_32] : memref<32x32xf32, #tpu.memory_space<vmem>>, vector<32x32xf32>
    %cst_33 = arith.constant dense<0.000000e+00> : vector<128x32xf32>
    %87 = tpu.matmul %85, %86, %cst_33 {dimension_numbers = #tpu.dot_dimension_numbers<[1], [0], [0], [1], [0, 0, 1, 1], [], []>} : vector<128x32xf32>, vector<32x32xf32>, vector<128x32xf32> -> vector<128x32xf32>
    %c0_34 = arith.constant 0 : index
    %c0_35 = arith.constant 0 : index
    %88 = vector.load %arg6[%c0_34, %c0_35] : memref<1x32xf32, #tpu.memory_space<vmem>>, vector<1x32xf32>
    %89 = vector.shape_cast %88 : vector<1x32xf32> to vector<32xf32>
    %90 = vector.shape_cast %89 : vector<32xf32> to vector<1x32xf32>
    %91 = vector.broadcast %90 : vector<1x32xf32> to vector<128x32xf32>
    %92 = arith.addf %87, %91 : vector<128x32xf32>
    %c0_36 = arith.constant 0 : index
    %c0_37 = arith.constant 0 : index
    %93 = vector.load %arg7[%c0_36, %c0_37] : memref<128x32xf32, #tpu.memory_space<vmem>>, vector<128x32xf32>
    tpu.vector_store %arg7[%c0_36, %c0_37], %92 {strides = array<i32>} : memref<128x32xf32, #tpu.memory_space<vmem>>, vector<128x32xf32>,
    return
  }
  func.func @transform_0(%arg0: i32) -> (i32, i32) {
    %c0_i32 = arith.constant 0 : i32
    %c0_i32_0 = arith.constant 0 : i32
    return %arg0, %c0_i32 : i32, i32
  }
  func.func @transform_1(%arg0: i32) -> (i32, i32) {
    %c0_i32 = arith.constant 0 : i32
    %c0_i32_0 = arith.constant 0 : i32
    %c0_i32_1 = arith.constant 0 : i32
    return %c0_i32, %c0_i32_0 : i32, i32
  }
  func.func @transform_2(%arg0: i32) -> (i32, i32) {
    %c0_i32 = arith.constant 0 : i32
    %c0_i32_0 = arith.constant 0 : i32
    %c0_i32_1 = arith.constant 0 : i32
    return %c0_i32, %c0_i32_0 : i32, i32
  }
  func.func @transform_3(%arg0: i32) -> (i32, i32, i32) {
    %c0_i32 = arith.constant 0 : i32
    %c0_i32_0 = arith.constant 0 : i32
    %c0_i32_1 = arith.constant 0 : i32
    %c0_i32_2 = arith.constant 0 : i32
    return %c0_i32, %c0_i32_0, %c0_i32_1 : i32, i32, i32
  }
  func.func @transform_4(%arg0: i32) -> (i32, i32) {
    %c0_i32 = arith.constant 0 : i32
    %c0_i32_0 = arith.constant 0 : i32
    %c0_i32_1 = arith.constant 0 : i32
    return %c0_i32, %c0_i32_0 : i32, i32
  }
  func.func @transform_5(%arg0: i32) -> (i32, i32) {
    %c0_i32 = arith.constant 0 : i32
    %c0_i32_0 = arith.constant 0 : i32
    %c0_i32_1 = arith.constant 0 : i32
    return %c0_i32, %c0_i32_0 : i32, i32
  }
  func.func @transform_6(%arg0: i32) -> (i32, i32) {
    %c0_i32 = arith.constant 0 : i32
    %c0_i32_0 = arith.constant 0 : i32
    return %arg0, %c0_i32 : i32, i32
  }
}

</mosaic_0001>

<bundles_post_ra>
// kernel: tpu_custom_call.1
= control target key start
LH: loop header
LB: loop body
LE: loop exit
PB: predicated region body
PF: predicated region fallthrough
CT: control target
= control target key end

     0   :  { %11 = vsyncpa [#allocation3], 0  ;;  %s3101_s24 = smov [#allocation2]   ;;  %s3102_s26 = smov 128   ;;  %s5123_s0 = inlined_call_operand.vmem [shape: f32[128,32], index: 0, kind: input, shape index: {}]   ;;  %s5124_s1 = inlined_call_operand.vmem [shape: f32[32,96], index: 1, kind: input, shape index: {}]   ;;  %s5125_s2 = inlined_call_operand.vmem [shape: f32[1,96], index: 2, kind: input, shape index: {}]   ;;  %s5126_s3 = inlined_call_operand.hbm [shape: f32[4,128,128], index: 3, kind: input, shape index: {}]   ;;  %s5127_s4 = inlined_call_operand.vmem [shape: f32[32,32], index: 4, kind: input, shape index: {}]   ;;  %s5128_s5 = inlined_call_operand.vmem [shape: f32[1,32], index: 5, kind: input, shape index: {}]   ;;  %s5129_s6 = inlined_call_operand.vmem [shape: f32[128,32], index: 6, kind: output, shape index: {}]  }
   0x1   :  { %s22_s23 = sshll.u32 %s5126_s3, 4  ;;  %s24_s25 = sshll.u32 %s3101_s24, 4  ;;  %s23_s23 = int_to_ptr.hbm [resolvable:$true] %s22_s23  ;;  %s25_s25 = int_to_ptr.vmem [resolvable:$true] %s24_s25 }
   0x2   :  { %s3103_s27 = smov 8  }
   0x3   :  { %30 = dma.hbm_to_vmem [thread:$0]  %s23_s23, 8192, %s25_s25, [#allocation3], %s3102_s26, %s3102_s26, %s3103_s27  }
   0x4   :  { %3099 = dma.done.wait [#allocation3], 8192  }
   0x5   :  { %3100 = vsyncadd [#allocation3], 4294959104  ;;  %v58_v0 = vld [vmem:[%s5124_s1 + $0x18] sm:$0xff]  ;;  %v57_v1 = vld [vmem:[%s5124_s1 + $0x10] sm:$0xff]  ;;  %vm63_vm0 = vcmask 261120   ;;  %s3104_s19 = smov 96  }
   0x6   :  { %124 = vmatpush.msra.mxu0 %v58_v0  ;;  %2605 = vmatpush.msra.mxu3 %v58_v0  ;;  %v56_v2 = vld [vmem:[%s5124_s1 + $0x8] sm:$0xff]  ;;  %v55_v3 = vld [vmem:[%s5124_s1] sm:$0xff]  ;;  %v45_v8 = vld [vmem:[%s5123_s0 + $0x30] sm:$0xff]  ;;  %s3105_s20 = smov 120   ;;  %s3108_s21 = smov 72   ;;  %vm257_vm1 = vcmask 64512  }
   0x7   :  { %v39_v4 = vld [vmem:[%s5123_s0] sm:$0xff]  ;;  %v40_v6 = vld [vmem:[%s5123_s0 + $0x8] sm:$0xff]  ;;  %v41_v9 = vld [vmem:[%s5123_s0 + $0x10] sm:$0xff]  ;;  %s3109_s22 = smov 80   ;;  %s3110_s23 = smov 112   ;;  %vm2269_vm2 = vcmask 130048  }
   0x8   :  { %125 = vmatpush.msra.mxu0 %v57_v1  ;;  %2606 = vmatpush.msra.mxu3 %v57_v1  ;;  %v43_v5 = vld [vmem:[%s5123_s0 + $0x20] sm:$0xff]  ;;  %v44_v7 = vld [vmem:[%s5123_s0 + $0x28] sm:$0xff]  ;;  %v46_v10 = vld [vmem:[%s5123_s0 + $0x38] sm:$0xff]  ;;  %s3111_s24 = smov 104   ;;  %s3112_s25 = smov 56   ;;  %vm2286_vm3 = vcmask 195584  }
   0x9   :  { %v42_v11 = vld [vmem:[%s5123_s0 + $0x18] sm:$0xff]  ;;  %v47_v12 = vld [vmem:[%s5123_s0 + $0x40] sm:$0xff]  ;;  %v48_v13 = vld [vmem:[%s5123_s0 + $0x48] sm:$0xff]  ;;  %s3113_s26 = smov 48   ;;  %s3114_s28 = smov 40  }
   0xa   :  { %126 = vmatpush.msra.mxu0 %v56_v2  ;;  %2607 = vmatpush.msra.mxu3 %v56_v2  ;;  %v49_v14 = vld [vmem:[%s5123_s0 + $0x50] sm:$0xff]  ;;  %v50_v15 = vld [vmem:[%s5123_s0 + $0x58] sm:$0xff]  ;;  %v51_v16 = vld [vmem:[%s5123_s0 + $0x60] sm:$0xff]  ;;  %s3115_s29 = smov 24   ;;  %s3116_s30 = smov 16  }
   0xb   :  { %v52_v17 = vld [vmem:[%s5123_s0 + $0x68] sm:$0xff]  ;;  %v53_v18 = vld [vmem:[%s5123_s0 + $0x70] sm:$0xff]  ;;  %v54_v19 = vld [vmem:[%s5123_s0 + $0x78] sm:$0xff]  ;;  %s3106_s0 = smov 88  }
   0xc   :  { %127 = vmatpush.msra.mxu0 %v55_v3  ;;  %2608 = vmatpush.msra.mxu3 %v55_v3  ;;  %v3235_v20 = vld [vmem:[%s5125_s2] ss:$0 sm:$0xff]  ;;  %s3107_s2 = smov 64  }
   0xd   :  { %2445 = vmatmul.msk.f32.vlgmr.msra.gmra.mxu0 %vm63_vm0, %v39_v4  ;;  %2449 = vmatmul.msk.f32.vlgmr.msra.gmra.mxu3 %vm63_vm0, %v43_v5 }
  0x15   :  { %2446 = vmatmul.msk.f32.gmra.mxu0 %vm63_vm0, %v40_v6  ;;  %2450 = vmatmul.msk.f32.gmra.mxu3 %vm63_vm0, %v44_v7 }
  0x1d   :  { %2451 = vmatmul.msk.f32.gmra.mxu3 %vm63_vm0, %v45_v8  ;;  %2447 = vmatmul.msk.f32.gmra.mxu0 %vm63_vm0, %v41_v9 }
  0x25   :  { %2452 = vmatmul.msk.f32.gmra.mxu3 %vm63_vm0, %v46_v10  ;;  %2448 = vmatmul.msk.f32.gmra.mxu0 %vm63_vm0, %v42_v11 }
  0x2d   :  { %2453 = vmatmul.msk.f32.gmra.mxu3 %vm63_vm0, %v47_v12 }
  0x35   :  { %2454 = vmatmul.msk.f32.gmra.mxu3 %vm63_vm0, %v48_v13 }
  0x3d   :  { %2455 = vmatmul.msk.f32.gmra.mxu3 %vm63_vm0, %v49_v14 }
  0x45   :  { %2456 = vmatmul.msk.f32.gmra.mxu3 %vm63_vm0, %v50_v15 }
  0x4d   :  { %2457 = vmatmul.msk.f32.gmra.mxu3 %vm63_vm0, %v51_v16 }
  0x55   :  { %2458 = vmatmul.msk.f32.gmra.mxu3 %vm63_vm0, %v52_v17 }
  0x5d   :  { %2459 = vmatmul.msk.f32.gmra.mxu3 %vm63_vm0, %v53_v18 }
  0x65   :  { %2460 = vmatmul.msk.f32.gmra.mxu3 %vm63_vm0, %v54_v19 }
  0x8a   :  { %v129_v21 = vpop.f32.mrf.mxu0 }
  0x8b   :  { %v3238_v22 = vadd.f32 %v3235_v20, %v129_v21 }
  0x8d   :  { %225 = vrot.lane.b32.xlu0 %v3238_v22, %s3104_s19  ;;  %v3243_v23 = vmul.f32 0.35355338, %v3238_v22 }
  0x8f   :  { %677 = vrot.lane.b32.xlu1 %v3243_v23, %s3105_s20 }
  0x90   :  { %v141_v24 = vpop.f32.mrf.mxu3 }
  0x91   :  { %v3248_v25 = vadd.f32 %v3235_v20, %v141_v24 }
  0x92   :  { %v132_v26 = vpop.f32.mrf.mxu0 }
  0x93   :  { %233 = vrot.lane.b32.xlu2 %v3248_v25, %s3104_s19  ;;  %v3253_v27 = vmul.f32 0.35355338, %v3248_v25  ;;  %v3256_v28 = vadd.f32 %v3235_v20, %v132_v26 }
  0x95   :  { %5142 = vst [vmem:[#allocation5_spill] sm:$0xff] %v3256_v28  ;;  %685 = vrot.lane.b32.xlu0 %v3253_v27, %s3105_s20  ;;  %v3268_v31 = vmul.f32 0.35355338, %v3256_v28  ;;  %v2657_v33 = vpack.i.bf16 %v3256_v28, %v3238_v22 }
  0x97   :  { %227 = vrot.lane.b32.xlu1 %v3256_v28, %s3104_s19  ;;  %5143 = vst [vmem:[#allocation6_spill] sm:$0xff] %v3268_v31 }
  0x98   :  { %v144_v29 = vpop.f32.mrf.mxu3 }
  0x99   :  { %v3263_v30 = vadd.f32 %v3235_v20, %v144_v29 }
  0x9a   :  { %v135_v36 = vpop.f32.mrf.mxu0 }
  0x9b   :  { %717 = vrot.lane.b32.xlu2 %v3248_v25, %s3106_s0  ;;  %v2662_v32 = vpack.i.bf16 %v3263_v30, %v3248_v25  ;;  %v3286_v37 = vmul.f32 0.35355338, %v3263_v30  ;;  %v3291_v39 = vadd.f32 %v3235_v20, %v135_v36 }
  0x9d   :  { %679 = vrot.lane.b32.xlu0 %v3268_v31, %s3105_s20  ;;  %v3298_v40 = vmul.f32 0.35355338, %v3291_v39 }
  0x9f   :  { %2663 = vrot.lane.b32.xlu1 %v2662_v32, %s3107_s2 }
  0xa0   :  { %v147_v34 = vpop.f32.mrf.mxu3 }
  0xa1   :  { %v3278_v35 = vadd.f32 %v3235_v20, %v147_v34 }
  0xa2   :  { %v138_v41 = vpop.f32.mrf.mxu0 }
  0xa3   :  { %2658 = vrot.lane.b32.xlu2 %v2657_v33, %s3107_s2  ;;  %v3303_v43 = vadd.f32 %v3235_v20, %v138_v41  ;;  %v3318_v46 = vmul.f32 0.35355338, %v3278_v35 }
  0xa5   :  { %235 = vrot.lane.b32.xlu0 %v3263_v30, %s3104_s19  ;;  %v2667_v45 = vpack.i.bf16 %v3303_v43, %v3291_v39  ;;  %5144 = vst [vmem:[#allocation7_spill] sm:$0xff] %v3318_v46  ;;  %v3333_v50 = vmul.f32 0.35355338, %v3303_v43 }
  0xa7   :  { %237 = vrot.lane.b32.xlu1 %v3278_v35, %s3104_s19  ;;  %5145 = vst [vmem:[#allocation8_spill] sm:$0xff] %v3333_v50 }
  0xa8   :  { %v150_v38 = vpop.f32.mrf.mxu3 }
  0xa9   :  { %v3340_v52 = vadd.f32 %v3235_v20, %v150_v38 }
  0xab   :  { %687 = vrot.lane.b32.xlu2 %v3286_v37, %s3105_s20  ;;  %v2672_v53 = vpack.i.bf16 %v3340_v52, %v3278_v35  ;;  %v3372_v59 = vmul.f32 0.35355338, %v3340_v52 }
  0xad   :  { %719 = vrot.lane.b32.xlu0 %v3263_v30, %s3106_s0 }
  0xaf   :  { %721 = vrot.lane.b32.xlu1 %v3278_v35, %s3106_s0 }
  0xb0   :  { %v153_v42 = vpop.f32.mrf.mxu3 }
  0xb1   :  { %v3310_v44 = vadd.f32 %v3235_v20, %v153_v42 }
  0xb3   :  { %681 = vrot.lane.b32.xlu2 %v3298_v40, %s3105_s20  ;;  %v3323_v47 = vmul.f32 0.35355338, %v3310_v44 }
  0xb5   :  { %229 = vrot.lane.b32.xlu0 %v3291_v39, %s3104_s19 }
  0xb7   :  { %231 = vrot.lane.b32.xlu1 %v3303_v43, %s3104_s19 }
  0xb8   :  { %v156_v48 = vpop.f32.mrf.mxu3 }
  0xb9   :  { %v3328_v49 = vadd.f32 %v3235_v20, %v156_v48 }
  0xbb   :  { %241 = vrot.lane.b32.xlu2 %v3310_v44, %s3104_s19  ;;  %v2677_v51 = vpack.i.bf16 %v3328_v49, %v3310_v44  ;;  %v3352_v54 = vmul.f32 0.35355338, %v3328_v49 }
  0xbd   :  { %2668 = vrot.lane.b32.xlu0 %v2667_v45, %s3107_s2 }
  0xbf   :  { %689 = vrot.lane.b32.xlu1 %v3318_v46, %s3105_s20 }
  0xc0   :  { %v159_v55 = vpop.f32.mrf.mxu3 }
  0xc1   :  { %v3356_v56 = vadd.f32 %v3235_v20, %v159_v55 }
  0xc3   :  { %693 = vrot.lane.b32.xlu2 %v3323_v47, %s3105_s20  ;;  %v3396_v1 = vmul.f32 0.35355338, %v3356_v56 }
  0xc5   :  { %715 = vrot.lane.b32.xlu0 %v3303_v43, %s3106_s0 }
  0xc7   :  { %683 = vrot.lane.b32.xlu1 %v3333_v50, %s3105_s20 }
  0xc8   :  { %v162_v57 = vpop.f32.mrf.mxu3 }
  0xc9   :  { %v3367_v58 = vadd.f32 %v3235_v20, %v162_v57 }
  0xcb   :  { %2678 = vrot.lane.b32.xlu2 %v2677_v51, %s3107_s2  ;;  %v3379_v60 = vmul.f32 0.35355338, %v3367_v58  ;;  %v2682_v63 = vpack.i.bf16 %v3367_v58, %v3356_v56 }
  0xcd   :  { %239 = vrot.lane.b32.xlu0 %v3340_v52, %s3104_s19 }
  0xcf   :  { %725 = vrot.lane.b32.xlu1 %v3310_v44, %s3106_s0 }
  0xd0   :  { %v165_v61 = vpop.f32.mrf.mxu3 }
  0xd1   :  { %v3390_v0 = vadd.f32 %v3235_v20, %v165_v61 }
  0xd3   :  { %727 = vrot.lane.b32.xlu2 %v3328_v49, %s3106_s0  ;;  %v3399_v2 = vmul.f32 0.35355338, %v3390_v0 }
  0xd5   :  { %2673 = vrot.lane.b32.xlu0 %v2672_v53, %s3107_s2 }
  0xd7   :  { %695 = vrot.lane.b32.xlu1 %v3352_v54, %s3105_s20 }
  0xd8   :  { %v168_v4 = vpop.f32.mrf.mxu3 }
  0xd9   :  { %v3408_v5 = vadd.f32 %v3235_v20, %v168_v4 }
  0xdb   :  { %245 = vrot.lane.b32.xlu2 %v3356_v56, %s3104_s19  ;;  %v2687_v11 = vpack.i.bf16 %v3408_v5, %v3390_v0  ;;  %v3441_v15 = vmul.f32 0.35355338, %v3408_v5 }
  0xdd   :  { %723 = vrot.lane.b32.xlu0 %v3340_v52, %s3106_s0 }
  0xdf   :  { %729 = vrot.lane.b32.xlu1 %v3356_v56, %s3106_s0 }
  0xe0   :  { %v171_v9 = vpop.f32.mrf.mxu3 }
  0xe1   :  { %v3423_v10 = vadd.f32 %v3235_v20, %v171_v9 }
  0xe3   :  { %731 = vrot.lane.b32.xlu2 %v3367_v58, %s3106_s0  ;;  %v3448_v17 = vmul.f32 0.35355338, %v3423_v10 }
  0xe5   :  { %691 = vrot.lane.b32.xlu0 %v3372_v59, %s3105_s20 }
  0xe7   :  { %247 = vrot.lane.b32.xlu1 %v3367_v58, %s3104_s19 }
  0xe8   :  { %v174_v33 = vpop.f32.mrf.mxu3 }
  0xe9   :  { %v3481_v36 = vadd.f32 %v3235_v20, %v174_v33 }
  0xeb   :  { %699 = vrot.lane.b32.xlu2 %v3379_v60, %s3105_s20 }
  0xed   :  { %v3383_v62 = vpop.permute.xlu2 %233  ;;  %243 = vrot.lane.b32.xlu0 %v3328_v49, %s3104_s19 }
  0xef   :  { %2683 = vrot.lane.b32.xlu1 %v2682_v63, %s3107_s2 }
  0xf3   :  { %249 = vrot.lane.b32.xlu2 %v3390_v0, %s3104_s19 }
  0xf5   :  { %v3401_v3 = vpop.permute.xlu2 %717  ;;  %697 = vrot.lane.b32.xlu0 %v3396_v1, %s3105_s20 }
  0xf6   :  { %5146 = vst [vmem:[#allocation9_spill] sm:$0xff] %v3401_v3 }
  0xf7   :  { %701 = vrot.lane.b32.xlu1 %v3399_v2, %s3105_s20 }
  0xfb   :  { %251 = vrot.lane.b32.xlu2 %v3408_v5, %s3104_s19 }
  0xfd   :  { %v3412_v6 = vpop.permute.xlu2 %2658  ;;  %733 = vrot.lane.b32.xlu0 %v3390_v0, %s3106_s0 }
  0xff   :  { %v3416_v7 = vpop.permute.xlu0 %225  ;;  %711 = vrot.lane.b32.xlu1 %v3256_v28, %s3106_s0 }
 0x101   :  { %v3420_v8 = vpop.permute.xlu1 %677 }
 0x102   :  { %5147 = vst [vmem:[#allocation10_spill] sm:$0xff] %v3420_v8 }
 0x103   :  { %713 = vrot.lane.b32.xlu2 %v3291_v39, %s3106_s0 }
 0x105   :  { %v3429_v12 = vpop.permute.xlu2 %687  ;;  %2688 = vrot.lane.b32.xlu0 %v2687_v11, %s3107_s2 }
 0x106   :  { %5148 = vst [vmem:[#allocation11_spill] sm:$0xff] %v3429_v12 }
 0x107   :  { %v3432_v13 = vpop.permute.xlu0 %685  ;;  %253 = vrot.lane.b32.xlu1 %v3423_v10, %s3104_s19 }
 0x108   :  { %5149 = vst [vmem:[#allocation12_spill] sm:$0xff] %v3432_v13 }
 0x109   :  { %v3436_v14 = vpop.permute.xlu1 %227 }
 0x10b   :  { %709 = vrot.lane.b32.xlu2 %v3238_v22, %s3106_s0 }
 0x10d   :  { %v3443_v16 = vpop.permute.xlu2 %681  ;;  %703 = vrot.lane.b32.xlu0 %v3441_v15, %s3105_s20 }
 0x10e   :  { %5150 = vst [vmem:[#allocation13_spill] sm:$0xff] %v3443_v16 }
 0x10f   :  { %v3450_v18 = vpop.permute.xlu0 %679  ;;  %705 = vrot.lane.b32.xlu1 %v3448_v17, %s3105_s20 }
 0x110   :  { %5151 = vst [vmem:[#allocation14_spill] sm:$0xff] %v3450_v18 }
 0x111   :  { %v3454_v19 = vpop.permute.xlu1 %2663 }
 0x113   :  { %735 = vrot.lane.b32.xlu2 %v3408_v5, %s3106_s0 }
 0x115   :  { %v3458_v21 = vpop.permute.xlu2 %241  ;;  %737 = vrot.lane.b32.xlu0 %v3423_v10, %s3106_s0 }
 0x117   :  { %v3462_v24 = vpop.permute.xlu0 %235  ;;  %1669 = vrot.lane.b32.xlu1 %v3408_v5, %s3108_s21 }
 0x119   :  { %v3466_v26 = vpop.permute.xlu1 %237 }
 0x11b   :  { %1671 = vrot.lane.b32.xlu2 %v3423_v10, %s3108_s21 }
 0x11d   :  { %v3470_v29 = vpop.permute.xlu2 %693  ;;  %1204 = vrot.lane.b32.xlu0 %v3423_v10, %s3109_s22 }
 0x11e   :  { %5152 = vst [vmem:[#allocation15_spill] sm:$0xff] %v3470_v29 }
 0x11f   :  { %v3474_v32 = vpop.permute.xlu0 %719  ;;  %1198 = vrot.lane.b32.xlu1 %v3367_v58, %s3109_s22 }
 0x120   :  { %5153 = vst [vmem:[#allocation16_spill] sm:$0xff] %v3474_v32 }
 0x121   :  { %v3478_v34 = vpop.permute.xlu1 %721 }
 0x122   :  { %5154 = vst [vmem:[#allocation17_spill] sm:$0xff] %v3478_v34 }
 0x123   :  { %1200 = vrot.lane.b32.xlu2 %v3390_v0, %s3109_s22 }
 0x125   :  { %v3485_v38 = vpop.permute.xlu2 %2678  ;;  %255 = vrot.lane.b32.xlu0 %v3481_v36, %s3104_s19 }
 0x127   :  { %v3489_v41 = vpop.permute.xlu0 %229  ;;  %1663 = vrot.lane.b32.xlu1 %v3356_v56, %s3108_s21 }
 0x129   :  { %v3493_v42 = vpop.permute.xlu1 %231 }
 0x12b   :  { %1665 = vrot.lane.b32.xlu2 %v3367_v58, %s3108_s21 }
 0x12d   :  { %v3497_v20 = vpop.permute.xlu2 %727  ;;  %1202 = vrot.lane.b32.xlu0 %v3408_v5, %s3109_s22 }
 0x12f   :  { %v3501_v45 = vpop.permute.xlu0 %2668  ;;  %1192 = vrot.lane.b32.xlu1 %v3310_v44, %s3109_s22 }
 0x131   :  { %v3505_v48 = vpop.permute.xlu1 %689 }
 0x132   :  { %5155 = vst [vmem:[#allocation18_spill] sm:$0xff] %v3505_v48  ;;  %v2692_v48 = vpack.i.bf16 %v3481_v36, %v3423_v10 }
 0x133   :  { %1194 = vrot.lane.b32.xlu2 %v3328_v49, %s3109_s22 }
 0x135   :  { %v3509_v51 = vpop.permute.xlu2 %245  ;;  %1667 = vrot.lane.b32.xlu0 %v3390_v0, %s3108_s21 }
 0x137   :  { %v3513_v53 = vpop.permute.xlu0 %715  ;;  %1657 = vrot.lane.b32.xlu1 %v3340_v52, %s3108_s21 }
 0x138   :  { %5156 = vst [vmem:[#allocation19_spill] sm:$0xff] %v3513_v53 }
 0x139   :  { %v3517_v55 = vpop.permute.xlu1 %683 }
 0x13a   :  { %5157 = vst [vmem:[#allocation20_spill] sm:$0xff] %v3517_v55  ;;  %v3571_v55 = vmul.f32 0.35355338, %v3481_v36 }
 0x13b   :  { %1659 = vrot.lane.b32.xlu2 %v3310_v44, %s3108_s21 }
 0x13c   :  { %5161 = vst [vmem:[#allocation24_spill] sm:$0xff] %v3571_v55 }
 0x13d   :  { %v3521_v57 = vpop.permute.xlu2 %731  ;;  %1196 = vrot.lane.b32.xlu0 %v3356_v56, %s3109_s22 }
 0x13f   :  { %v3525_v61 = vpop.permute.xlu0 %239  ;;  %1186 = vrot.lane.b32.xlu1 %v3263_v30, %s3109_s22 }
 0x141   :  { %v3529_v63 = vpop.permute.xlu1 %725 }
 0x143   :  { %1188 = vrot.lane.b32.xlu2 %v3278_v35, %s3109_s22 }
 0x145   :  { %v3533_v4 = vpop.permute.xlu2 %699  ;;  %1661 = vrot.lane.b32.xlu0 %v3328_v49, %s3108_s21 }
 0x146   :  { %5158 = vst [vmem:[#allocation21_spill] sm:$0xff] %v3533_v4 }
 0x147   :  { %v3537_v9 = vpop.permute.xlu0 %2673  ;;  %739 = vrot.lane.b32.xlu1 %v3481_v36, %s3106_s0 }
 0x149   :  { %v3541_v11 = vpop.permute.xlu1 %695 }
 0x14a   :  { %5159 = vst [vmem:[#allocation22_spill] sm:$0xff] %v3541_v11 }
 0x14b   :  { %1653 = vrot.lane.b32.xlu2 %v3263_v30, %s3108_s21 }
 0x14d   :  { %v3545_v33 = vpop.permute.xlu2 %249  ;;  %1190 = vrot.lane.b32.xlu0 %v3340_v52, %s3109_s22 }
 0x14f   :  { %v3549_v29 = vpop.permute.xlu0 %723  ;;  %1673 = vrot.lane.b32.xlu1 %v3481_v36, %s3108_s21 }
 0x151   :  { %v3553_v4 = vpop.permute.xlu1 %729 }
 0x153   :  { %2693 = vrot.lane.b32.xlu2 %v2692_v48, %s3107_s2 }
 0x155   :  { %v3558_v11 = vpop.permute.xlu2 %251  ;;  %1655 = vrot.lane.b32.xlu0 %v3278_v35, %s3108_s21 }
 0x157   :  { %v3562_v12 = vpop.permute.xlu0 %691  ;;  %1651 = vrot.lane.b32.xlu1 %v3248_v25, %s3108_s21 }
 0x158   :  { %5160 = vst [vmem:[#allocation23_spill] sm:$0xff] %v3562_v12 }
 0x159   :  { %v3566_v13 = vpop.permute.xlu1 %247 }
 0x15b   :  { %1206 = vrot.lane.b32.xlu2 %v3481_v36, %s3109_s22 }
 0x15d   :  { %v3573_v16 = vpop.permute.xlu2 %713  ;;  %707 = vrot.lane.b32.xlu0 %v3571_v55, %s3105_s20 }
 0x15e   :  { %5162 = vst [vmem:[#allocation25_spill] sm:$0xff] %v3573_v16 }
 0x15f   :  { %v3577_v48 = vpop.permute.xlu0 %243  ;;  %1180 = vrot.lane.b32.xlu1 %v3291_v39, %s3109_s22 }
 0x161   :  { %v3581_v12 = vpop.permute.xlu1 %2683 }
 0x163   :  { %1182 = vrot.lane.b32.xlu2 %v3303_v43, %s3109_s22 }
 0x165   :  { %v3585_v18 = vpop.permute.xlu2 %709  ;;  %1184 = vrot.lane.b32.xlu0 %v3248_v25, %s3109_s22 }
 0x166   :  { %5163 = vst [vmem:[#allocation26_spill] sm:$0xff] %v3585_v18 }
 0x167   :  { %v3589_v8 = vpop.permute.xlu0 %697  ;;  %1645 = vrot.lane.b32.xlu1 %v3256_v28, %s3108_s21 }
 0x168   :  { %5164 = vst [vmem:[#allocation27_spill] sm:$0xff] %v3589_v8 }
 0x169   :  { %v3593_v55 = vpop.permute.xlu1 %701 }
 0x16a   :  { %5165 = vst [vmem:[#allocation28_spill] sm:$0xff] %v3593_v55 }
 0x16b   :  { %1647 = vrot.lane.b32.xlu2 %v3291_v39, %s3108_s21 }
 0x16d   :  { %v3597_v16 = vpop.permute.xlu2 %735  ;;  %1649 = vrot.lane.b32.xlu0 %v3303_v43, %s3108_s21 }
 0x16f   :  { %v3601_v53 = vpop.permute.xlu0 %733  ;;  %1144 = vrot.lane.b32.xlu1 %v3243_v23, %s3110_s23 }
 0x171   :  { %v3605_v8 = vpop.permute.xlu1 %711 }
 0x172   :  { %5166 = vst [vmem:[#allocation29_spill] sm:$0xff] %v3605_v8 }
 0x173   :  { %1176 = vrot.lane.b32.xlu2 %v3238_v22, %s3109_s22 }
 0x175   :  { %v3609_v55 = vpop.permute.xlu2 %1671  ;;  %1178 = vrot.lane.b32.xlu0 %v3256_v28, %s3109_s22 }
 0x176   :  { %5167 = vst [vmem:[#allocation30_spill] sm:$0xff] %v3609_v55 }
 0x177   :  { %v3613_v18 = vpop.permute.xlu0 %2688  ;;  %1613 = vrot.lane.b32.xlu1 %v3268_v31, %s3111_s24 }
 0x179   :  { %v254_v3 = vpop.permute.xlu1 %253 }
 0x17b   :  { %1611 = vrot.lane.b32.xlu2 %v3243_v23, %s3111_s24 }
 0x17d   :  { %v3619_v32 = vpop.permute.xlu2 %1200  ;;  %1643 = vrot.lane.b32.xlu0 %v3238_v22, %s3108_s21 }
 0x17e   :  { %5168 = vst [vmem:[#allocation31_spill] sm:$0xff] %v3619_v32 }
 0x17f   :  { %v3623_v8 = vpop.permute.xlu0 %703  ;;  %1150 = vrot.lane.b32.xlu1 %v3333_v50, %s3110_s23 }
 0x180   :  { %5169 = vst [vmem:[#allocation32_spill] sm:$0xff] %v3623_v8 }
 0x181   :  { %v3627_v55 = vpop.permute.xlu1 %705 }
 0x182   :  { %5170 = vst [vmem:[#allocation33_spill] sm:$0xff] %v3627_v55 }
 0x183   :  { %1148 = vrot.lane.b32.xlu2 %v3298_v40, %s3110_s23 }
 0x185   :  { %v3631_v34 = vpop.permute.xlu2 %1665  ;;  %1146 = vrot.lane.b32.xlu0 %v3268_v31, %s3110_s23 }
 0x186   :  { %5171 = vst [vmem:[#allocation34_spill] sm:$0xff] %v3631_v34 }
 0x187   :  { %v3635_v28 = vpop.permute.xlu0 %737  ;;  %1619 = vrot.lane.b32.xlu1 %v3253_v27, %s3111_s24 }
 0x189   :  { %v3639_v32 = vpop.permute.xlu1 %1669 }
 0x18a   :  { %5172 = vst [vmem:[#allocation35_spill] sm:$0xff] %v3639_v32 }
 0x18b   :  { %1617 = vrot.lane.b32.xlu2 %v3333_v50, %s3111_s24 }
 0x18d   :  { %v3643_v8 = vpop.permute.xlu2 %1194  ;;  %1615 = vrot.lane.b32.xlu0 %v3298_v40, %s3111_s24 }
 0x18e   :  { %5173 = vst [vmem:[#allocation36_spill] sm:$0xff] %v3643_v8 }
 0x18f   :  { %v3647_v55 = vpop.permute.xlu0 %1204  ;;  %1156 = vrot.lane.b32.xlu1 %v3318_v46, %s3110_s23 }
 0x191   :  { %v3651_v34 = vpop.permute.xlu1 %1198 }
 0x193   :  { %1154 = vrot.lane.b32.xlu2 %v3286_v37, %s3110_s23 }
 0x195   :  { %v3655_v31 = vpop.permute.xlu2 %1659  ;;  %1152 = vrot.lane.b32.xlu0 %v3253_v27, %s3110_s23 }
 0x196   :  { %5174 = vst [vmem:[#allocation37_spill] sm:$0xff] %v3655_v31 }
 0x197   :  { %v256_v32 = vpop.permute.xlu0 %255  ;;  %1625 = vrot.lane.b32.xlu1 %v3372_v59, %s3111_s24 }
 0x198   :  { %2461 = vmatpush.xpose.msk.msra.mxu1 %vm257_vm1, %v256_v32 }
 0x199   :  { %v3662_v50 = vpop.permute.xlu1 %1663 }
 0x19a   :  { %5175 = vst [vmem:[#allocation38_spill] sm:$0xff] %v3662_v50  ;;  %v3689_v50 = vpack.i.bf16 %v3390_v0, %v3408_v5  ;;  %v3707_v0 = vpack.i.bf16 %v3356_v56, %v3367_v58  ;;  %v3724_v56 = vunpack.i.h.bf16 %v3613_v18  ;;  %v3732_v58 = vpack.i.bf16 %v3423_v10, %v3481_v36 }
 0x19b   :  { %1623 = vrot.lane.b32.xlu2 %v3318_v46, %s3111_s24  ;;  %v3763_v36 = vpack.i.bf16 %v3310_v44, %v3328_v49  ;;  %v3785_v49 = vunpack.i.h.bf16 %v3537_v9 }
 0x19c   :  { %2462 = vmatpush.xpose.msk.msra.mxu1 %vm257_vm1, %v254_v3  ;;  %5176 = vst [vmem:[#allocation39_spill] sm:$0xff] %v3689_v50 }
 0x19d   :  { %v3667_v8 = vpop.permute.xlu2 %1188  ;;  %1621 = vrot.lane.b32.xlu0 %v3286_v37, %s3111_s24  ;;  %5177 = vst [vmem:[#allocation40_spill] sm:$0xff] %v3707_v0 }
 0x19e   :  { %5178 = vst [vmem:[#allocation41_spill] sm:$0xff] %v3732_v58 }
 0x19f   :  { %v3671_v31 = vpop.permute.xlu0 %1202  ;;  %1162 = vrot.lane.b32.xlu1 %v3352_v54, %s3110_s23 }
 0x1a0   :  { %2463 = vmatpush.xpose.msk.msra.mxu1 %vm257_vm1, %v3558_v11 }
 0x1a1   :  { %v3677_v32 = vpop.permute.xlu1 %1192 }
 0x1a3   :  { %1160 = vrot.lane.b32.xlu2 %v3323_v47, %s3110_s23 }
 0x1a4   :  { %2464 = vmatpush.xpose.msk.msra.mxu1 %vm257_vm1, %v3545_v33 }
 0x1a5   :  { %v3683_v3 = vpop.permute.xlu2 %1653  ;;  %1158 = vrot.lane.b32.xlu0 %v3372_v59, %s3110_s23 }
 0x1a7   :  { %v3691_v46 = vpop.permute.xlu0 %1667  ;;  %2703 = vrot.lane.b32.xlu1 %v3689_v50, %s3112_s25 }
 0x1a8   :  { %2465 = vmatpush.xpose.msk.msra.mxu1 %vm257_vm1, %v3566_v13 }
 0x1a9   :  { %v3697_v11 = vpop.permute.xlu1 %1657 }
 0x1ab   :  { %1629 = vrot.lane.b32.xlu2 %v3352_v54, %s3111_s24 }
 0x1ac   :  { %2466 = vmatpush.xpose.msk.msra.mxu1 %vm257_vm1, %v3509_v51 }
 0x1ad   :  { %v2694_v33 = vpop.permute.xlu2 %2693  ;;  %1627 = vrot.lane.b32.xlu0 %v3323_v47, %s3111_s24 }
 0x1ae   :  { %v3709_v5 = vunpack.i.h.bf16 %v2694_v33  ;;  %v3715_v13 = vunpack.i.l.bf16 %v2694_v33 }
 0x1af   :  { %v3711_v50 = vpop.permute.xlu0 %1196  ;;  %2708 = vrot.lane.b32.xlu1 %v3707_v0, %s3112_s25  ;;  %v3746_v0 = vunpack.i.h.bf16 %v3581_v12 }
 0x1b0   :  { %2467 = vmatpush.xpose.msk.msra.mxu1 %vm257_vm1, %v3577_v48  ;;  %595 = vmatpush.msrb.mxu0 %v3709_v5  ;;  %v3735_v48 = vunpack.i.l.bf16 %v3613_v18  ;;  %v3755_v18 = vunpack.i.l.bf16 %v3581_v12  ;;  %v3774_v12 = vunpack.i.l.bf16 %v3485_v38 }
 0x1b1   :  { %2610 = vmatpush.msra.mxu2 %v3709_v5  ;;  %v3721_v51 = vpop.permute.xlu1 %1186 }
 0x1b2   :  { %596 = vmatpush.msrb.mxu0 %v3715_v13 }
 0x1b3   :  { %2612 = vmatpush.msra.mxu2 %v3715_v13  ;;  %1164 = vrot.lane.b32.xlu2 %v3396_v1, %s3110_s23 }
 0x1b4   :  { %2468 = vmatpush.xpose.msk.msra.mxu1 %vm257_vm1, %v3458_v21  ;;  %597 = vmatpush.msrb.mxu0 %v3724_v56 }
 0x1b5   :  { %2614 = vmatpush.msra.mxu2 %v3724_v56  ;;  %v3741_v33 = vpop.permute.xlu2 %1206  ;;  %2698 = vrot.lane.b32.xlu0 %v3732_v58, %s3112_s25  ;;  %v3766_v58 = vunpack.i.h.bf16 %v3485_v38  ;;  %v3796_v38 = vunpack.i.l.bf16 %v3537_v9  ;;  %v5185_v9 = vld [vmem:[#allocation36_spill] sm:$0xff] }
 0x1b6   :  { %598 = vmatpush.msrb.mxu0 %v3735_v48 }
 0x1b7   :  { %2616 = vmatpush.msra.mxu2 %v3735_v48  ;;  %v3750_v10 = vpop.permute.xlu0 %1661  ;;  %1633 = vrot.lane.b32.xlu1 %v3379_v60, %s3111_s24 }
 0x1b8   :  { %2469 = vmatpush.xpose.msk.msra.mxu1 %vm257_vm1, %v3525_v61  ;;  %599 = vmatpush.msrb.mxu0 %v3746_v0 }
 0x1b9   :  { %2618 = vmatpush.msra.mxu2 %v3746_v0  ;;  %v740_v21 = vpop.permute.xlu1 %739 }
 0x1ba   :  { %600 = vmatpush.msrb.mxu0 %v3755_v18  ;;  %2493 = vmatpush.xpose.msk.msrb.mxu3 %vm257_vm1, %v740_v21  ;;  %v3809_v21 = vunpack.i.h.bf16 %v3454_v19 }
 0x1bb   :  { %2620 = vmatpush.msra.mxu2 %v3755_v18  ;;  %2713 = vrot.lane.b32.xlu2 %v3763_v36, %s3112_s25 }
 0x1bc   :  { %2470 = vmatpush.xpose.msk.msra.mxu1 %vm257_vm1, %v3466_v26  ;;  %601 = vmatpush.msrb.mxu0 %v3766_v58 }
 0x1bd   :  { %2622 = vmatpush.msra.mxu2 %v3766_v58  ;;  %v3780_v44 = vpop.permute.xlu2 %1182  ;;  %1631 = vrot.lane.b32.xlu0 %v3396_v1, %s3111_s24 }
 0x1be   :  { %602 = vmatpush.msrb.mxu0 %v3774_v12  ;;  %2494 = vmatpush.xpose.msk.msrb.mxu3 %vm257_vm1, %v3635_v28  ;;  %v3806_v28 = vpack.i.bf16 %v3278_v35, %v3340_v52  ;;  %v3828_v35 = vpack.i.bf16 %v3291_v39, %v3303_v43  ;;  %v3831_v52 = vunpack.i.h.bf16 %v3501_v45  ;;  %v3844_v39 = vunpack.i.l.bf16 %v3501_v45 }
 0x1bf   :  { %2624 = vmatpush.msra.mxu2 %v3774_v12  ;;  %v3791_v26 = vpop.permute.xlu0 %1190  ;;  %1168 = vrot.lane.b32.xlu1 %v3399_v2, %s3110_s23  ;;  %v3866_v45 = vunpack.i.l.bf16 %v3412_v6 }
 0x1c0   :  { %2471 = vmatpush.xpose.msk.msra.mxu1 %vm257_vm1, %v3462_v24  ;;  %603 = vmatpush.msrb.mxu0 %v3785_v49  ;;  %v3818_v24 = vunpack.i.l.bf16 %v3454_v19  ;;  %v3853_v19 = vunpack.i.h.bf16 %v3412_v6 }
 0x1c1   :  { %2626 = vmatpush.msra.mxu2 %v3785_v49  ;;  %v3802_v61 = vpop.permute.xlu1 %1673 }
 0x1c2   :  { %604 = vmatpush.msrb.mxu0 %v3796_v38  ;;  %2495 = vmatpush.xpose.msk.msrb.mxu3 %vm257_vm1, %v3597_v16 }
 0x1c3   :  { %2628 = vmatpush.msra.mxu2 %v3796_v38  ;;  %2718 = vrot.lane.b32.xlu2 %v3806_v28, %s3112_s25 }
 0x1c4   :  { %2472 = vmatpush.xpose.msk.msra.mxu1 %vm257_vm1, %v3383_v62  ;;  %605 = vmatpush.msrb.mxu0 %v3809_v21 }
 0x1c5   :  { %2630 = vmatpush.msra.mxu2 %v3809_v21  ;;  %1166 = vrot.lane.b32.xlu0 %v3379_v60, %s3110_s23  ;;  %v3836_v62 = vpop.permute.xlu2 %1647 }
 0x1c6   :  { %606 = vmatpush.msrb.mxu0 %v3818_v24  ;;  %2496 = vmatpush.xpose.msk.msrb.mxu3 %vm257_vm1, %v3601_v53 }
 0x1c7   :  { %2632 = vmatpush.msra.mxu2 %v3818_v24  ;;  %v3839_v16 = vpop.permute.xlu0 %1655  ;;  %2728 = vrot.lane.b32.xlu1 %v3828_v35, %s3112_s25 }
 0x1c8   :  { %2473 = vmatpush.xpose.msk.msra.mxu1 %vm257_vm1, %v3493_v42  ;;  %607 = vmatpush.msrb.mxu0 %v3831_v52  ;;  %v3863_v42 = vpack.i.bf16 %v3248_v25, %v3263_v30 }
 0x1c9   :  { %2634 = vmatpush.msra.mxu2 %v3831_v52  ;;  %v3850_v43 = vpop.permute.xlu1 %1651 }
 0x1ca   :  { %608 = vmatpush.msrb.mxu0 %v3844_v39  ;;  %2497 = vmatpush.xpose.msk.msrb.mxu3 %vm257_vm1, %v3521_v57  ;;  %v5183_v57 = vld [vmem:[#allocation16_spill] sm:$0xff] }
 0x1cb   :  { %2636 = vmatpush.msra.mxu2 %v3844_v39  ;;  %1639 = vrot.lane.b32.xlu2 %v3448_v17, %s3111_s24 }
 0x1cc   :  { %2474 = vmatpush.xpose.msk.msra.mxu1 %vm257_vm1, %v3489_v41  ;;  %609 = vmatpush.msrb.mxu0 %v3853_v19 }
 0x1cd   :  { %2638 = vmatpush.msra.mxu2 %v3853_v19  ;;  %2723 = vrot.lane.b32.xlu0 %v3863_v42, %s3112_s25  ;;  %v3886_v30 = vpop.permute.xlu2 %1176 }
 0x1ce   :  { %610 = vmatpush.msrb.mxu0 %v3866_v45  ;;  %2498 = vmatpush.xpose.msk.msrb.mxu3 %vm257_vm1, %v3553_v4  ;;  %v5184_v4 = vld [vmem:[#allocation9_spill] sm:$0xff] }
 0x1cf   :  { %2640 = vmatpush.msra.mxu2 %v3866_v45  ;;  %v3878_v25 = vpop.permute.xlu0 %707  ;;  %1170 = vrot.lane.b32.xlu1 %v3441_v15, %s3110_s23 }
 0x1d0   :  { %2475 = vmatpush.xpose.msk.msra.mxu1 %vm257_vm1, %v3436_v14 }
 0x1d1   :  { %2525 = vmatpush.xpose.msk.msrb.mxu2 %vm257_vm1, %v3741_v33  ;;  %v3888_v6 = vpop.permute.xlu1 %1180 }
 0x1d2   :  { %2499 = vmatpush.xpose.msk.msrb.mxu3 %vm257_vm1, %v3497_v20  ;;  %v5179_v20 = vld [vmem:[#allocation5_spill] sm:$0xff] }
 0x1d3   :  { %v3917_v53 = vpack.i.bf16 %v3238_v22, %v5179_v20  ;;  %v5182_v22 = vld [vmem:[#allocation6_spill] sm:$0xff] }
 0x1d4   :  { %2476 = vmatpush.xpose.msk.msra.mxu1 %vm257_vm1, %v3416_v7 }
 0x1d5   :  { %2526 = vmatpush.xpose.msk.msrb.mxu2 %vm257_vm1, %v3647_v55  ;;  %1635 = vrot.lane.b32.xlu0 %v3399_v2, %s3111_s24  ;;  %v3913_v41 = vpop.permute.xlu2 %1611 }
 0x1d6   :  { %2500 = vmatpush.xpose.msk.msrb.mxu3 %vm257_vm1, %v3529_v63 }
 0x1d7   :  { %v1185_v14 = vpop.permute.xlu0 %1184  ;;  %1637 = vrot.lane.b32.xlu1 %v3441_v15, %s3111_s24  ;;  %2477 = vmatmul.msk.f32.vlgmr.msra.gmra.mxu1 %vm257_vm1, %v3243_v23  ;;  %v5180_v23 = vld [vmem:[#allocation31_spill] sm:$0xff] }
 0x1d8   :  { %2609 = vmatpush.msrb.mxu1 %v3709_v5 }
 0x1d9   :  { %2527 = vmatpush.xpose.msk.msrb.mxu2 %vm257_vm1, %v3671_v31  ;;  %v3908_v7 = vpop.permute.xlu1 %1645  ;;  %v5181_v31 = vld [vmem:[#allocation17_spill] sm:$0xff] }
 0x1da   :  { %2611 = vmatpush.msrb.mxu1 %v3715_v13  ;;  %2501 = vmatpush.xpose.msk.msrb.mxu3 %vm257_vm1, %v3549_v29 }
 0x1dc   :  { %2613 = vmatpush.msrb.mxu1 %v3724_v56  ;;  %v5188_v56 = vld [vmem:[#allocation8_spill] sm:$0xff] }
 0x1dd   :  { %2528 = vmatpush.xpose.msk.msrb.mxu2 %vm257_vm1, %v5180_v23  ;;  %2733 = vrot.lane.b32.xlu0 %v3917_v53, %s3112_s25  ;;  %v3944_v63 = vpop.permute.xlu2 %1148 }
 0x1de   :  { %2615 = vmatpush.msrb.mxu1 %v3735_v48  ;;  %2502 = vmatpush.xpose.msk.msrb.mxu3 %vm257_vm1, %v5181_v31  ;;  %v5190_v48 = vld [vmem:[#allocation26_spill] sm:$0xff] }
 0x1df   :  { %v3927_v29 = vpop.permute.xlu0 %1649  ;;  %1172 = vrot.lane.b32.xlu1 %v3448_v17, %s3110_s23  ;;  %2478 = vmatmul.msk.f32.gmra.mxu1 %vm257_vm1, %v5182_v22 }
 0x1e0   :  { %2617 = vmatpush.msrb.mxu1 %v3746_v0 }
 0x1e1   :  { %2529 = vmatpush.xpose.msk.msrb.mxu2 %vm257_vm1, %v3651_v34  ;;  %v3936_v55 = vpop.permute.xlu1 %1144 }
 0x1e2   :  { %2619 = vmatpush.msrb.mxu1 %v3755_v18  ;;  %2503 = vmatpush.xpose.msk.msrb.mxu3 %vm257_vm1, %v5183_v57 }
 0x1e4   :  { %2621 = vmatpush.msrb.mxu1 %v3766_v58 }
 0x1e5   :  { %2530 = vmatpush.xpose.msk.msrb.mxu2 %vm257_vm1, %v3711_v50  ;;  %v5186_v50 = vld [vmem:[#allocation19_spill] sm:$0xff]  ;;  %v3965_v5 = vpop.permute.xlu2 %1617 }
 0x1e6   :  { %2623 = vmatpush.msrb.mxu1 %v3774_v12  ;;  %2504 = vmatpush.xpose.msk.msrb.mxu3 %vm257_vm1, %v5184_v4  ;;  %v5192_v12 = vld [vmem:[#allocation10_spill] sm:$0xff] }
 0x1e7   :  { %v1179_v34 = vpop.permute.xlu0 %1178  ;;  %2479 = vmatmul.msk.f32.gmra.mxu1 %vm257_vm1, %v3298_v40  ;;  %v5187_v40 = vld [vmem:[#allocation25_spill] sm:$0xff] }
 0x1e8   :  { %2625 = vmatpush.msrb.mxu1 %v3785_v49  ;;  %v5193_v49 = vld [vmem:[#allocation30_spill] sm:$0xff] }
 0x1e9   :  { %2531 = vmatpush.xpose.msk.msrb.mxu2 %vm257_vm1, %v5185_v9  ;;  %v3954_v0 = vpop.permute.xlu1 %1613  ;;  %v5210_v9 = vld [vmem:[#allocation23_spill] sm:$0xff] }
 0x1ea   :  { %2627 = vmatpush.msrb.mxu1 %v3796_v38  ;;  %2505 = vmatpush.xpose.msk.msrb.mxu3 %vm257_vm1, %v5186_v50 }
 0x1ec   :  { %2629 = vmatpush.msrb.mxu1 %v3809_v21  ;;  %v5197_v21 = vld [vmem:[#allocation7_spill] sm:$0xff] }
 0x1ed   :  { %2532 = vmatpush.xpose.msk.msrb.mxu2 %vm257_vm1, %v3677_v32  ;;  %v5189_v32 = vld [vmem:[#allocation29_spill] sm:$0xff]  ;;  %v3992_v18 = vpop.permute.xlu2 %1154 }
 0x1ee   :  { %2631 = vmatpush.msrb.mxu1 %v3818_v24  ;;  %2506 = vmatpush.xpose.msk.msrb.mxu3 %vm257_vm1, %v5187_v40  ;;  %5191 = vst [vmem:[#allocation5_spill] sm:$0xff] %v3992_v18  ;;  %v5198_v24 = vld [vmem:[#allocation34_spill] sm:$0xff] }
 0x1ef   :  { %v3967_v13 = vpop.permute.xlu0 %1643  ;;  %2480 = vmatmul.msk.f32.gmra.mxu1 %vm257_vm1, %v5188_v56 }
 0x1f0   :  { %2633 = vmatpush.msrb.mxu1 %v3831_v52 }
 0x1f1   :  { %2533 = vmatpush.xpose.msk.msrb.mxu2 %vm257_vm1, %v3791_v26  ;;  %v3974_v58 = vpop.permute.xlu1 %1150 }
 0x1f2   :  { %2635 = vmatpush.msrb.mxu1 %v3844_v39  ;;  %2507 = vmatpush.xpose.msk.msrb.mxu3 %vm257_vm1, %v5189_v32  ;;  %v5200_v39 = vld [vmem:[#allocation38_spill] sm:$0xff] }
 0x1f4   :  { %2637 = vmatpush.msrb.mxu1 %v3853_v19 }
 0x1f5   :  { %2534 = vmatpush.xpose.msk.msrb.mxu2 %vm257_vm1, %v3667_v8 }
 0x1f6   :  { %2639 = vmatpush.msrb.mxu1 %v3866_v45  ;;  %2508 = vmatpush.xpose.msk.msrb.mxu3 %vm257_vm1, %v5190_v48  ;;  %v5202_v45 = vld [vmem:[#allocation20_spill] sm:$0xff]  ;;  %v5213_v48 = vld [vmem:[#allocation15_spill] sm:$0xff] }
 0x1f7   :  { %v3984_v33 = vpop.permute.xlu0 %1146  ;;  %2481 = vmatmul.msk.f32.gmra.mxu1 %vm257_vm1, %v3253_v27  ;;  %v5194_v27 = vld [vmem:[#allocation35_spill] sm:$0xff] }
 0x1f9   :  { %2535 = vmatpush.xpose.msk.msrb.mxu2 %vm257_vm1, %v3721_v51  ;;  %2509 = vmatmul.msk.f32.vlgmr.msrb.gmra.mxu3 %vm257_vm1, %v5192_v12  ;;  %v3996_v8 = vpop.permute.xlu1 %1619  ;;  %v5195_v51 = vld [vmem:[#allocation14_spill] sm:$0xff] }
 0x1fa   :  { %2557 = vmatpush.xpose.msk.msra.mxu3 %vm257_vm1, %v3802_v61  ;;  %v4013_v61 = vpop.permute.xlu2 %1623 }
 0x1fd   :  { %2536 = vmatpush.xpose.msk.msrb.mxu2 %vm257_vm1, %v1185_v14  ;;  %v5204_v14 = vld [vmem:[#allocation37_spill] sm:$0xff] }
 0x1fe   :  { %2558 = vmatpush.xpose.msk.msra.mxu3 %vm257_vm1, %v5193_v49 }
 0x1ff   :  { %v4001_v26 = vpop.permute.xlu0 %1615  ;;  %2482 = vmatmul.msk.f32.gmra.mxu1 %vm257_vm1, %v3286_v37 }
 0x201   :  { %2537 = vmatpush.xpose.msk.msrb.mxu2 %vm257_vm1, %v3780_v44  ;;  %2510 = vmatmul.msk.f32.gmra.mxu3 %vm257_vm1, %v5195_v51  ;;  %v4011_v38 = vpop.permute.xlu1 %1156  ;;  %v5199_v44 = vld [vmem:[#allocation13_spill] sm:$0xff]  ;;  %v5214_v51 = vld [vmem:[#allocation22_spill] sm:$0xff] }
 0x202   :  { %2559 = vmatpush.xpose.msk.msra.mxu3 %vm257_vm1, %v5194_v27  ;;  %5196 = vst [vmem:[#allocation31_spill] sm:$0xff] %v4011_v38 }
 0x205   :  { %2538 = vmatpush.xpose.msk.msrb.mxu2 %vm257_vm1, %v3888_v6 }
 0x206   :  { %2560 = vmatpush.xpose.msk.msra.mxu3 %vm257_vm1, %v3691_v46  ;;  %v4034_v46 = vpop.permute.xlu2 %1160 }
 0x207   :  { %v4019_v37 = vpop.permute.xlu0 %1152  ;;  %2483 = vmatmul.msk.f32.gmra.mxu1 %vm257_vm1, %v5197_v21  ;;  %5201 = vst [vmem:[#allocation17_spill] sm:$0xff] %v4034_v46 }
 0x209   :  { %2539 = vmatpush.xpose.msk.msrb.mxu2 %vm257_vm1, %v1179_v34  ;;  %2511 = vmatmul.msk.f32.gmra.mxu3 %vm257_vm1, %v5199_v44  ;;  %v4028_v52 = vpop.permute.xlu1 %1625 }
 0x20a   :  { %2561 = vmatpush.xpose.msk.msra.mxu3 %vm257_vm1, %v5198_v24 }
 0x20d   :  { %2540 = vmatpush.xpose.msk.msrb.mxu2 %vm257_vm1, %v3886_v30 }
 0x20e   :  { %2562 = vmatpush.xpose.msk.msra.mxu3 %vm257_vm1, %v5200_v39  ;;  %v4048_v20 = vpop.permute.xlu2 %1629  ;;  %v5215_v39 = vld [vmem:[#allocation27_spill] sm:$0xff] }
 0x20f   :  { %v4036_v19 = vpop.permute.xlu0 %1621  ;;  %2484 = vmatmul.msk.f32.gmra.mxu1 %vm257_vm1, %v3372_v59  ;;  %v5206_v59 = vld [vmem:[#allocation12_spill] sm:$0xff] }
 0x211   :  { %2512 = vmatmul.msk.f32.gmra.mxu3 %vm257_vm1, %v5202_v45  ;;  %v4044_v6 = vpop.permute.xlu1 %1162  ;;  %v5216_v45 = vld [vmem:[#allocation24_spill] sm:$0xff] }
 0x212   :  { %2563 = vmatpush.xpose.msk.msra.mxu3 %vm257_vm1, %v3750_v10  ;;  %5203 = vst [vmem:[#allocation6_spill] sm:$0xff] %v4044_v6 }
 0x216   :  { %2564 = vmatpush.xpose.msk.msra.mxu3 %vm257_vm1, %v5204_v14  ;;  %v4066_v31 = vpop.permute.xlu2 %1164 }
 0x217   :  { %v4050_v30 = vpop.permute.xlu0 %1158  ;;  %2485 = vmatmul.msk.f32.gmra.mxu1 %vm257_vm1, %v3323_v47  ;;  %5207 = vst [vmem:[#allocation9_spill] sm:$0xff] %v4066_v31  ;;  %v5208_v47 = vld [vmem:[#allocation11_spill] sm:$0xff] }
 0x218   :  { %5205 = vst [vmem:[#allocation16_spill] sm:$0xff] %v4050_v30 }
 0x219   :  { %2513 = vmatmul.msk.f32.gmra.mxu3 %vm257_vm1, %v5206_v59  ;;  %v2704_v10 = vpop.permute.xlu1 %2703  ;;  %v5217_v59 = vld [vmem:[#allocation21_spill] sm:$0xff] }
 0x21a   :  { %2565 = vmatpush.xpose.msk.msra.mxu3 %vm257_vm1, %v3697_v11  ;;  %v2705_v4 = vunpack.i.l.bf16 %v2704_v10  ;;  %v2706_v34 = vunpack.i.h.bf16 %v2704_v10 }
 0x21e   :  { %2566 = vmatpush.xpose.msk.msra.mxu3 %vm257_vm1, %v3839_v16  ;;  %v5209_v16 = vld [vmem:[#allocation18_spill] sm:$0xff]  ;;  %v2714_v57 = vpop.permute.xlu2 %2713 }
 0x21f   :  { %v4060_v23 = vpop.permute.xlu0 %1627  ;;  %2486 = vmatmul.msk.f32.gmra.mxu1 %vm257_vm1, %v3352_v54  ;;  %v2715_v50 = vunpack.i.l.bf16 %v2714_v57  ;;  %v2716_v56 = vunpack.i.h.bf16 %v2714_v57 }
 0x221   :  { %2514 = vmatmul.msk.f32.gmra.mxu3 %vm257_vm1, %v5208_v47  ;;  %v2709_v11 = vpop.permute.xlu1 %2708  ;;  %v193_v47 = vld [vmem:[#allocation2] sm:$0xff] }
 0x222   :  { %2567 = vmatpush.xpose.msk.msra.mxu3 %vm257_vm1, %v3683_v3 }
 0x226   :  { %2568 = vmatpush.xpose.msk.msra.mxu3 %vm257_vm1, %v3850_v43  ;;  %v2719_v40 = vpop.permute.xlu2 %2718 }
 0x227   :  { %v2699_v22 = vpop.permute.xlu0 %2698  ;;  %2487 = vmatmul.msk.f32.gmra.mxu1 %vm257_vm1, %v3396_v1  ;;  %v2721_v12 = vunpack.i.h.bf16 %v2719_v40 }
 0x228   :  { %v2700_v54 = vunpack.i.l.bf16 %v2699_v22  ;;  %v2701_v3 = vunpack.i.h.bf16 %v2699_v22 }
 0x229   :  { %2515 = vmatmul.msk.f32.gmra.mxu3 %vm257_vm1, %v5209_v16  ;;  %v4080_v43 = vpop.permute.xlu1 %1633  ;;  %v5219_v16 = vld [vmem:[#allocation32_spill] sm:$0xff] }
 0x22a   :  { %2569 = vmatpush.xpose.msk.msra.mxu3 %vm257_vm1, %v3927_v29  ;;  %1062 = vmatpush.msra.mxu0 %v2700_v54  ;;  %v2710_v29 = vunpack.i.l.bf16 %v2709_v11 }
 0x22c   :  { %1063 = vmatpush.msra.mxu0 %v2701_v3  ;;  %v195_v3 = vld [vmem:[#allocation2 + $0x10] sm:$0xff] }
 0x22e   :  { %2570 = vmatpush.xpose.msk.msra.mxu3 %vm257_vm1, %v3836_v62  ;;  %1064 = vmatpush.msra.mxu0 %v2705_v4  ;;  %v2711_v62 = vunpack.i.h.bf16 %v2709_v11 }
 0x22f   :  { %v4082_v1 = vpop.permute.xlu0 %1631  ;;  %2488 = vmatmul.msk.f32.gmra.mxu1 %vm257_vm1, %v3379_v60 }
 0x230   :  { %1065 = vmatpush.msra.mxu0 %v2706_v34  ;;  %v5220_v34 = vld [vmem:[#allocation33_spill] sm:$0xff] }
 0x231   :  { %2516 = vmatmul.msk.f32.gmra.mxu3 %vm257_vm1, %v5210_v9  ;;  %v4092_v32 = vpop.permute.xlu1 %1168 }
 0x232   :  { %2571 = vmatpush.xpose.msk.msra.mxu3 %vm257_vm1, %v3908_v7  ;;  %1066 = vmatpush.msra.mxu0 %v2710_v29  ;;  %5211 = vst [vmem:[#allocation36_spill] sm:$0xff] %v4092_v32  ;;  %v2720_v7 = vunpack.i.l.bf16 %v2719_v40 }
 0x234   :  { %1067 = vmatpush.msra.mxu0 %v2711_v62  ;;  %v661_v62 = vld [vmem:[#allocation2 + $0x80] sm:$0xff] }
 0x236   :  { %2572 = vmatpush.xpose.msk.msra.mxu3 %vm257_vm1, %v3967_v13  ;;  %1068 = vmatpush.msra.mxu0 %v2715_v50 }
 0x237   :  { %v4094_v60 = vpop.permute.xlu0 %1166  ;;  %2489 = vmatmul.msk.f32.gmra.mxu1 %vm257_vm1, %v3399_v2 }
 0x238   :  { %5212 = vst [vmem:[#allocation19_spill] sm:$0xff] %v4094_v60  ;;  %1069 = vmatpush.msra.mxu0 %v2716_v56 }
 0x239   :  { %2517 = vmatmul.msk.f32.gmra.mxu3 %vm257_vm1, %v5213_v48  ;;  %v2729_v27 = vpop.permute.xlu1 %2728  ;;  %v194_v48 = vld [vmem:[#allocation2 + $0x8] sm:$0xff] }
 0x23a   :  { %1070 = vmatpush.msra.mxu0 %v2720_v7  ;;  %v2730_v2 = vunpack.i.l.bf16 %v2729_v27  ;;  %v2731_v24 = vunpack.i.h.bf16 %v2729_v27  ;;  %v662_v7 = vld [vmem:[#allocation2 + $0x88] sm:$0xff]  ;;  %v196_v27 = vld [vmem:[#allocation2 + $0x18] sm:$0xff] }
 0x23c   :  { %1071 = vmatpush.msra.mxu0 %v2721_v12 }
 0x23f   :  { %v2724_v13 = vpop.permute.xlu0 %2723  ;;  %2490 = vmatmul.msk.f32.gmra.mxu1 %vm257_vm1, %v3441_v15 }
 0x240   :  { %v2725_v49 = vunpack.i.l.bf16 %v2724_v13  ;;  %v2726_v21 = vunpack.i.h.bf16 %v2724_v13 }
 0x241   :  { %2518 = vmatmul.msk.f32.gmra.mxu3 %vm257_vm1, %v5214_v51 }
 0x242   :  { %1072 = vmatpush.msra.mxu0 %v2725_v49  ;;  %v197_v49 = vld [vmem:[#allocation2 + $0x20] sm:$0xff] }
 0x244   :  { %1073 = vmatpush.msra.mxu0 %v2726_v21 }
 0x246   :  { %1074 = vmatpush.msra.mxu0 %v2730_v2 }
 0x247   :  { %v4104_v44 = vpop.permute.xlu0 %1635  ;;  %2491 = vmatmul.msk.f32.gmra.mxu1 %vm257_vm1, %v3448_v17  ;;  %v5218_v17 = vld [vmem:[#allocation28_spill] sm:$0xff] }
 0x248   :  { %1075 = vmatpush.msra.mxu0 %v2731_v24 }
 0x249   :  { %2519 = vmatmul.msk.f32.gmra.mxu3 %vm257_vm1, %v5215_v39 }
 0x24f   :  { %v2734_v15 = vpop.permute.xlu0 %2733  ;;  %2492 = vmatmul.msk.f32.gmra.mxu1 %vm257_vm1, %v5216_v45 }
 0x250   :  { %v2735_v14 = vunpack.i.l.bf16 %v2734_v15  ;;  %v2736_v10 = vunpack.i.h.bf16 %v2734_v15 }
 0x251   :  { %2520 = vmatmul.msk.f32.gmra.mxu3 %vm257_vm1, %v5217_v59  ;;  %v665_v59 = vld [vmem:[#allocation2 + $0xa0] sm:$0xff] }
 0x252   :  { %1076 = vmatpush.msra.mxu0 %v2735_v14 }
 0x254   :  { %v355_v11 = vpop.f32.mrf.mxu1  ;;  %1077 = vmatpush.msra.mxu0 %v2736_v10  ;;  %v198_v10 = vld [vmem:[#allocation2 + $0x28] sm:$0xff] }
 0x255   :  { %v4114_v22 = vadd.f32 %v355_v11, %v193_v47 }
 0x257   :  { %403 = vmax.xlane.f32.xlu1 %v4114_v22 }
 0x259   :  { %2521 = vmatmul.msk.f32.gmra.mxu3 %vm257_vm1, %v5218_v17 }
 0x25c   :  { %v358_v54 = vpop.f32.mrf.mxu1 }
 0x261   :  { %2522 = vmatmul.msk.f32.gmra.mxu3 %vm257_vm1, %v5219_v16  ;;  %v200_v16 = vld [vmem:[#allocation2 + $0x38] sm:$0xff] }
 0x264   :  { %v361_v57 = vpop.f32.mrf.mxu1 }
 0x265   :  { %v4121_v4 = vadd.f32 %v361_v57, %v195_v3 }
 0x267   :  { %407 = vmax.xlane.f32.xlu0 %v4121_v4 }
 0x269   :  { %2523 = vmatmul.msk.f32.gmra.mxu3 %vm257_vm1, %v5220_v34 }
 0x26c   :  { %v364_v29 = vpop.f32.mrf.mxu1 }
 0x26d   :  { %v4147_v24 = vadd.f32 %v364_v29, %v196_v27  ;;  %v199_v29 = vld [vmem:[#allocation2 + $0x30] sm:$0xff]  ;;  %v669_v27 = vld [vmem:[#allocation2 + $0xc0] sm:$0xff] }
 0x271   :  { %2524 = vmatmul.msk.f32.gmra.mxu3 %vm257_vm1, %v3878_v25  ;;  %v4137_v25 = vadd.f32 %v358_v54, %v194_v48  ;;  %v666_v54 = vld [vmem:[#allocation2 + $0xa8] sm:$0xff] }
 0x274   :  { %v367_v9 = vpop.f32.mrf.mxu1 }
 0x275   :  { %v4145_v2 = vadd.f32 %v367_v9, %v197_v49  ;;  %v667_v9 = vld [vmem:[#allocation2 + $0xb0] sm:$0xff] }
 0x276   :  { %v203_v49 = vld [vmem:[#allocation2 + $0x50] sm:$0xff] }
 0x279   :  { %2573 = vmatmul.msk.f32.vlgmr.msra.gmra.mxu3 %vm257_vm1, %v3913_v41  ;;  %v663_v41 = vld [vmem:[#allocation2 + $0x90] sm:$0xff] }
 0x27c   :  { %v822_v50 = vpop.f32.mrf.mxu3  ;;  %v370_v56 = vpop.f32.mrf.mxu1 }
 0x27d   :  { %v4130_v40 = vadd.f32 %v822_v50, %v661_v62  ;;  %v4161_v17 = vadd.f32 %v370_v56, %v198_v10  ;;  %v668_v56 = vld [vmem:[#allocation2 + $0xb8] sm:$0xff] }
 0x27f   :  { %870 = vmax.xlane.f32.xlu2 %v4130_v40 }
 0x281   :  { %2574 = vmatmul.msk.f32.gmra.mxu3 %vm257_vm1, %v3954_v0 }
 0x284   :  { %v825_v12 = vpop.f32.mrf.mxu3  ;;  %v373_v51 = vpop.f32.mrf.mxu1 }
 0x285   :  { %v4135_v13 = vadd.f32 %v825_v12, %v662_v7  ;;  %v4175_v50 = vadd.f32 %v373_v51, %v199_v29  ;;  %v201_v7 = vld [vmem:[#allocation2 + $0x40] sm:$0xff] }
 0x287   :  { %872 = vmax.xlane.f32.xlu1 %v4135_v13  ;;  %405 = vmax.xlane.f32.xlu2 %v4137_v25 }
 0x289   :  { %2575 = vmatmul.msk.f32.gmra.mxu3 %vm257_vm1, %v4001_v26  ;;  %v664_v26 = vld [vmem:[#allocation2 + $0x98] sm:$0xff] }
 0x28c   :  { %v828_v0 = vpop.f32.mrf.mxu3  ;;  %v376_v14 = vpop.f32.mrf.mxu1 }
 0x28d   :  { %v4143_v21 = vadd.f32 %v828_v0, %v663_v41 }
 0x28f   :  { %874 = vmax.xlane.f32.xlu0 %v4143_v21  ;;  %411 = vmax.xlane.f32.xlu1 %v4145_v2 }
 0x290   :  { %409 = vmax.xlane.f32.xlu2 %v4147_v24 }
 0x291   :  { %2576 = vmatmul.msk.f32.gmra.mxu3 %vm257_vm1, %v3965_v5 }
 0x294   :  { %v831_v39 = vpop.f32.mrf.mxu3  ;;  %v379_v5 = vpop.f32.mrf.mxu1 }
 0x295   :  { %v4154_v15 = vadd.f32 %v831_v39, %v664_v26  ;;  %v4185_v41 = vadd.f32 %v379_v5, %v201_v7  ;;  %v4197_v39 = vpop.permute.xlu1 %1170 }
 0x296   :  { %5221 = vst [vmem:[#allocation25_spill] sm:$0xff] %v4197_v39 }
 0x298   :  { %876 = vmax.xlane.f32.xlu2 %v4154_v15 }
 0x299   :  { %2577 = vmatmul.msk.f32.gmra.mxu3 %vm257_vm1, %v3996_v8  ;;  %v4169_v8 = vadd.f32 %v376_v14, %v200_v16  ;;  %v670_v14 = vld [vmem:[#allocation2 + $0xc8] sm:$0xff]  ;;  %v671_v16 = vld [vmem:[#allocation2 + $0xd0] sm:$0xff] }
 0x29c   :  { %v834_v47 = vpop.f32.mrf.mxu3  ;;  %v382_v34 = vpop.f32.mrf.mxu1 }
 0x29d   :  { %v4159_v11 = vadd.f32 %v834_v47, %v665_v59  ;;  %v202_v59 = vld [vmem:[#allocation2 + $0x48] sm:$0xff] }
 0x29e   :  { %v4203_v47 = vadd.f32 %v382_v34, %v202_v59  ;;  %v206_v34 = vld [vmem:[#allocation2 + $0x68] sm:$0xff] }
 0x29f   :  { %878 = vmax.xlane.f32.xlu1 %v4159_v11 }
 0x2a0   :  { %413 = vmax.xlane.f32.xlu2 %v4161_v17 }
 0x2a1   :  { %2578 = vmatmul.msk.f32.gmra.mxu3 %vm257_vm1, %v4036_v19 }
 0x2a4   :  { %v837_v3 = vpop.f32.mrf.mxu3  ;;  %v385_v48 = vpop.f32.mrf.mxu1 }
 0x2a5   :  { %v4167_v57 = vadd.f32 %v837_v3, %v666_v54  ;;  %v4191_v0 = vadd.f32 %v385_v48, %v203_v49  ;;  %v204_v54 = vld [vmem:[#allocation2 + $0x58] sm:$0xff]  ;;  %v1638_v3 = vpop.permute.xlu1 %1637  ;;  %v205_v49 = vld [vmem:[#allocation2 + $0x60] sm:$0xff] }
 0x2a7   :  { %880 = vmax.xlane.f32.xlu0 %v4167_v57  ;;  %417 = vmax.xlane.f32.xlu1 %v4169_v8 }
 0x2a9   :  { %2579 = vmatmul.msk.f32.gmra.mxu3 %vm257_vm1, %v4013_v61 }
 0x2ac   :  { %v840_v62 = vpop.f32.mrf.mxu3  ;;  %v388_v26 = vpop.f32.mrf.mxu1 }
 0x2ad   :  { %v4177_v19 = vadd.f32 %v840_v62, %v667_v9 }
 0x2af   :  { %415 = vmax.xlane.f32.xlu0 %v4175_v50  ;;  %882 = vmax.xlane.f32.xlu2 %v4177_v19 }
 0x2b1   :  { %2580 = vmatmul.msk.f32.gmra.mxu3 %vm257_vm1, %v4028_v52 }
 0x2b4   :  { %v843_v12 = vpop.f32.mrf.mxu3  ;;  %v391_v5 = vpop.f32.mrf.mxu1 }
 0x2b5   :  { %v4183_v61 = vadd.f32 %v843_v12, %v668_v56  ;;  %v672_v56 = vld [vmem:[#allocation2 + $0xd8] sm:$0xff] }
 0x2b7   :  { %884 = vmax.xlane.f32.xlu1 %v4183_v61  ;;  %419 = vmax.xlane.f32.xlu2 %v4185_v41 }
 0x2b9   :  { %2581 = vmatmul.msk.f32.gmra.mxu3 %vm257_vm1, %v4060_v23 }
 0x2bc   :  { %v846_v51 = vpop.f32.mrf.mxu3  ;;  %v394_v62 = vpop.f32.mrf.mxu1 }
 0x2bd   :  { %v4193_v52 = vadd.f32 %v846_v51, %v669_v27  ;;  %v4219_v48 = vadd.f32 %v394_v62, %v206_v34  ;;  %v673_v27 = vld [vmem:[#allocation2 + $0xe0] sm:$0xff]  ;;  %v4227_v51 = vadd.f32 %v391_v5, %v205_v49  ;;  %v1640_v62 = vpop.permute.xlu2 %1639  ;;  %v208_v49 = vld [vmem:[#allocation2 + $0x78] sm:$0xff] }
 0x2bf   :  { %886 = vmax.xlane.f32.xlu0 %v4193_v52  ;;  %423 = vmax.xlane.f32.xlu1 %v4191_v0 }
 0x2c1   :  { %2582 = vmatmul.msk.f32.gmra.mxu3 %vm257_vm1, %v4048_v20  ;;  %v4209_v20 = vadd.f32 %v388_v26, %v204_v54 }
 0x2c4   :  { %v849_v23 = vpop.f32.mrf.mxu3  ;;  %v397_v54 = vpop.f32.mrf.mxu1 }
 0x2c5   :  { %v4201_v10 = vadd.f32 %v849_v23, %v670_v14  ;;  %v207_v23 = vld [vmem:[#allocation2 + $0x70] sm:$0xff] }
 0x2c6   :  { %v4235_v34 = vadd.f32 %v397_v54, %v207_v23 }
 0x2c7   :  { %421 = vmax.xlane.f32.xlu0 %v4203_v47  ;;  %888 = vmax.xlane.f32.xlu2 %v4201_v10 }
 0x2c9   :  { %2583 = vmatmul.msk.f32.gmra.mxu3 %vm257_vm1, %v4082_v1  ;;  %v4217_v1 = vpop.permute.xlu1 %1172 }
 0x2ca   :  { %5222 = vst [vmem:[#allocation8_spill] sm:$0xff] %v4217_v1 }
 0x2cc   :  { %v852_v29 = vpop.f32.mrf.mxu3 }
 0x2cd   :  { %v4211_v9 = vadd.f32 %v852_v29, %v671_v16  ;;  %v674_v16 = vld [vmem:[#allocation2 + $0xe8] sm:$0xff] }
 0x2cf   :  { %890 = vmax.xlane.f32.xlu1 %v4211_v9  ;;  %425 = vmax.xlane.f32.xlu2 %v4209_v20 }
 0x2d1   :  { %2584 = vmatmul.msk.f32.gmra.mxu3 %vm257_vm1, %v4080_v43  ;;  %v404_v26 = vpop.xlane.xlu1 %403 }
 0x2d2   :  { %v435_v59 = vsub.f32 %v4114_v22, %v404_v26  ;;  %v675_v22 = vld [vmem:[#allocation2 + $0xf0] sm:$0xff] }
 0x2d4   :  { %v855_v7 = vpop.f32.mrf.mxu3 }
 0x2d5   :  { %v4221_v12 = vadd.f32 %v855_v7, %v672_v56 }
 0x2d7   :  { %892 = vmax.xlane.f32.xlu0 %v4221_v12  ;;  %429 = vmax.xlane.f32.xlu1 %v4219_v48 }
 0x2d9   :  { %2585 = vmatmul.msk.f32.gmra.mxu3 %vm257_vm1, %v4104_v44  ;;  %v451_v44 = vmul.f32 1.442695, %v435_v59 }
 0x2da   :  { %v408_v54 = vpop.xlane.xlu0 %407 }
 0x2db   :  { %2819 = vpow2.f32 %v451_v44 }
 0x2dc   :  { %v858_v43 = vpop.f32.mrf.mxu3 }
 0x2dd   :  { %v4229_v14 = vadd.f32 %v858_v43, %v673_v27  ;;  %v400_v27 = vpop.f32.mrf.mxu1 }
 0x2de   :  { %v4249_v59 = vadd.f32 %v400_v27, %v208_v49 }
 0x2df   :  { %427 = vmax.xlane.f32.xlu0 %v4227_v51  ;;  %894 = vmax.xlane.f32.xlu2 %v4229_v14 }
 0x2e1   :  { %2586 = vmatmul.msk.f32.gmra.mxu3 %vm257_vm1, %v1638_v3  ;;  %v4244_v7 = vpop.eup %2819 }
 0x2e4   :  { %v861_v29 = vpop.f32.mrf.mxu3 }
 0x2e5   :  { %v4237_v5 = vadd.f32 %v861_v29, %v674_v16 }
 0x2e7   :  { %896 = vmax.xlane.f32.xlu1 %v4237_v5  ;;  %431 = vmax.xlane.f32.xlu2 %v4235_v34 }
 0x2e9   :  { %2587 = vmatmul.msk.f32.gmra.mxu3 %vm257_vm1, %v1640_v62 }
 0x2ec   :  { %v864_v56 = vpop.f32.mrf.mxu3 }
 0x2ed   :  { %v4242_v3 = vadd.f32 %v864_v56, %v675_v22 }
 0x2ef   :  { %898 = vmax.xlane.f32.xlu0 %v4242_v3  ;;  %483 = vadd.xlane.f32.xlu1 %v4244_v7 }
 0x2f2   :  { %v871_v43 = vpop.xlane.xlu2 %870 }
 0x2f3   :  { %v902_v26 = vsub.f32 %v4130_v40, %v871_v43  ;;  %v437_v40 = vsub.f32 %v4121_v4, %v408_v54 }
 0x2f5   :  { %v918_v23 = vmul.f32 1.442695, %v902_v26 }
 0x2f7   :  { %2821 = vpow2.f32 %v918_v23  ;;  %433 = vmax.xlane.f32.xlu0 %v4249_v59 }
 0x2fa   :  { %v406_v16 = vpop.xlane.xlu2 %405  ;;  %v873_v44 = vpop.xlane.xlu1 %872 }
 0x2fb   :  { %v436_v29 = vsub.f32 %v4137_v25, %v406_v16  ;;  %v903_v62 = vsub.f32 %v4135_v13, %v873_v44  ;;  %v455_v25 = vmul.f32 1.442695, %v437_v40 }
 0x2fd   :  { %v4254_v22 = vpop.eup %2821  ;;  %v453_v56 = vmul.f32 1.442695, %v436_v29  ;;  %v920_v1 = vmul.f32 1.442695, %v903_v62 }
 0x2fe   :  { %950 = vadd.xlane.f32.xlu2 %v4254_v22 }
 0x2ff   :  { %2823 = vpow2.f32 %v453_v56 }
 0x300   :  { %2825 = vpow2.f32 %v920_v1 }
 0x302   :  { %v875_v49 = vpop.xlane.xlu0 %874  ;;  %v412_v27 = vpop.xlane.xlu1 %411 }
 0x303   :  { %v904_v43 = vsub.f32 %v4143_v21, %v875_v49  ;;  %v410_v26 = vpop.xlane.xlu2 %409  ;;  %v439_v23 = vsub.f32 %v4145_v2, %v412_v27 }
 0x304   :  { %v438_v4 = vsub.f32 %v4147_v24, %v410_v26 }
 0x305   :  { %v4260_v16 = vpop.eup %2823  ;;  %v922_v13 = vmul.f32 1.442695, %v904_v43  ;;  %v459_v44 = vmul.f32 1.442695, %v439_v23 }
 0x306   :  { %v4262_v29 = vpop.eup %2825  ;;  %485 = vadd.xlane.f32.xlu2 %v4260_v16  ;;  %v457_v21 = vmul.f32 1.442695, %v438_v4 }
 0x307   :  { %2827 = vpow2.f32 %v922_v13  ;;  %952 = vadd.xlane.f32.xlu0 %v4262_v29 }
 0x308   :  { %2829 = vpow2.f32 %v455_v25 }
 0x309   :  { %2831 = vpow2.f32 %v459_v44 }
 0x30a   :  { %2833 = vpow2.f32 %v457_v21 }
 0x30b   :  { %v877_v1 = vpop.xlane.xlu2 %876 }
 0x30d   :  { %v4267_v54 = vpop.eup %2827 }
 0x30e   :  { %v4269_v2 = vpop.eup %2829  ;;  %954 = vadd.xlane.f32.xlu1 %v4267_v54 }
 0x30f   :  { %v4272_v62 = vpop.eup %2831  ;;  %487 = vadd.xlane.f32.xlu0 %v4269_v2 }
 0x310   :  { %491 = vadd.xlane.f32.xlu2 %v4272_v62  ;;  %v4279_v49 = vpop.eup %2833 }
 0x312   :  { %v4276_v24 = vpop.xlane.xlu1 %878 }
 0x313   :  { %v414_v56 = vpop.xlane.xlu2 %413 }
 0x314   :  { %v440_v40 = vsub.f32 %v4161_v17, %v414_v56 }
 0x316   :  { %v461_v27 = vmul.f32 1.442695, %v440_v40  ;;  %489 = vadd.xlane.f32.xlu1 %v4279_v49 }
 0x318   :  { %2835 = vpow2.f32 %v461_v27 }
 0x31a   :  { %v4282_v43 = vpop.xlane.xlu0 %880  ;;  %v418_v26 = vpop.xlane.xlu1 %417 }
 0x31b   :  { %v442_v23 = vsub.f32 %v4169_v8, %v418_v26 }
 0x31d   :  { %v465_v25 = vmul.f32 1.442695, %v442_v23 }
 0x31e   :  { %v4285_v13 = vpop.eup %2835 }
 0x31f   :  { %493 = vadd.xlane.f32.xlu0 %v4285_v13  ;;  %2837 = vpow2.f32 %v465_v25 }
 0x322   :  { %v416_v44 = vpop.xlane.xlu0 %415  ;;  %v883_v4 = vpop.xlane.xlu2 %882 }
 0x323   :  { %v441_v17 = vsub.f32 %v4175_v50, %v416_v44 }
 0x325   :  { %v463_v21 = vmul.f32 1.442695, %v441_v17  ;;  %v4289_v56 = vpop.eup %2837 }
 0x326   :  { %497 = vadd.xlane.f32.xlu2 %v4289_v56 }
 0x327   :  { %2839 = vpow2.f32 %v463_v21  ;;  %v905_v21 = vsub.f32 %v4154_v15, %v877_v1 }
 0x32a   :  { %v420_v40 = vpop.xlane.xlu2 %419  ;;  %v885_v27 = vpop.xlane.xlu1 %884 }
 0x32b   :  { %v443_v8 = vsub.f32 %v4185_v41, %v420_v40 }
 0x32d   :  { %v4293_v26 = vpop.eup %2839  ;;  %v467_v23 = vmul.f32 1.442695, %v443_v8  ;;  %v924_v8 = vmul.f32 1.442695, %v905_v21 }
 0x32e   :  { %495 = vadd.xlane.f32.xlu1 %v4293_v26 }
 0x32f   :  { %2841 = vpow2.f32 %v467_v23 }
 0x332   :  { %v4296_v25 = vpop.xlane.xlu0 %886  ;;  %v424_v39 = vpop.xlane.xlu1 %423 }
 0x333   :  { %v445_v50 = vsub.f32 %v4191_v0, %v424_v39 }
 0x335   :  { %v4299_v44 = vpop.eup %2841  ;;  %v471_v17 = vmul.f32 1.442695, %v445_v50 }
 0x336   :  { %499 = vadd.xlane.f32.xlu0 %v4299_v44 }
 0x337   :  { %2843 = vpow2.f32 %v471_v17  ;;  %v908_v17 = vsub.f32 %v4177_v19, %v883_v4  ;;  %v867_v4 = vpop.f32.mrf.mxu3 }
 0x33a   :  { %v422_v41 = vpop.xlane.xlu0 %421 }
 0x33b   :  { %v444_v40 = vsub.f32 %v4203_v47, %v422_v41 }
 0x33d   :  { %v469_v32 = vmul.f32 1.442695, %v444_v40  ;;  %v4304_v60 = vpop.eup %2843  ;;  %v930_v40 = vmul.f32 1.442695, %v908_v17 }
 0x33e   :  { %503 = vadd.xlane.f32.xlu2 %v4304_v60 }
 0x33f   :  { %2845 = vpow2.f32 %v469_v32  ;;  %v4316_v32 = vpop.xlane.xlu2 %888  ;;  %v4339_v30 = vpop.f32.mrf.mxu3 }
 0x340   :  { %2847 = vpow2.f32 %v924_v8 }
 0x342   :  { %v891_v0 = vpop.xlane.xlu1 %890 }
 0x345   :  { %v4307_v39 = vpop.eup %2845 }
 0x346   :  { %v4309_v23 = vpop.eup %2847  ;;  %501 = vadd.xlane.f32.xlu1 %v4307_v39 }
 0x347   :  { %956 = vadd.xlane.f32.xlu2 %v4309_v23  ;;  %v426_v6 = vpop.xlane.xlu2 %425 }
 0x348   :  { %v446_v17 = vsub.f32 %v4209_v20, %v426_v6  ;;  %v906_v6 = vsub.f32 %v4159_v11, %v4276_v24 }
 0x34a   :  { %v893_v15 = vpop.xlane.xlu0 %892  ;;  %1174 = vrot.lane.b32.xlu0 %v5216_v45, %s3110_s23  ;;  %v430_v47 = vpop.xlane.xlu1 %429 }
 0x34b   :  { %v448_v1 = vsub.f32 %v4219_v48, %v430_v47  ;;  %v909_v48 = vsub.f32 %v4183_v61, %v885_v27  ;;  %v912_v61 = vsub.f32 %v4211_v9, %v891_v0  ;;  %v913_v20 = vsub.f32 %v4221_v12, %v893_v15 }
 0x34c   :  { %v926_v9 = vmul.f32 1.442695, %v906_v6 }
 0x34d   :  { %v477_v50 = vmul.f32 1.442695, %v448_v1  ;;  %v932_v1 = vmul.f32 1.442695, %v909_v48  ;;  %v676_v48 = vld [vmem:[#allocation2 + $0xf8] sm:$0xff] }
 0x34e   :  { %v938_v38 = vmul.f32 1.442695, %v912_v61 }
 0x34f   :  { %2849 = vpow2.f32 %v477_v50 }
 0x352   :  { %v428_v21 = vpop.xlane.xlu0 %427 }
 0x353   :  { %v447_v41 = vsub.f32 %v4227_v51, %v428_v21  ;;  %v895_v51 = vpop.xlane.xlu2 %894 }
 0x355   :  { %v475_v8 = vmul.f32 1.442695, %v447_v41  ;;  %v4320_v31 = vpop.eup %2849 }
 0x356   :  { %509 = vadd.xlane.f32.xlu2 %v4320_v31 }
 0x357   :  { %2851 = vpow2.f32 %v475_v8 }
 0x358   :  { %2853 = vpow2.f32 %v930_v40  ;;  %v473_v40 = vmul.f32 1.442695, %v446_v17 }
 0x359   :  { %2855 = vpow2.f32 %v932_v1 }
 0x35a   :  { %v4324_v47 = vpop.xlane.xlu1 %896 }
 0x35b   :  { %v432_v8 = vpop.xlane.xlu2 %431 }
 0x35c   :  { %v449_v11 = vsub.f32 %v4235_v34, %v432_v8  ;;  %v910_v34 = vsub.f32 %v4193_v52, %v4296_v25  ;;  %v911_v25 = vsub.f32 %v4201_v10, %v4316_v32 }
 0x35d   :  { %v4326_v46 = vpop.eup %2851 }
 0x35e   :  { %v4328_v19 = vpop.eup %2853  ;;  %507 = vadd.xlane.f32.xlu1 %v4326_v46  ;;  %v479_v12 = vmul.f32 1.442695, %v449_v11 }
 0x35f   :  { %962 = vadd.xlane.f32.xlu2 %v4328_v19  ;;  %v4333_v21 = vpop.eup %2855 }
 0x362   :  { %v484_v50 = vpop.xlane.xlu1 %483  ;;  %v4337_v27 = vpop.xlane.xlu0 %898 }
 0x363   :  { %2857 = vrcp.f32 %v484_v50  ;;  %v4342_v50 = vadd.f32 %v867_v4, %v676_v48  ;;  %v940_v4 = vmul.f32 1.442695, %v913_v20  ;;  %v934_v48 = vmul.f32 1.442695, %v910_v34  ;;  %v1599_v34 = vld [vmem:[#allocation2 + $0x1a0] sm:$0xff] }
 0x364   :  { %2859 = vpow2.f32 %v473_v40 }
 0x365   :  { %2861 = vpow2.f32 %v938_v38  ;;  %v914_v38 = vsub.f32 %v4229_v14, %v895_v51  ;;  %v915_v51 = vsub.f32 %v4237_v5, %v4324_v47  ;;  %v936_v47 = vmul.f32 1.442695, %v911_v25  ;;  %v1595_v25 = vld [vmem:[#allocation2 + $0x180] sm:$0xff] }
 0x366   :  { %2863 = vpow2.f32 %v926_v9 }
 0x367   :  { %964 = vadd.xlane.f32.xlu2 %v4333_v21  ;;  %2865 = vpow2.f32 %v940_v4  ;;  %v942_v40 = vmul.f32 1.442695, %v914_v38  ;;  %v944_v52 = vmul.f32 1.442695, %v915_v51 }
 0x369   :  { %v2858_v41 = vpop.eup %2857 }
 0x36a   :  { %v531_v1 = vmul.f32 %v2858_v41, %v4244_v7  ;;  %v4350_v17 = vpop.xlane.xlu0 %433  ;;  %v4352_v18 = vpop.eup %2859 }
 0x36b   :  { %v4354_v7 = vpop.f32.mrf.mxu3  ;;  %v4358_v24 = vpop.eup %2861 }
 0x36c   :  { %611 = vmatmul.f32.vlgmr.msrb.gmra.mxu0 %v531_v1  ;;  %v4366_v41 = vpop.eup %2863 }
 0x36d   :  { %v4371_v8 = vpop.eup %2865 }
 0x36f   :  { %900 = vmax.xlane.f32.xlu2 %v4342_v50 }
 0x371   :  { %v4348_v0 = vpop.xlane.xlu2 %950 }
 0x374   :  { %505 = vadd.xlane.f32.xlu0 %v4352_v18 }
 0x377   :  { %970 = vadd.xlane.f32.xlu2 %v4358_v24  ;;  %1641 = vrot.lane.b32.xlu1 %v5216_v45, %s3111_s24  ;;  %v4373_v45 = vpop.f32.mrf.mxu3 }
 0x379   :  { %v486_v15 = vpop.xlane.xlu2 %485 }
 0x37a   :  { %2867 = vrcp.f32 %v486_v15  ;;  %v4364_v61 = vpop.xlane.xlu0 %952 }
 0x37b   :  { %2869 = vpow2.f32 %v479_v12 }
 0x37c   :  { %958 = vadd.xlane.f32.xlu0 %v4366_v41  ;;  %2871 = vpow2.f32 %v942_v40 }
 0x37f   :  { %972 = vadd.xlane.f32.xlu2 %v4371_v8  ;;  %v4389_v5 = vpop.f32.mrf.mxu3 }
 0x380   :  { %v2868_v14 = vpop.eup %2867 }
 0x381   :  { %v4378_v1 = vpop.xlane.xlu1 %954  ;;  %v532_v6 = vmul.f32 %v2868_v14, %v4260_v16  ;;  %v4381_v9 = vpop.eup %2869 }
 0x382   :  { %v488_v20 = vpop.xlane.xlu0 %487  ;;  %v4386_v4 = vpop.eup %2871 }
 0x383   :  { %2873 = vrcp.f32 %v488_v20  ;;  %614 = vmatmul.f32.gmra.mxu0 %v532_v6  ;;  %v492_v32 = vpop.xlane.xlu2 %491 }
 0x384   :  { %511 = vadd.xlane.f32.xlu0 %v4381_v9  ;;  %2875 = vpow2.f32 %v934_v48 }
 0x385   :  { %2877 = vpow2.f32 %v944_v52 }
 0x387   :  { %974 = vadd.xlane.f32.xlu2 %v4386_v4  ;;  %v1768_v14 = vpop.f32.mrf.mxu3 }
 0x388   :  { %v4404_v48 = vadd.f32 %v1768_v14, %v1599_v34 }
 0x389   :  { %v2874_v16 = vpop.eup %2873  ;;  %v490_v11 = vpop.xlane.xlu1 %489 }
 0x38a   :  { %2879 = vrcp.f32 %v490_v11  ;;  %v533_v38 = vmul.f32 %v2874_v16, %v4269_v2  ;;  %v4392_v12 = vpop.eup %2875  ;;  %v450_v2 = vsub.f32 %v4249_v59, %v4350_v17  ;;  %v4410_v16 = vadd.f32 %v4339_v30, %v1595_v25  ;;  %v1596_v11 = vld [vmem:[#allocation2 + $0x188] sm:$0xff] }
 0x38b   :  { %2881 = vpow2.f32 %v936_v47  ;;  %v4395_v10 = vpop.eup %2877  ;;  %v4419_v30 = vadd.f32 %v4354_v7, %v1596_v11 }
 0x38c   :  { %617 = vmatmul.f32.gmra.mxu0 %v533_v38  ;;  %966 = vadd.xlane.f32.xlu0 %v4392_v12  ;;  %2883 = vrcp.f32 %v492_v32  ;;  %v481_v6 = vmul.f32 1.442695, %v450_v2 }
 0x38f   :  { %976 = vadd.xlane.f32.xlu2 %v4395_v10 }
 0x390   :  { %v2880_v15 = vpop.eup %2879 }
 0x391   :  { %v534_v40 = vmul.f32 %v2880_v15, %v4279_v49  ;;  %v4401_v51 = vpop.eup %2881  ;;  %v907_v49 = vsub.f32 %v4167_v57, %v4282_v43 }
 0x392   :  { %v494_v20 = vpop.xlane.xlu0 %493  ;;  %v2884_v52 = vpop.eup %2883 }
 0x393   :  { %2885 = vrcp.f32 %v494_v20  ;;  %v535_v59 = vmul.f32 %v2884_v52, %v4272_v62  ;;  %v928_v17 = vmul.f32 1.442695, %v907_v49  ;;  %v1598_v20 = vld [vmem:[#allocation2 + $0x198] sm:$0xff] }
 0x394   :  { %620 = vmatmul.f32.gmra.mxu0 %v534_v40  ;;  %968 = vadd.xlane.f32.xlu0 %v4401_v51  ;;  %2887 = vpow2.f32 %v481_v6  ;;  %v1597_v40 = vld [vmem:[#allocation2 + $0x190] sm:$0xff] }
 0x395   :  { %2889 = vpow2.f32 %v928_v17  ;;  %v4429_v14 = vadd.f32 %v4373_v45, %v1597_v40 }
 0x396   :  { %2891 = vrcp.f32 %v4348_v0 }
 0x397   :  { %1812 = vmax.xlane.f32.xlu2 %v4404_v48 }
 0x399   :  { %v2886_v47 = vpop.eup %2885  ;;  %v498_v43 = vpop.xlane.xlu2 %497 }
 0x39a   :  { %v4414_v38 = vpop.eup %2887  ;;  %v536_v62 = vmul.f32 %v2886_v47, %v4285_v13  ;;  %v5224_v47 = vld [vmem:[#allocation41_spill] sm:$0xff] }
 0x39b   :  { %v4423_v32 = vpop.eup %2889 }
 0x39c   :  { %623 = vmatmul.f32.gmra.mxu0 %v535_v59  ;;  %1804 = vmax.xlane.f32.xlu0 %v4410_v16  ;;  %v2892_v15 = vpop.eup %2891 }
 0x39d   :  { %v998_v13 = vmul.f32 %v2892_v15, %v4254_v22  ;;  %v4439_v22 = vadd.f32 %v4389_v5, %v1598_v20 }
 0x3a1   :  { %513 = vadd.xlane.f32.xlu1 %v4414_v38  ;;  %v496_v57 = vpop.xlane.xlu1 %495 }
 0x3a2   :  { %2893 = vrcp.f32 %v496_v57 }
 0x3a3   :  { %2895 = vrcp.f32 %v498_v43  ;;  %v1601_v43 = vld [vmem:[#allocation2 + $0x1b0] sm:$0xff] }
 0x3a4   :  { %626 = vmatmul.f32.gmra.mxu0 %v536_v62  ;;  %1806 = vmax.xlane.f32.xlu0 %v4419_v30  ;;  %2897 = vrcp.f32 %v4364_v61  ;;  %v5223_v61 = vld [vmem:[#allocation39_spill] sm:$0xff]  ;;  %v1771_v62 = vpop.f32.mrf.mxu3 }
 0x3a8   :  { %v2894_v34 = vpop.eup %2893 }
 0x3a9   :  { %960 = vadd.xlane.f32.xlu1 %v4423_v32  ;;  %v500_v0 = vpop.xlane.xlu0 %499  ;;  %v537_v7 = vmul.f32 %v2894_v34, %v4293_v26  ;;  %v2896_v2 = vpop.eup %2895 }
 0x3aa   :  { %2899 = vrcp.f32 %v500_v0  ;;  %v2898_v6 = vpop.eup %2897  ;;  %v538_v26 = vmul.f32 %v2896_v2, %v4289_v56 }
 0x3ab   :  { %629 = vmatmul.f32.vlgmr.msrb.gmra.mxu1 %v537_v7  ;;  %2901 = vrcp.f32 %v4378_v1  ;;  %v999_v49 = vmul.f32 %v2898_v6, %v4262_v29 }
 0x3ac   :  { %1078 = vmatmul.f32.vlgmr.msra.gmra.mxu0 %v998_v13  ;;  %1808 = vmax.xlane.f32.xlu0 %v4429_v14  ;;  %v1774_v15 = vpop.f32.mrf.mxu3 }
 0x3ad   :  { %v4459_v34 = vadd.f32 %v1774_v15, %v1601_v43 }
 0x3af   :  { %2748 = vrot.lane.b32.xlu2 %v5223_v61, %s3113_s26 }
 0x3b0   :  { %v2900_v52 = vpop.eup %2899 }
 0x3b1   :  { %v539_v45 = vmul.f32 %v2900_v52, %v4299_v44  ;;  %v504_v25 = vpop.xlane.xlu2 %503  ;;  %v2902_v59 = vpop.eup %2901 }
 0x3b2   :  { %v1000_v44 = vmul.f32 %v2902_v59, %v4267_v54 }
 0x3b3   :  { %632 = vmatmul.f32.gmra.mxu1 %v538_v26  ;;  %635 = vmatmul.f32.vlgmr.msra.gmra.mxu2 %v539_v45 }
 0x3b4   :  { %1081 = vmatmul.f32.gmra.mxu0 %v999_v49  ;;  %1810 = vmax.xlane.f32.xlu0 %v4439_v22 }
 0x3b7   :  { %2773 = vrot.lane.b32.xlu2 %v3763_v36, %s3114_s28 }
 0x3b9   :  { %v502_v1 = vpop.xlane.xlu1 %501 }
 0x3ba   :  { %v957_v56 = vpop.xlane.xlu2 %956  ;;  %2903 = vrcp.f32 %v502_v1 }
 0x3bb   :  { %2905 = vrcp.f32 %v957_v56 }
 0x3bc   :  { %1084 = vmatmul.f32.gmra.mxu0 %v1000_v44  ;;  %2907 = vrcp.f32 %v504_v25  ;;  %v4461_v0 = vpop.permute.xlu0 %1174 }
 0x3c0   :  { %v2904_v5 = vpop.eup %2903 }
 0x3c1   :  { %v2906_v29 = vpop.eup %2905  ;;  %v540_v17 = vmul.f32 %v2904_v5, %v4307_v39  ;;  %v5225_v39 = vld [vmem:[#allocation40_spill] sm:$0xff] }
 0x3c2   :  { %2738 = vrot.lane.b32.xlu1 %v5224_v47, %s3113_s26  ;;  %v1001_v11 = vmul.f32 %v2906_v29, %v4309_v23  ;;  %v2908_v57 = vpop.eup %2907  ;;  %v916_v23 = vsub.f32 %v4242_v3, %v4337_v27 }
 0x3c3   :  { %638 = vmatmul.f32.gmra.mxu2 %v540_v17  ;;  %v541_v54 = vmul.f32 %v2908_v57, %v4304_v60 }
 0x3c4   :  { %1087 = vmatmul.f32.gmra.mxu0 %v1001_v11  ;;  %v946_v60 = vmul.f32 1.442695, %v916_v23 }
 0x3c6   :  { %2909 = vpow2.f32 %v946_v60 }
 0x3c8   :  { %2743 = vrot.lane.b32.xlu0 %v5224_v47, %s3114_s28  ;;  %v1600_v47 = vld [vmem:[#allocation2 + $0x1a8] sm:$0xff] }
 0x3c9   :  { %v510_v40 = vpop.xlane.xlu2 %509  ;;  %v4480_v57 = vadd.f32 %v1771_v62, %v1600_v47 }
 0x3cb   :  { %641 = vmatmul.f32.gmra.mxu2 %v541_v54 }
 0x3cc   :  { %v4467_v20 = vpop.eup %2909 }
 0x3d0   :  { %2753 = vrot.lane.b32.xlu0 %v5223_v61, %s3114_s28 }
 0x3d1   :  { %v508_v7 = vpop.xlane.xlu1 %507 }
 0x3d2   :  { %v963_v13 = vpop.xlane.xlu2 %962 }
 0x3d8   :  { %2758 = vrot.lane.b32.xlu0 %v5225_v39, %s3113_s26 }
 0x3da   :  { %v965_v52 = vpop.xlane.xlu2 %964 }
 0x3e0   :  { %1816 = vmax.xlane.f32.xlu2 %v4459_v34  ;;  %2763 = vrot.lane.b32.xlu0 %v5225_v39, %s3114_s28 }
 0x3e2   :  { %v901_v1 = vpop.xlane.xlu2 %900 }
 0x3e7   :  { %v506_v2 = vpop.xlane.xlu0 %505 }
 0x3e8   :  { %2911 = vrcp.f32 %v506_v2 }
 0x3e9   :  { %v1642_v6 = vpop.permute.xlu1 %1641  ;;  %2913 = vrcp.f32 %v508_v7 }
 0x3ea   :  { %2588 = vmatmul.msk.f32.gmra.mxu3 %vm257_vm1, %v1642_v6  ;;  %v4475_v17 = vpop.xlane.xlu2 %970 }
 0x3ec   :  { %978 = vadd.xlane.f32.xlu1 %v4467_v20 }
 0x3ee   :  { %v2912_v3 = vpop.eup %2911 }
 0x3ef   :  { %v959_v27 = vpop.xlane.xlu0 %958  ;;  %v542_v61 = vmul.f32 %v2912_v3, %v4352_v18  ;;  %v2914_v26 = vpop.eup %2913  ;;  %v917_v18 = vsub.f32 %v4342_v50, %v901_v1 }
 0x3f0   :  { %2915 = vrcp.f32 %v959_v27  ;;  %v543_v49 = vmul.f32 %v2914_v26, %v4326_v46 }
 0x3f1   :  { %644 = vmatmul.f32.gmra.mxu2 %v542_v61  ;;  %2917 = vrcp.f32 %v510_v40  ;;  %v948_v46 = vmul.f32 1.442695, %v917_v18 }
 0x3f6   :  { %v2916_v45 = vpop.eup %2915 }
 0x3f7   :  { %v512_v25 = vpop.xlane.xlu0 %511  ;;  %v1002_v59 = vmul.f32 %v2916_v45, %v4366_v41  ;;  %v2918_v56 = vpop.eup %2917 }
 0x3f8   :  { %2919 = vrcp.f32 %v512_v25  ;;  %v544_v5 = vmul.f32 %v2918_v56, %v4320_v31  ;;  %v4485_v31 = vpop.xlane.xlu2 %972 }
 0x3f9   :  { %647 = vmatmul.f32.gmra.mxu2 %v543_v49  ;;  %1090 = vmatmul.f32.gmra.mxu0 %v1002_v59  ;;  %2921 = vpow2.f32 %v948_v46 }
 0x3fe   :  { %v2920_v29 = vpop.eup %2919 }
 0x3ff   :  { %v967_v44 = vpop.xlane.xlu0 %966  ;;  %v545_v11 = vmul.f32 %v2920_v29, %v4381_v9  ;;  %v4488_v39 = vpop.eup %2921  ;;  %v5226_v29 = vld [vmem:[#allocation5_spill] sm:$0xff] }
 0x400   :  { %v4493_v62 = vpop.xlane.xlu2 %974 }
 0x401   :  { %650 = vmatmul.f32.gmra.mxu2 %v544_v5 }
 0x405   :  { %2768 = vrot.lane.b32.xlu1 %v3763_v36, %s3113_s26 }
 0x407   :  { %v969_v41 = vpop.xlane.xlu0 %968 }
 0x408   :  { %v4501_v60 = vpop.xlane.xlu2 %976 }
 0x409   :  { %653 = vmatmul.f32.gmra.mxu2 %v545_v11 }
 0x40a   :  { %1814 = vmax.xlane.f32.xlu0 %v4480_v57 }
 0x40d   :  { %2778 = vrot.lane.b32.xlu1 %v3806_v28, %s3113_s26 }
 0x40f   :  { %v1805_v50 = vpop.xlane.xlu0 %1804 }
 0x410   :  { %v1836_v54 = vsub.f32 %v4410_v16, %v1805_v50  ;;  %v4510_v3 = vpop.xlane.xlu2 %1812 }
 0x412   :  { %v1852_v36 = vmul.f32 1.442695, %v1836_v54  ;;  %980 = vadd.xlane.f32.xlu0 %v4488_v39 }
 0x414   :  { %2923 = vpow2.f32 %v1852_v36  ;;  %v514_v9 = vpop.xlane.xlu1 %513  ;;  %v5228_v36 = vld [vmem:[#allocation16_spill] sm:$0xff] }
 0x415   :  { %2925 = vrcp.f32 %v514_v9  ;;  %2793 = vrot.lane.b32.xlu1 %v3863_v42, %s3114_s28 }
 0x417   :  { %v4499_v23 = vpop.xlane.xlu0 %1806 }
 0x41a   :  { %v4495_v43 = vpop.eup %2923 }
 0x41b   :  { %v2926_v15 = vpop.eup %2925  ;;  %1884 = vadd.xlane.f32.xlu2 %v4495_v43 }
 0x41c   :  { %v961_v40 = vpop.xlane.xlu1 %960  ;;  %v546_v16 = vmul.f32 %v2926_v15, %v4414_v38 }
 0x41d   :  { %2927 = vrcp.f32 %v961_v40  ;;  %v5229_v40 = vld [vmem:[#allocation17_spill] sm:$0xff] }
 0x41e   :  { %656 = vmatmul.f32.gmra.mxu2 %v546_v16  ;;  %2929 = vrcp.f32 %v963_v13 }
 0x41f   :  { %v4508_v6 = vpop.xlane.xlu0 %1808  ;;  %2931 = vrcp.f32 %v965_v52  ;;  %v2749_v52 = vpop.permute.xlu2 %2748 }
 0x420   :  { %2933 = vrcp.f32 %v967_v44  ;;  %v2751_v45 = vunpack.i.h.bf16 %v2749_v52 }
 0x421   :  { %2935 = vrcp.f32 %v969_v41 }
 0x422   :  { %2937 = vrcp.f32 %v4475_v17 }
 0x423   :  { %v2928_v7 = vpop.eup %2927  ;;  %2939 = vrcp.f32 %v4485_v31 }
 0x424   :  { %v1003_v2 = vmul.f32 %v2928_v7, %v4423_v32  ;;  %v2930_v38 = vpop.eup %2929  ;;  %2941 = vrcp.f32 %v4493_v62  ;;  %v5230_v7 = vld [vmem:[#allocation6_spill] sm:$0xff] }
 0x425   :  { %v1004_v27 = vmul.f32 %v2930_v38, %v4328_v19  ;;  %v2750_v19 = vunpack.i.l.bf16 %v2749_v52  ;;  %2943 = vrcp.f32 %v4501_v60  ;;  %v5231_v38 = vld [vmem:[#allocation9_spill] sm:$0xff] }
 0x426   :  { %2783 = vrot.lane.b32.xlu0 %v3806_v28, %s3114_s28  ;;  %1093 = vmatmul.f32.gmra.mxu0 %v1003_v2  ;;  %v2932_v28 = vpop.eup %2931 }
 0x427   :  { %2541 = vmatmul.msk.f32.vlgmr.msrb.gmra.mxu2 %vm257_vm1, %v3936_v55  ;;  %v4517_v32 = vpop.xlane.xlu0 %1810  ;;  %v1005_v13 = vmul.f32 %v2932_v28, %v4333_v21  ;;  %v2774_v47 = vpop.permute.xlu2 %2773 }
 0x428   :  { %v2775_v11 = vunpack.i.l.bf16 %v2774_v47  ;;  %v2776_v50 = vunpack.i.h.bf16 %v2774_v47 }
 0x42e   :  { %2788 = vrot.lane.b32.xlu0 %v3863_v42, %s3113_s26  ;;  %1096 = vmatmul.f32.gmra.mxu0 %v1004_v27 }
 0x42f   :  { %2542 = vmatmul.msk.f32.gmra.mxu2 %vm257_vm1, %v3984_v33  ;;  %v2934_v33 = vpop.eup %2933 }
 0x430   :  { %v1006_v21 = vmul.f32 %v2934_v33, %v4392_v12 }
 0x433   :  { %2798 = vrot.lane.b32.xlu2 %v3828_v35, %s3113_s26 }
 0x434   :  { %v2739_v55 = vpop.permute.xlu1 %2738 }
 0x435   :  { %v2740_v61 = vunpack.i.l.bf16 %v2739_v55  ;;  %v2741_v42 = vunpack.i.h.bf16 %v2739_v55 }
 0x436   :  { %2803 = vrot.lane.b32.xlu0 %v3828_v35, %s3114_s28  ;;  %1099 = vmatmul.f32.gmra.mxu0 %v1005_v13  ;;  %v2936_v35 = vpop.eup %2935  ;;  %v4547_v62 = vpop.f32.mrf.mxu2 }
 0x437   :  { %2543 = vmatmul.msk.f32.gmra.mxu2 %vm257_vm1, %v3944_v63  ;;  %1529 = vmatpush.msra.mxu1 %v2740_v61  ;;  %v1007_v1 = vmul.f32 %v2936_v35, %v4401_v51  ;;  %v2938_v12 = vpop.eup %2937 }
 0x438   :  { %v1008_v5 = vmul.f32 %v2938_v12, %v4358_v24  ;;  %v2940_v51 = vpop.eup %2939  ;;  %v5227_v24 = vld [vmem:[#allocation31_spill] sm:$0xff] }
 0x439   :  { %1530 = vmatpush.msra.mxu1 %v2741_v42  ;;  %v1009_v46 = vmul.f32 %v2940_v51, %v4371_v8  ;;  %v2942_v31 = vpop.eup %2941 }
 0x43a   :  { %v2744_v26 = vpop.permute.xlu0 %2743  ;;  %v1010_v54 = vmul.f32 %v2942_v31, %v4386_v4  ;;  %v2944_v9 = vpop.eup %2943  ;;  %v1128_v31 = vld [vmem:[#allocation2 + $0x100] sm:$0xff] }
 0x43b   :  { %v2745_v25 = vunpack.i.l.bf16 %v2744_v26  ;;  %1531 = vmatpush.msra.mxu1 %v2750_v19  ;;  %v2746_v49 = vunpack.i.h.bf16 %v2744_v26  ;;  %v1011_v15 = vmul.f32 %v2944_v9, %v4395_v10  ;;  %v1777_v9 = vpop.f32.mrf.mxu3 }
 0x43d   :  { %1532 = vmatpush.msra.mxu1 %v2751_v45  ;;  %1996 = vmatpush.msrb.mxu0 %v2745_v25  ;;  %v5233_v25 = vld [vmem:[#allocation36_spill] sm:$0xff] }
 0x43e   :  { %2808 = vrot.lane.b32.xlu0 %v3917_v53, %s3113_s26  ;;  %1102 = vmatmul.f32.gmra.mxu0 %v1006_v21 }
 0x43f   :  { %2544 = vmatmul.msk.f32.gmra.mxu2 %vm257_vm1, %v3974_v58  ;;  %1997 = vmatpush.msrb.mxu0 %v2746_v49 }
 0x442   :  { %v2754_v63 = vpop.permute.xlu0 %2753 }
 0x443   :  { %v2755_v59 = vunpack.i.l.bf16 %v2754_v63  ;;  %v2756_v56 = vunpack.i.h.bf16 %v2754_v63  ;;  %v5234_v63 = vld [vmem:[#allocation25_spill] sm:$0xff] }
 0x445   :  { %1998 = vmatpush.msrb.mxu0 %v2755_v59 }
 0x446   :  { %1105 = vmatmul.f32.gmra.mxu0 %v1007_v1  ;;  %v4552_v60 = vpop.f32.mrf.mxu2  ;;  %v5235_v1 = vld [vmem:[#allocation8_spill] sm:$0xff] }
 0x447   :  { %2545 = vmatmul.msk.f32.gmra.mxu2 %vm257_vm1, %v4019_v37  ;;  %1999 = vmatpush.msrb.mxu0 %v2756_v56 }
 0x44a   :  { %v2759_v44 = vpop.permute.xlu0 %2758 }
 0x44b   :  { %v2760_v58 = vunpack.i.l.bf16 %v2759_v44  ;;  %v2761_v18 = vunpack.i.h.bf16 %v2759_v44 }
 0x44d   :  { %1533 = vmatpush.msra.mxu1 %v2760_v58 }
 0x44e   :  { %1108 = vmatmul.f32.gmra.mxu0 %v1008_v5  ;;  %v4557_v2 = vpop.f32.mrf.mxu2 }
 0x44f   :  { %2546 = vmatmul.msk.f32.gmra.mxu2 %vm257_vm1, %v5226_v29  ;;  %1534 = vmatpush.msra.mxu1 %v2761_v18 }
 0x452   :  { %v2764_v17 = vpop.permute.xlu0 %2763 }
 0x453   :  { %v2765_v37 = vunpack.i.l.bf16 %v2764_v17  ;;  %v2766_v41 = vunpack.i.h.bf16 %v2764_v17  ;;  %v4578_v59 = vpop.xlane.xlu2 %1816 }
 0x455   :  { %2000 = vmatpush.msrb.mxu0 %v2765_v37 }
 0x456   :  { %1111 = vmatmul.f32.gmra.mxu0 %v1009_v46 }
 0x457   :  { %2547 = vmatmul.msk.f32.gmra.mxu2 %vm257_vm1, %v5227_v24  ;;  %2001 = vmatpush.msrb.mxu0 %v2766_v41 }
 0x459   :  { %2002 = vmatpush.msrb.mxu0 %v2775_v11 }
 0x45b   :  { %2003 = vmatpush.msrb.mxu0 %v2776_v50 }
 0x45e   :  { %1114 = vmatmul.f32.gmra.mxu0 %v1010_v54 }
 0x45f   :  { %2548 = vmatmul.msk.f32.gmra.mxu2 %vm257_vm1, %v5228_v36  ;;  %v979_v8 = vpop.xlane.xlu1 %978 }
 0x460   :  { %2945 = vrcp.f32 %v979_v8  ;;  %v1602_v8 = vld [vmem:[#allocation2 + $0x1b8] sm:$0xff] }
 0x466   :  { %1117 = vmatmul.f32.gmra.mxu0 %v1011_v15  ;;  %v2946_v16 = vpop.eup %2945 }
 0x467   :  { %2549 = vmatmul.msk.f32.gmra.mxu2 %vm257_vm1, %v5229_v40  ;;  %v1012_v4 = vmul.f32 %v2946_v16, %v4467_v20  ;;  %v5232_v20 = vld [vmem:[#allocation19_spill] sm:$0xff]  ;;  %v1129_v40 = vld [vmem:[#allocation2 + $0x108] sm:$0xff] }
 0x46e   :  { %1120 = vmatmul.f32.gmra.mxu0 %v1012_v4 }
 0x46f   :  { %2550 = vmatmul.msk.f32.gmra.mxu2 %vm257_vm1, %v5230_v7  ;;  %v4593_v7 = vadd.f32 %v1777_v9, %v1602_v8 }
 0x474   :  { %v4561_v55 = vpop.f32.mrf.mxu2 }
 0x477   :  { %2551 = vmatmul.msk.f32.gmra.mxu2 %vm257_vm1, %v5231_v38  ;;  %v2769_v27 = vpop.permute.xlu1 %2768 }
 0x478   :  { %v2770_v10 = vunpack.i.l.bf16 %v2769_v27  ;;  %v2771_v28 = vunpack.i.h.bf16 %v2769_v27 }
 0x47a   :  { %1535 = vmatpush.msra.mxu1 %v2770_v10  ;;  %v1130_v10 = vld [vmem:[#allocation2 + $0x110] sm:$0xff] }
 0x47c   :  { %1536 = vmatpush.msra.mxu1 %v2771_v28  ;;  %v4566_v26 = vpop.f32.mrf.mxu2 }
 0x47d   :  { %v1815_v13 = vpop.xlane.xlu0 %1814 }
 0x47e   :  { %v1841_v61 = vsub.f32 %v4480_v57, %v1815_v13 }
 0x47f   :  { %2552 = vmatmul.msk.f32.gmra.mxu2 %vm257_vm1, %v5232_v20  ;;  %v2779_v52 = vpop.permute.xlu1 %2778 }
 0x480   :  { %v1862_v42 = vmul.f32 1.442695, %v1841_v61  ;;  %v2780_v33 = vunpack.i.l.bf16 %v2779_v52  ;;  %v2781_v19 = vunpack.i.h.bf16 %v2779_v52  ;;  %v1131_v61 = vld [vmem:[#allocation2 + $0x118] sm:$0xff] }
 0x482   :  { %2947 = vpow2.f32 %v1862_v42  ;;  %1537 = vmatpush.msra.mxu1 %v2780_v33  ;;  %v1132_v42 = vld [vmem:[#allocation2 + $0x120] sm:$0xff] }
 0x484   :  { %1538 = vmatpush.msra.mxu1 %v2781_v19  ;;  %v4574_v35 = vpop.f32.mrf.mxu2 }
 0x485   :  { %v981_v45 = vpop.xlane.xlu0 %980 }
 0x486   :  { %2949 = vrcp.f32 %v981_v45  ;;  %v1837_v45 = vsub.f32 %v4419_v30, %v4499_v23  ;;  %v1780_v30 = vpop.f32.mrf.mxu3  ;;  %v1135_v23 = vld [vmem:[#allocation2 + $0x138] sm:$0xff] }
 0x487   :  { %2553 = vmatmul.msk.f32.gmra.mxu2 %vm257_vm1, %v5233_v25  ;;  %v2794_v5 = vpop.permute.xlu1 %2793  ;;  %v1133_v25 = vld [vmem:[#allocation2 + $0x128] sm:$0xff] }
 0x488   :  { %v4570_v21 = vpop.eup %2947  ;;  %v2796_v29 = vunpack.i.h.bf16 %v2794_v5 }
 0x489   :  { %1894 = vadd.xlane.f32.xlu0 %v4570_v21 }
 0x48c   :  { %v2950_v57 = vpop.eup %2949  ;;  %v4584_v44 = vpop.f32.mrf.mxu2 }
 0x48d   :  { %v1013_v49 = vmul.f32 %v2950_v57, %v4488_v39  ;;  %5236 = vst [vmem:[#allocation29_spill] sm:$0xff] %v4584_v44  ;;  %v2795_v39 = vunpack.i.l.bf16 %v2794_v5  ;;  %v1854_v57 = vmul.f32 1.442695, %v1837_v45 }
 0x48e   :  { %v4582_v56 = vpop.xlane.xlu2 %1884 }
 0x48f   :  { %2554 = vmatmul.msk.f32.gmra.mxu2 %vm257_vm1, %v5234_v63  ;;  %1123 = vmatmul.f32.gmra.mxu0 %v1013_v49  ;;  %2951 = vpow2.f32 %v1854_v57 }
 0x496   :  { %v2799_v47 = vpop.permute.xlu2 %2798 }
 0x497   :  { %2555 = vmatmul.msk.f32.gmra.mxu2 %vm257_vm1, %v5235_v1  ;;  %v2800_v41 = vunpack.i.l.bf16 %v2799_v47  ;;  %v2801_v11 = vunpack.i.h.bf16 %v2799_v47  ;;  %v1838_v1 = vsub.f32 %v4429_v14, %v4508_v6  ;;  %v1839_v14 = vsub.f32 %v4439_v22, %v4517_v32  ;;  %v1604_v6 = vld [vmem:[#allocation2 + $0x1c8] sm:$0xff]  ;;  %v1783_v47 = vpop.f32.mrf.mxu3  ;;  %v1136_v22 = vld [vmem:[#allocation2 + $0x140] sm:$0xff]  ;;  %v1138_v32 = vld [vmem:[#allocation2 + $0x150] sm:$0xff] }
 0x498   :  { %v2784_v12 = vpop.permute.xlu0 %2783 }
 0x499   :  { %v2785_v58 = vunpack.i.l.bf16 %v2784_v12  ;;  %v2786_v18 = vunpack.i.h.bf16 %v2784_v12  ;;  %v1134_v12 = vld [vmem:[#allocation2 + $0x130] sm:$0xff] }
 0x49b   :  { %2004 = vmatpush.msrb.mxu0 %v2785_v58  ;;  %v1856_v58 = vmul.f32 1.442695, %v1838_v1 }
 0x49d   :  { %2005 = vmatpush.msrb.mxu0 %v2786_v18  ;;  %2953 = vpow2.f32 %v1856_v58 }
 0x49f   :  { %2556 = vmatmul.msk.f32.gmra.mxu2 %vm257_vm1, %v4461_v0  ;;  %2006 = vmatpush.msrb.mxu0 %v2795_v39  ;;  %v4617_v39 = vpop.eup %2951 }
 0x4a0   :  { %v2789_v51 = vpop.permute.xlu0 %2788 }
 0x4a1   :  { %v2790_v17 = vunpack.i.l.bf16 %v2789_v51  ;;  %v4588_v37 = vpop.f32.mrf.mxu2  ;;  %2007 = vmatpush.msrb.mxu0 %v2796_v29  ;;  %v2791_v46 = vunpack.i.h.bf16 %v2789_v51 }
 0x4a2   :  { %5237 = vst [vmem:[#allocation26_spill] sm:$0xff] %v4588_v37 }
 0x4a3   :  { %1539 = vmatpush.msra.mxu1 %v2790_v17  ;;  %v4623_v17 = vpop.eup %2953 }
 0x4a5   :  { %1540 = vmatpush.msra.mxu1 %v2791_v46  ;;  %v1858_v46 = vmul.f32 1.442695, %v1839_v14 }
 0x4a7   :  { %1541 = vmatpush.msra.mxu1 %v2800_v41  ;;  %2955 = vpow2.f32 %v1858_v46 }
 0x4a8   :  { %v2804_v24 = vpop.permute.xlu0 %2803 }
 0x4a9   :  { %v2805_v50 = vunpack.i.l.bf16 %v2804_v24  ;;  %1542 = vmatpush.msra.mxu1 %v2801_v11  ;;  %v2806_v36 = vunpack.i.h.bf16 %v2804_v24  ;;  %v4629_v11 = vadd.f32 %v1783_v47, %v1604_v6  ;;  %v1137_v24 = vld [vmem:[#allocation2 + $0x148] sm:$0xff] }
 0x4aa   :  { %v1289_v54 = vpop.f32.mrf.mxu2 }
 0x4ab   :  { %v4590_v0 = vadd.f32 %v1289_v54, %v1128_v31  ;;  %2008 = vmatpush.msrb.mxu0 %v2805_v50 }
 0x4ad   :  { %1337 = vmax.xlane.f32.xlu2 %v4590_v0  ;;  %2009 = vmatpush.msrb.mxu0 %v2806_v36  ;;  %v4634_v54 = vpop.eup %2955 }
 0x4b0   :  { %v2809_v15 = vpop.permute.xlu0 %2808 }
 0x4b1   :  { %v2810_v16 = vunpack.i.l.bf16 %v2809_v15  ;;  %v2811_v27 = vunpack.i.h.bf16 %v2809_v15  ;;  %v1786_v15 = vpop.f32.mrf.mxu3 }
 0x4b2   :  { %v1292_v4 = vpop.f32.mrf.mxu2 }
 0x4b3   :  { %v4595_v38 = vadd.f32 %v1292_v4, %v1129_v40  ;;  %1543 = vmatpush.msra.mxu1 %v2810_v16  ;;  %v1840_v40 = vsub.f32 %v4404_v48, %v4510_v3  ;;  %v1605_v16 = vld [vmem:[#allocation2 + $0x1d0] sm:$0xff]  ;;  %v1139_v4 = vld [vmem:[#allocation2 + $0x158] sm:$0xff]  ;;  %v1607_v48 = vld [vmem:[#allocation2 + $0x1e0] sm:$0xff] }
 0x4b5   :  { %1339 = vmax.xlane.f32.xlu1 %v4595_v38  ;;  %1818 = vmax.xlane.f32.xlu2 %v4593_v7 }
 0x4b6   :  { %1544 = vmatpush.msra.mxu1 %v2811_v27  ;;  %v1860_v27 = vmul.f32 1.442695, %v1840_v40 }
 0x4b8   :  { %2957 = vpow2.f32 %v1860_v27 }
 0x4ba   :  { %v1295_v28 = vpop.f32.mrf.mxu2 }
 0x4bb   :  { %v4599_v13 = vadd.f32 %v1295_v28, %v1130_v10  ;;  %v4648_v28 = vadd.f32 %v1786_v15, %v1605_v16 }
 0x4bd   :  { %1341 = vmax.xlane.f32.xlu1 %v4599_v13 }
 0x4c2   :  { %v1298_v20 = vpop.f32.mrf.mxu2 }
 0x4c3   :  { %v4602_v52 = vadd.f32 %v1298_v20, %v1131_v61  ;;  %v1789_v20 = vpop.f32.mrf.mxu3 }
 0x4c5   :  { %1343 = vmax.xlane.f32.xlu1 %v4602_v52 }
 0x4ca   :  { %v1301_v33 = vpop.f32.mrf.mxu2 }
 0x4cb   :  { %v4605_v19 = vadd.f32 %v1301_v33, %v1132_v42  ;;  %v4654_v42 = vpop.eup %2957 }
 0x4cd   :  { %1345 = vmax.xlane.f32.xlu2 %v4605_v19 }
 0x4d2   :  { %v1304_v49 = vpop.f32.mrf.mxu2 }
 0x4d3   :  { %v4610_v63 = vadd.f32 %v1304_v49, %v1133_v25  ;;  %v1603_v25 = vld [vmem:[#allocation2 + $0x1c0] sm:$0xff] }
 0x4d4   :  { %v4661_v49 = vadd.f32 %v1780_v30, %v1603_v25 }
 0x4d5   :  { %1347 = vmax.xlane.f32.xlu2 %v4610_v63 }
 0x4da   :  { %v1307_v5 = vpop.f32.mrf.mxu2 }
 0x4db   :  { %v4615_v18 = vadd.f32 %v1307_v5, %v1134_v12  ;;  %v1842_v12 = vsub.f32 %v4459_v34, %v4578_v59 }
 0x4dd   :  { %1349 = vmax.xlane.f32.xlu1 %v4615_v18  ;;  %1886 = vadd.xlane.f32.xlu2 %v4617_v39  ;;  %v1864_v14 = vmul.f32 1.442695, %v1842_v12 }
 0x4e2   :  { %v1310_v29 = vpop.f32.mrf.mxu2 }
 0x4e3   :  { %v4621_v51 = vadd.f32 %v1310_v29, %v1135_v23  ;;  %v1606_v23 = vld [vmem:[#allocation2 + $0x1d8] sm:$0xff] }
 0x4e4   :  { %v4672_v30 = vadd.f32 %v1789_v20, %v1606_v23 }
 0x4e5   :  { %1351 = vmax.xlane.f32.xlu1 %v4621_v51  ;;  %1888 = vadd.xlane.f32.xlu2 %v4623_v17 }
 0x4ea   :  { %v1313_v41 = vpop.f32.mrf.mxu2 }
 0x4eb   :  { %v4638_v8 = vadd.f32 %v1313_v41, %v1136_v22 }
 0x4ed   :  { %1822 = vmax.xlane.f32.xlu2 %v4629_v11 }
 0x4f2   :  { %v1316_v31 = vpop.f32.mrf.mxu2 }
 0x4f3   :  { %v4632_v50 = vadd.f32 %v1316_v31, %v1137_v24 }
 0x4f5   :  { %1355 = vmax.xlane.f32.xlu0 %v4632_v50  ;;  %1890 = vadd.xlane.f32.xlu2 %v4634_v54 }
 0x4fa   :  { %v1319_v36 = vpop.f32.mrf.mxu2 }
 0x4fb   :  { %v4640_v9 = vadd.f32 %v1319_v36, %v1138_v32  ;;  %v1140_v32 = vld [vmem:[#allocation2 + $0x160] sm:$0xff] }
 0x4fd   :  { %1357 = vmax.xlane.f32.xlu0 %v4640_v9  ;;  %1353 = vmax.xlane.f32.xlu2 %v4638_v8 }
 0x4fe   :  { %2813 = vrot.lane.b32.xlu1 %v3917_v53, %s3114_s28  ;;  %v1792_v53 = vpop.f32.mrf.mxu3 }
 0x4ff   :  { %v4657_v3 = vadd.f32 %v1792_v53, %v1607_v48 }
 0x502   :  { %v1322_v10 = vpop.f32.mrf.mxu2 }
 0x503   :  { %v4650_v61 = vadd.f32 %v1322_v10, %v1139_v4 }
 0x505   :  { %1359 = vmax.xlane.f32.xlu0 %v4650_v61  ;;  %1824 = vmax.xlane.f32.xlu2 %v4648_v28 }
 0x506   :  { %v1795_v25 = vpop.f32.mrf.mxu3 }
 0x50d   :  { %1892 = vadd.xlane.f32.xlu2 %v4654_v42 }
 0x515   :  { %1828 = vmax.xlane.f32.xlu2 %v4657_v3 }
 0x520   :  { %v1338_v33 = vpop.xlane.xlu2 %1337 }
 0x521   :  { %v1369_v45 = vsub.f32 %v4590_v0, %v1338_v33  ;;  %v4670_v0 = vpop.f32.mrf.mxu0 }
 0x523   :  { %v1385_v57 = vmul.f32 1.442695, %v1369_v45  ;;  %v1608_v45 = vld [vmem:[#allocation2 + $0x1e8] sm:$0xff] }
 0x524   :  { %v4704_v12 = vadd.f32 %v1795_v25, %v1608_v45 }
 0x525   :  { %2959 = vpow2.f32 %v1385_v57 }
 0x528   :  { %1820 = vmax.xlane.f32.xlu1 %v4661_v49  ;;  %v1340_v1 = vpop.xlane.xlu1 %1339  ;;  %v1819_v41 = vpop.xlane.xlu2 %1818 }
 0x529   :  { %v1370_v58 = vsub.f32 %v4595_v38, %v1340_v1  ;;  %v4679_v47 = vpop.f32.mrf.mxu0 }
 0x52b   :  { %v4667_v5 = vpop.eup %2959  ;;  %v1387_v29 = vmul.f32 1.442695, %v1370_v58 }
 0x52c   :  { %1417 = vadd.xlane.f32.xlu0 %v4667_v5 }
 0x52d   :  { %2961 = vpow2.f32 %v1387_v29 }
 0x52e   :  { %2963 = vpow2.f32 %v1864_v14  ;;  %v1843_v14 = vsub.f32 %v4593_v7, %v1819_v41  ;;  %v1142_v7 = vld [vmem:[#allocation2 + $0x170] sm:$0xff] }
 0x530   :  { %1826 = vmax.xlane.f32.xlu1 %v4672_v30  ;;  %v1342_v6 = vpop.xlane.xlu1 %1341 }
 0x531   :  { %v1371_v34 = vsub.f32 %v4599_v13, %v1342_v6  ;;  %v1325_v13 = vpop.f32.mrf.mxu2  ;;  %v4690_v40 = vpop.f32.mrf.mxu0  ;;  %v1141_v6 = vld [vmem:[#allocation2 + $0x168] sm:$0xff] }
 0x532   :  { %v4688_v15 = vadd.f32 %v1325_v13, %v1140_v32 }
 0x533   :  { %v4676_v59 = vpop.eup %2961  ;;  %v1389_v38 = vmul.f32 1.442695, %v1371_v34 }
 0x534   :  { %1419 = vadd.xlane.f32.xlu0 %v4676_v59  ;;  %v4681_v46 = vpop.eup %2963 }
 0x535   :  { %2965 = vpow2.f32 %v1389_v38 }
 0x538   :  { %1896 = vadd.xlane.f32.xlu1 %v4681_v46  ;;  %v1344_v24 = vpop.xlane.xlu1 %1343 }
 0x539   :  { %v1372_v31 = vsub.f32 %v4602_v52, %v1344_v24  ;;  %v4697_v20 = vpop.f32.mrf.mxu0 }
 0x53b   :  { %v4685_v22 = vpop.eup %2965  ;;  %v1391_v36 = vmul.f32 1.442695, %v1372_v31  ;;  %v1866_v31 = vmul.f32 1.442695, %v1843_v14 }
 0x53c   :  { %1421 = vadd.xlane.f32.xlu0 %v4685_v22 }
 0x53d   :  { %2967 = vpow2.f32 %v1391_v36 }
 0x540   :  { %1361 = vmax.xlane.f32.xlu1 %v4688_v15  ;;  %v1346_v16 = vpop.xlane.xlu2 %1345 }
 0x541   :  { %v1373_v4 = vsub.f32 %v4605_v19, %v1346_v16  ;;  %v4708_v23 = vpop.f32.mrf.mxu0  ;;  %v4722_v16 = vpop.xlane.xlu0 %1894 }
 0x543   :  { %v4694_v27 = vpop.eup %2967  ;;  %v1393_v52 = vmul.f32 1.442695, %v1373_v4 }
 0x544   :  { %1423 = vadd.xlane.f32.xlu0 %v4694_v27 }
 0x545   :  { %2969 = vpow2.f32 %v1393_v52 }
 0x548   :  { %v1348_v10 = vpop.xlane.xlu2 %1347 }
 0x549   :  { %v1374_v48 = vsub.f32 %v4610_v63, %v1348_v10  ;;  %v1328_v63 = vpop.f32.mrf.mxu2  ;;  %v4720_v36 = vpop.f32.mrf.mxu0 }
 0x54a   :  { %v4714_v24 = vadd.f32 %v1328_v63, %v1141_v6  ;;  %v1143_v63 = vld [vmem:[#allocation2 + $0x178] sm:$0xff] }
 0x54b   :  { %v4700_v53 = vpop.eup %2969  ;;  %v1395_v33 = vmul.f32 1.442695, %v1374_v48  ;;  %v1609_v48 = vld [vmem:[#allocation2 + $0x1f0] sm:$0xff] }
 0x54c   :  { %1425 = vadd.xlane.f32.xlu0 %v4700_v53 }
 0x54d   :  { %2971 = vpow2.f32 %v1395_v33  ;;  %v1798_v33 = vpop.f32.mrf.mxu3 }
 0x550   :  { %v1350_v19 = vpop.xlane.xlu1 %1349  ;;  %v1887_v57 = vpop.xlane.xlu2 %1886 }
 0x551   :  { %v1375_v1 = vsub.f32 %v4615_v18, %v1350_v19  ;;  %v1331_v41 = vpop.f32.mrf.mxu2  ;;  %v4733_v45 = vpop.f32.mrf.mxu0 }
 0x553   :  { %v4706_v58 = vpop.eup %2971  ;;  %v1397_v29 = vmul.f32 1.442695, %v1375_v1  ;;  %v4737_v1 = vadd.f32 %v1798_v33, %v1609_v48 }
 0x554   :  { %1830 = vmax.xlane.f32.xlu0 %v4704_v12  ;;  %1427 = vadd.xlane.f32.xlu2 %v4706_v58 }
 0x555   :  { %2973 = vpow2.f32 %v1397_v29 }
 0x558   :  { %v1352_v34 = vpop.xlane.xlu1 %1351  ;;  %v1889_v38 = vpop.xlane.xlu2 %1888 }
 0x559   :  { %v1376_v18 = vsub.f32 %v4621_v51, %v1352_v34  ;;  %v4724_v51 = vadd.f32 %v1331_v41, %v1142_v7  ;;  %v1334_v14 = vpop.f32.mrf.mxu2  ;;  %v4742_v41 = vpop.f32.mrf.mxu0 }
 0x55a   :  { %v4744_v37 = vadd.f32 %v1334_v14, %v1143_v63 }
 0x55b   :  { %v4716_v32 = vpop.eup %2973  ;;  %v1399_v13 = vmul.f32 1.442695, %v1376_v18 }
 0x55c   :  { %1429 = vadd.xlane.f32.xlu0 %v4716_v32  ;;  %1363 = vmax.xlane.f32.xlu2 %v4714_v24 }
 0x55d   :  { %2975 = vpow2.f32 %v1399_v13 }
 0x55e   :  { %2977 = vpow2.f32 %v1866_v31 }
 0x55f   :  { %2979 = vrcp.f32 %v4582_v56 }
 0x560   :  { %v1823_v4 = vpop.xlane.xlu2 %1822  ;;  %2981 = vrcp.f32 %v1887_v57 }
 0x561   :  { %v1845_v29 = vsub.f32 %v4629_v11, %v1823_v4 }
 0x563   :  { %v4726_v52 = vpop.eup %2975  ;;  %v1870_v31 = vmul.f32 1.442695, %v1845_v29 }
 0x564   :  { %v4728_v10 = vpop.eup %2977  ;;  %1431 = vadd.xlane.f32.xlu1 %v4726_v52  ;;  %1365 = vmax.xlane.f32.xlu0 %v4724_v51 }
 0x565   :  { %1898 = vadd.xlane.f32.xlu2 %v4728_v10  ;;  %v2980_v18 = vpop.eup %2979  ;;  %2983 = vpow2.f32 %v1870_v31  ;;  %v1801_v31 = vpop.f32.mrf.mxu3 }
 0x566   :  { %v1932_v33 = vmul.f32 %v2980_v18, %v4495_v43  ;;  %v2982_v29 = vpop.eup %2981  ;;  %v4756_v43 = vpop.f32.mrf.mxu0 }
 0x568   :  { %v4735_v25 = vpop.xlane.xlu0 %1355  ;;  %v1891_v19 = vpop.xlane.xlu2 %1890 }
 0x56b   :  { %v4752_v14 = vpop.eup %2983 }
 0x56c   :  { %1832 = vmax.xlane.f32.xlu1 %v4737_v1 }
 0x570   :  { %v1358_v6 = vpop.xlane.xlu0 %1357  ;;  %v2814_v34 = vpop.permute.xlu1 %2813 }
 0x571   :  { %v2815_v13 = vunpack.i.l.bf16 %v2814_v34  ;;  %v1354_v7 = vpop.xlane.xlu2 %1353  ;;  %v2816_v56 = vunpack.i.h.bf16 %v2814_v34  ;;  %v1933_v34 = vmul.f32 %v2982_v29, %v4617_v39  ;;  %v1379_v18 = vsub.f32 %v4640_v9, %v1358_v6 }
 0x572   :  { %v1377_v48 = vsub.f32 %v4638_v8, %v1354_v7 }
 0x573   :  { %2010 = vmatpush.msrb.mxu0 %v2815_v13 }
 0x574   :  { %v1401_v11 = vmul.f32 1.442695, %v1377_v48  ;;  %1367 = vmax.xlane.f32.xlu1 %v4744_v37 }
 0x575   :  { %2011 = vmatpush.msrb.mxu0 %v2816_v56  ;;  %v4769_v56 = vpop.f32.mrf.mxu0 }
 0x576   :  { %2985 = vpow2.f32 %v1401_v11  ;;  %2012 = vmatmul.f32.vlgmr.msrb.gmra.mxu0 %v1932_v33 }
 0x577   :  { %2987 = vrcp.f32 %v1889_v38  ;;  %v1405_v38 = vmul.f32 1.442695, %v1379_v18 }
 0x578   :  { %v1360_v4 = vpop.xlane.xlu0 %1359 }
 0x579   :  { %v1380_v44 = vsub.f32 %v4650_v61, %v1360_v4  ;;  %v4750_v63 = vpop.xlane.xlu2 %1824  ;;  %v1610_v61 = vld [vmem:[#allocation2 + $0x1f8] sm:$0xff] }
 0x57a   :  { %v4764_v48 = vadd.f32 %v1801_v31, %v1610_v61 }
 0x57b   :  { %v1407_v8 = vmul.f32 1.442695, %v1380_v44 }
 0x57c   :  { %v4754_v57 = vpop.eup %2985  ;;  %1902 = vadd.xlane.f32.xlu1 %v4752_v14 }
 0x57d   :  { %2989 = vpow2.f32 %v1407_v8  ;;  %1433 = vadd.xlane.f32.xlu2 %v4754_v57  ;;  %v2988_v13 = vpop.eup %2987  ;;  %v4776_v29 = vpop.f32.mrf.mxu0 }
 0x57e   :  { %2015 = vmatmul.f32.gmra.mxu0 %v1933_v34  ;;  %2991 = vrcp.f32 %v1891_v19  ;;  %v1934_v39 = vmul.f32 %v2988_v13, %v4623_v17 }
 0x57f   :  { %2993 = vpow2.f32 %v1405_v38 }
 0x581   :  { %v1893_v7 = vpop.xlane.xlu2 %1892 }
 0x582   :  { %2995 = vrcp.f32 %v1893_v7 }
 0x583   :  { %v4762_v44 = vpop.eup %2989 }
 0x584   :  { %1439 = vadd.xlane.f32.xlu1 %v4762_v44  ;;  %v2992_v9 = vpop.eup %2991 }
 0x585   :  { %1834 = vmax.xlane.f32.xlu2 %v4764_v48  ;;  %v4772_v11 = vpop.eup %2993  ;;  %v1935_v19 = vmul.f32 %v2992_v9, %v4634_v54 }
 0x586   :  { %2018 = vmatmul.f32.gmra.mxu0 %v1934_v39 }
 0x588   :  { %v2996_v17 = vpop.eup %2995 }
 0x589   :  { %v1829_v6 = vpop.xlane.xlu2 %1828  ;;  %v1936_v34 = vmul.f32 %v2996_v17, %v4654_v42 }
 0x58a   :  { %v1848_v33 = vsub.f32 %v4657_v3, %v1829_v6  ;;  %v4783_v3 = vpop.f32.mrf.mxu0 }
 0x58c   :  { %v1876_v4 = vmul.f32 1.442695, %v1848_v33 }
 0x58d   :  { %1437 = vadd.xlane.f32.xlu2 %v4772_v11 }
 0x58e   :  { %2997 = vpow2.f32 %v1876_v4  ;;  %2021 = vmatmul.f32.gmra.mxu0 %v1935_v19 }
 0x58f   :  { %2999 = vrcp.f32 %v4722_v16  ;;  %v1378_v16 = vsub.f32 %v4632_v50, %v4735_v25 }
 0x591   :  { %v1403_v42 = vmul.f32 1.442695, %v1378_v16 }
 0x592   :  { %v4789_v38 = vpop.f32.mrf.mxu0 }
 0x594   :  { %v4779_v8 = vpop.eup %2997 }
 0x595   :  { %1908 = vadd.xlane.f32.xlu1 %v4779_v8  ;;  %v3000_v18 = vpop.eup %2999 }
 0x596   :  { %2024 = vmatmul.f32.gmra.mxu0 %v1936_v34  ;;  %v1937_v31 = vmul.f32 %v3000_v18, %v4570_v21  ;;  %v1846_v21 = vsub.f32 %v4648_v28, %v4750_v63 }
 0x598   :  { %v1872_v19 = vmul.f32 1.442695, %v1846_v21 }
 0x59a   :  { %v4798_v25 = vpop.f32.mrf.mxu0 }
 0x59b   :  { %v1821_v54 = vpop.xlane.xlu1 %1820 }
 0x59c   :  { %v1844_v61 = vsub.f32 %v4661_v49, %v1821_v54 }
 0x59e   :  { %v1868_v13 = vmul.f32 1.442695, %v1844_v61  ;;  %2027 = vmatmul.f32.gmra.mxu0 %v1937_v31 }
 0x59f   :  { %v1418_v7 = vpop.xlane.xlu0 %1417 }
 0x5a0   :  { %3001 = vpow2.f32 %v1868_v13 }
 0x5a1   :  { %3003 = vrcp.f32 %v1418_v7 }
 0x5a2   :  { %3005 = vpow2.f32 %v1403_v42  ;;  %v4808_v31 = vpop.f32.mrf.mxu0 }
 0x5a3   :  { %v1827_v39 = vpop.xlane.xlu1 %1826 }
 0x5a4   :  { %v1847_v9 = vsub.f32 %v4672_v30, %v1827_v39 }
 0x5a6   :  { %v4792_v6 = vpop.eup %3001  ;;  %v1874_v33 = vmul.f32 1.442695, %v1847_v9 }
 0x5a7   :  { %v3004_v49 = vpop.eup %3003  ;;  %v1420_v4 = vpop.xlane.xlu0 %1419  ;;  %1900 = vadd.xlane.f32.xlu0 %v4792_v6 }
 0x5a8   :  { %3007 = vpow2.f32 %v1874_v33  ;;  %v1465_v50 = vmul.f32 %v3004_v49, %v4667_v5  ;;  %v4800_v17 = vpop.eup %3005 }
 0x5a9   :  { %3009 = vrcp.f32 %v1420_v4 }
 0x5aa   :  { %1545 = vmatmul.f32.vlgmr.msra.gmra.mxu1 %v1465_v50 }
 0x5ab   :  { %v1897_v30 = vpop.xlane.xlu1 %1896 }
 0x5ac   :  { %3011 = vrcp.f32 %v1897_v30 }
 0x5ad   :  { %3013 = vpow2.f32 %v1872_v19 }
 0x5ae   :  { %v4802_v34 = vpop.eup %3007 }
 0x5af   :  { %v3010_v18 = vpop.eup %3009  ;;  %v1422_v28 = vpop.xlane.xlu0 %1421  ;;  %1435 = vadd.xlane.f32.xlu0 %v4800_v17  ;;  %1906 = vadd.xlane.f32.xlu2 %v4802_v34 }
 0x5b0   :  { %3015 = vrcp.f32 %v1422_v28  ;;  %v1466_v5 = vmul.f32 %v3010_v18, %v4676_v59 }
 0x5b2   :  { %v3012_v63 = vpop.eup %3011  ;;  %1548 = vmatmul.f32.gmra.mxu1 %v1466_v5 }
 0x5b3   :  { %v1362_v54 = vpop.xlane.xlu1 %1361  ;;  %v1938_v61 = vmul.f32 %v3012_v63, %v4681_v46  ;;  %v4811_v16 = vpop.eup %3013 }
 0x5b4   :  { %v1381_v13 = vsub.f32 %v4688_v15, %v1362_v54  ;;  %v4817_v46 = vpop.f32.mrf.mxu0 }
 0x5b5   :  { %2030 = vmatmul.f32.gmra.mxu0 %v1938_v61 }
 0x5b6   :  { %v3016_v7 = vpop.eup %3015  ;;  %v1409_v42 = vmul.f32 1.442695, %v1381_v13 }
 0x5b7   :  { %v1424_v39 = vpop.xlane.xlu0 %1423  ;;  %1904 = vadd.xlane.f32.xlu0 %v4811_v16  ;;  %v1467_v9 = vmul.f32 %v3016_v7, %v4685_v22 }
 0x5b8   :  { %3017 = vpow2.f32 %v1409_v42 }
 0x5b9   :  { %3019 = vrcp.f32 %v1424_v39 }
 0x5ba   :  { %1551 = vmatmul.f32.gmra.mxu1 %v1467_v9 }
 0x5bc   :  { %v4822_v19 = vpop.f32.mrf.mxu0 }
 0x5be   :  { %v4815_v59 = vpop.eup %3017 }
 0x5bf   :  { %v3020_v33 = vpop.eup %3019  ;;  %v1426_v49 = vpop.xlane.xlu0 %1425  ;;  %1441 = vadd.xlane.f32.xlu0 %v4815_v59 }
 0x5c0   :  { %3021 = vrcp.f32 %v1426_v49  ;;  %v1468_v15 = vmul.f32 %v3020_v33, %v4694_v27 }
 0x5c2   :  { %1554 = vmatmul.f32.gmra.mxu1 %v1468_v15 }
 0x5c4   :  { %v4829_v13 = vpop.f32.mrf.mxu0 }
 0x5c6   :  { %v3022_v21 = vpop.eup %3021 }
 0x5c7   :  { %v1831_v4 = vpop.xlane.xlu0 %1830  ;;  %v1428_v50 = vpop.xlane.xlu2 %1427  ;;  %v1469_v22 = vmul.f32 %v3022_v21, %v4700_v53 }
 0x5c8   :  { %v1849_v30 = vsub.f32 %v4704_v12, %v1831_v4  ;;  %3023 = vrcp.f32 %v1428_v50 }
 0x5ca   :  { %v1878_v18 = vmul.f32 1.442695, %v1849_v30  ;;  %1557 = vmatmul.f32.gmra.mxu1 %v1469_v22 }
 0x5cc   :  { %3025 = vpow2.f32 %v1878_v18  ;;  %v4837_v49 = vpop.f32.mrf.mxu0 }
 0x5ce   :  { %v3024_v28 = vpop.eup %3023 }
 0x5cf   :  { %v1430_v5 = vpop.xlane.xlu0 %1429  ;;  %v1364_v63 = vpop.xlane.xlu2 %1363  ;;  %v1470_v54 = vmul.f32 %v3024_v28, %v4706_v58 }
 0x5d0   :  { %3027 = vrcp.f32 %v1430_v5  ;;  %v1382_v27 = vsub.f32 %v4714_v24, %v1364_v63 }
 0x5d2   :  { %v4827_v61 = vpop.eup %3025  ;;  %v1411_v53 = vmul.f32 1.442695, %v1382_v27  ;;  %1560 = vmatmul.f32.gmra.mxu1 %v1470_v54 }
 0x5d3   :  { %1910 = vadd.xlane.f32.xlu0 %v4827_v61 }
 0x5d4   :  { %3029 = vpow2.f32 %v1411_v53  ;;  %v4845_v18 = vpop.f32.mrf.mxu0 }
 0x5d6   :  { %v3028_v12 = vpop.eup %3027 }
 0x5d7   :  { %v1432_v7 = vpop.xlane.xlu1 %1431  ;;  %v1366_v42 = vpop.xlane.xlu0 %1365  ;;  %v1471_v39 = vmul.f32 %v3028_v12, %v4716_v32 }
 0x5d8   :  { %3031 = vrcp.f32 %v1432_v7  ;;  %v1383_v58 = vsub.f32 %v4724_v51, %v1366_v42  ;;  %v1899_v9 = vpop.xlane.xlu2 %1898 }
 0x5d9   :  { %3033 = vrcp.f32 %v1899_v9 }
 0x5da   :  { %v4834_v24 = vpop.eup %3029  ;;  %v1413_v33 = vmul.f32 1.442695, %v1383_v58  ;;  %1563 = vmatmul.f32.gmra.mxu1 %v1471_v39 }
 0x5db   :  { %1443 = vadd.xlane.f32.xlu2 %v4834_v24 }
 0x5dc   :  { %3035 = vpow2.f32 %v1413_v33 }
 0x5de   :  { %v3032_v15 = vpop.eup %3031 }
 0x5df   :  { %v3034_v21 = vpop.eup %3033  ;;  %v1833_v4 = vpop.xlane.xlu1 %1832  ;;  %v1472_v50 = vmul.f32 %v3032_v15, %v4726_v52 }
 0x5e0   :  { %v1850_v32 = vsub.f32 %v4737_v1, %v1833_v4  ;;  %v1939_v51 = vmul.f32 %v3034_v21, %v4728_v10  ;;  %v4851_v10 = vpop.f32.mrf.mxu0 }
 0x5e2   :  { %v4842_v22 = vpop.eup %3035  ;;  %v1880_v30 = vmul.f32 1.442695, %v1850_v32  ;;  %1566 = vmatmul.f32.gmra.mxu1 %v1472_v50  ;;  %2033 = vmatmul.f32.gmra.mxu0 %v1939_v51 }
 0x5e3   :  { %1445 = vadd.xlane.f32.xlu1 %v4842_v22 }
 0x5e4   :  { %3037 = vpow2.f32 %v1880_v30 }
 0x5e7   :  { %v1368_v28 = vpop.xlane.xlu1 %1367 }
 0x5e8   :  { %v1384_v5 = vsub.f32 %v4744_v37, %v1368_v28  ;;  %v4856_v53 = vpop.f32.mrf.mxu0 }
 0x5ea   :  { %v4848_v63 = vpop.eup %3037  ;;  %v1415_v52 = vmul.f32 1.442695, %v1384_v5 }
 0x5eb   :  { %1912 = vadd.xlane.f32.xlu2 %v4848_v63 }
 0x5ec   :  { %3039 = vpow2.f32 %v1415_v52 }
 0x5ef   :  { %v1903_v15 = vpop.xlane.xlu1 %1902 }
 0x5f0   :  { %v1434_v1 = vpop.xlane.xlu2 %1433 }
 0x5f1   :  { %3041 = vrcp.f32 %v1434_v1 }
 0x5f2   :  { %v4853_v54 = vpop.eup %3039 }
 0x5f3   :  { %1447 = vadd.xlane.f32.xlu0 %v4853_v54  ;;  %v2013_v39 = vpop.f32.mrf.mxu0 }
 0x5f7   :  { %v3042_v27 = vpop.eup %3041 }
 0x5f8   :  { %v1835_v12 = vpop.xlane.xlu2 %1834  ;;  %v1473_v37 = vmul.f32 %v3042_v27, %v4754_v57 }
 0x5f9   :  { %v1851_v7 = vsub.f32 %v4764_v48, %v1835_v12  ;;  %v4868_v48 = vpop.f32.mrf.mxu1 }
 0x5fa   :  { %1569 = vmatmul.f32.gmra.mxu1 %v1473_v37 }
 0x5fb   :  { %v1882_v42 = vmul.f32 1.442695, %v1851_v7  ;;  %v2016_v9 = vpop.f32.mrf.mxu0 }
 0x5fd   :  { %3043 = vpow2.f32 %v1882_v42 }
 0x600   :  { %v1438_v32 = vpop.xlane.xlu2 %1437 }
 0x601   :  { %v4872_v21 = vpop.f32.mrf.mxu1 }
 0x603   :  { %v4860_v58 = vpop.eup %3043  ;;  %2077 = vrot.lane.b32.xlu2 %v4733_v45, %s3103_s27  ;;  %v2019_v57 = vpop.f32.mrf.mxu0 }
 0x604   :  { %1914 = vadd.xlane.f32.xlu1 %v4860_v58 }
 0x60b   :  { %2079 = vrot.lane.b32.xlu2 %v4742_v41, %s3103_s27  ;;  %v2022_v45 = vpop.f32.mrf.mxu0 }
 0x613   :  { %2207 = vrot.lane.b32.xlu2 %v2016_v9, %s3115_s29  ;;  %v2025_v28 = vpop.f32.mrf.mxu0 }
 0x61a   :  { %v1901_v33 = vpop.xlane.xlu0 %1900 }
 0x61b   :  { %3045 = vrcp.f32 %v1901_v33  ;;  %2209 = vrot.lane.b32.xlu2 %v2019_v57, %s3115_s29 }
 0x61c   :  { %3047 = vrcp.f32 %v1903_v15 }
 0x61d   :  { %2205 = vrot.lane.b32.xlu1 %v2013_v39, %s3115_s29 }
 0x621   :  { %v3046_v4 = vpop.eup %3045 }
 0x622   :  { %v1436_v50 = vpop.xlane.xlu0 %1435  ;;  %v1940_v41 = vmul.f32 %v3046_v4, %v4792_v6  ;;  %v3048_v51 = vpop.eup %3047 }
 0x623   :  { %3049 = vrcp.f32 %v1436_v50  ;;  %2211 = vrot.lane.b32.xlu2 %v2022_v45, %s3115_s29  ;;  %v1941_v6 = vmul.f32 %v3048_v51, %v4752_v14  ;;  %v1907_v27 = vpop.xlane.xlu2 %1906 }
 0x624   :  { %2036 = vmatmul.f32.gmra.mxu0 %v1940_v41  ;;  %3051 = vrcp.f32 %v1438_v32 }
 0x625   :  { %2081 = vrot.lane.b32.xlu1 %v4756_v43, %s3103_s27  ;;  %v1440_v43 = vpop.xlane.xlu1 %1439 }
 0x627   :  { %v1546_v30 = vpop.f32.mrf.mxu1 }
 0x628   :  { %2141 = vrot.lane.b32.xlu0 %v1546_v30, %s3116_s30 }
 0x629   :  { %v3050_v5 = vpop.eup %3049 }
 0x62a   :  { %v1905_v52 = vpop.xlane.xlu0 %1904  ;;  %v1474_v1 = vmul.f32 %v3050_v5, %v4800_v17  ;;  %v3052_v12 = vpop.eup %3051 }
 0x62b   :  { %3053 = vrcp.f32 %v1905_v52  ;;  %2213 = vrot.lane.b32.xlu2 %v2025_v28, %s3115_s29  ;;  %v2028_v17 = vpop.f32.mrf.mxu0  ;;  %v1475_v14 = vmul.f32 %v3052_v12, %v4772_v11 }
 0x62c   :  { %1572 = vmatmul.f32.gmra.mxu1 %v1474_v1  ;;  %2039 = vmatmul.f32.gmra.mxu0 %v1941_v6  ;;  %3055 = vrcp.f32 %v1440_v43 }
 0x62d   :  { %2083 = vrot.lane.b32.xlu1 %v4769_v56, %s3103_s27  ;;  %3057 = vrcp.f32 %v1907_v27  ;;  %v1909_v39 = vpop.xlane.xlu1 %1908 }
 0x62e   :  { %3059 = vrcp.f32 %v1909_v39 }
 0x62f   :  { %v1549_v37 = vpop.f32.mrf.mxu1 }
 0x630   :  { %2143 = vrot.lane.b32.xlu0 %v1549_v37, %s3116_s30 }
 0x631   :  { %v3054_v7 = vpop.eup %3053 }
 0x632   :  { %v1942_v42 = vmul.f32 %v3054_v7, %v4811_v16  ;;  %v3056_v56 = vpop.eup %3055  ;;  %v1442_v9 = vpop.xlane.xlu0 %1441 }
 0x633   :  { %2215 = vrot.lane.b32.xlu2 %v2028_v17, %s3115_s29  ;;  %v3058_v57 = vpop.eup %3057  ;;  %3061 = vrcp.f32 %v1442_v9  ;;  %v2031_v15 = vpop.f32.mrf.mxu0  ;;  %v1476_v11 = vmul.f32 %v3056_v56, %v4762_v44 }
 0x634   :  { %1575 = vmatmul.f32.gmra.mxu1 %v1475_v14  ;;  %2042 = vmatmul.f32.gmra.mxu0 %v1942_v42  ;;  %v1943_v16 = vmul.f32 %v3058_v57, %v4802_v34 }
 0x635   :  { %2085 = vrot.lane.b32.xlu1 %v4776_v29, %s3103_s27  ;;  %v3060_v29 = vpop.eup %3059 }
 0x636   :  { %v1944_v41 = vmul.f32 %v3060_v29, %v4779_v8 }
 0x637   :  { %v1552_v33 = vpop.f32.mrf.mxu1 }
 0x638   :  { %2145 = vrot.lane.b32.xlu0 %v1552_v33, %s3116_s30 }
 0x639   :  { %v3062_v45 = vpop.eup %3061 }
 0x63a   :  { %v1477_v50 = vmul.f32 %v3062_v45, %v4815_v59 }
 0x63b   :  { %2217 = vrot.lane.b32.xlu2 %v2031_v15, %s3115_s29 }
 0x63c   :  { %1578 = vmatmul.f32.gmra.mxu1 %v1476_v11  ;;  %2045 = vmatmul.f32.gmra.mxu0 %v1943_v16 }
 0x63d   :  { %2087 = vrot.lane.b32.xlu1 %v4783_v3, %s3103_s27 }
 0x63f   :  { %v1555_v4 = vpop.f32.mrf.mxu1 }
 0x640   :  { %2147 = vrot.lane.b32.xlu0 %v1555_v4, %s3116_s30 }
 0x644   :  { %1581 = vmatmul.f32.gmra.mxu1 %v1477_v50  ;;  %2048 = vmatmul.f32.gmra.mxu0 %v1944_v41 }
 0x645   :  { %2089 = vrot.lane.b32.xlu1 %v4789_v38, %s3103_s27 }
 0x646   :  { %v1911_v44 = vpop.xlane.xlu0 %1910 }
 0x647   :  { %3063 = vrcp.f32 %v1911_v44  ;;  %v1558_v34 = vpop.f32.mrf.mxu1 }
 0x648   :  { %2149 = vrot.lane.b32.xlu0 %v1558_v34, %s3116_s30 }
 0x64d   :  { %v3064_v3 = vpop.eup %3063  ;;  %2091 = vrot.lane.b32.xlu1 %v4798_v25, %s3103_s27 }
 0x64e   :  { %v1444_v32 = vpop.xlane.xlu2 %1443  ;;  %v1945_v51 = vmul.f32 %v3064_v3, %v4827_v61 }
 0x64f   :  { %3065 = vrcp.f32 %v1444_v32  ;;  %v1561_v59 = vpop.f32.mrf.mxu1 }
 0x650   :  { %2151 = vrot.lane.b32.xlu0 %v1561_v59, %s3116_s30  ;;  %2051 = vmatmul.f32.gmra.mxu0 %v1945_v51 }
 0x655   :  { %v3066_v8 = vpop.eup %3065  ;;  %2093 = vrot.lane.b32.xlu1 %v4808_v31, %s3103_s27 }
 0x656   :  { %v1446_v38 = vpop.xlane.xlu1 %1445  ;;  %v1478_v30 = vmul.f32 %v3066_v8, %v4834_v24 }
 0x657   :  { %3067 = vrcp.f32 %v1446_v38  ;;  %v1564_v28 = vpop.f32.mrf.mxu1 }
 0x658   :  { %2153 = vrot.lane.b32.xlu0 %v1564_v28, %s3116_s30  ;;  %1584 = vmatmul.f32.gmra.mxu1 %v1478_v30 }
 0x65d   :  { %v3068_v25 = vpop.eup %3067  ;;  %2095 = vrot.lane.b32.xlu1 %v4817_v46, %s3103_s27  ;;  %v2306_v46 = vld [vmem:[%s5127_s4 + $0x18] sm:$0xff] }
 0x65e   :  { %v1913_v61 = vpop.xlane.xlu2 %1912  ;;  %v1479_v5 = vmul.f32 %v3068_v25, %v4842_v22  ;;  %2371 = vmatpush.msra.mxu2 %v2306_v46 }
 0x65f   :  { %3069 = vrcp.f32 %v1913_v61  ;;  %v1567_v52 = vpop.f32.mrf.mxu1  ;;  %v2034_v1 = vpop.f32.mrf.mxu0 }
 0x660   :  { %2155 = vrot.lane.b32.xlu0 %v1567_v52, %s3116_s30  ;;  %2219 = vrot.lane.b32.xlu2 %v2034_v1, %s3115_s29 }
 0x661   :  { %1587 = vmatmul.f32.gmra.mxu1 %v1479_v5 }
 0x665   :  { %v3070_v31 = vpop.eup %3069  ;;  %2097 = vrot.lane.b32.xlu1 %v4822_v19, %s3103_s27 }
 0x666   :  { %v1448_v24 = vpop.xlane.xlu0 %1447  ;;  %v1946_v6 = vmul.f32 %v3070_v31, %v4848_v63  ;;  %v2305_v63 = vld [vmem:[%s5127_s4 + $0x10] sm:$0xff]  ;;  %v2078_v37 = vpop.permute.xlu2 %2077 }
 0x667   :  { %3071 = vrcp.f32 %v1448_v24  ;;  %2372 = vmatpush.msra.mxu2 %v2305_v63  ;;  %v2253_v42 = vsel %vm257_vm1, %v4670_v0, %v2078_v37 }
 0x668   :  { %2054 = vmatmul.f32.gmra.mxu0 %v1946_v6 }
 0x66d   :  { %v3072_v22 = vpop.eup %3071  ;;  %2099 = vrot.lane.b32.xlu1 %v4829_v13, %s3103_s27  ;;  %v2304_v13 = vld [vmem:[%s5127_s4 + $0x8] sm:$0xff] }
 0x66e   :  { %v1480_v43 = vmul.f32 %v3072_v22, %v4853_v54  ;;  %2373 = vmatpush.msra.mxu2 %v2304_v13  ;;  %v2303_v54 = vld [vmem:[%s5127_s4] sm:$0xff]  ;;  %v2080_v7 = vpop.permute.xlu2 %2079 }
 0x670   :  { %1590 = vmatmul.f32.gmra.mxu1 %v1480_v43  ;;  %2374 = vmatpush.msra.mxu2 %v2303_v54 }
 0x675   :  { %2101 = vrot.lane.b32.xlu1 %v4837_v49, %s3103_s27 }
 0x676   :  { %v2208_v14 = vpop.permute.xlu2 %2207 }
 0x677   :  { %v1915_v19 = vpop.xlane.xlu1 %1914  ;;  %v1570_v27 = vpop.f32.mrf.mxu1 }
 0x678   :  { %3073 = vrcp.f32 %v1915_v19  ;;  %2157 = vrot.lane.b32.xlu0 %v1570_v27, %s3116_s30 }
 0x67d   :  { %2103 = vrot.lane.b32.xlu1 %v4845_v18, %s3103_s27 }
 0x67e   :  { %v3074_v49 = vpop.eup %3073  ;;  %v2210_v9 = vpop.permute.xlu2 %2209 }
 0x67f   :  { %v1947_v12 = vmul.f32 %v3074_v49, %v4860_v58 }
 0x681   :  { %2057 = vmatmul.f32.gmra.mxu0 %v1947_v12 }
 0x685   :  { %2105 = vrot.lane.b32.xlu1 %v4851_v10, %s3103_s27 }
 0x686   :  { %v2212_v4 = vpop.permute.xlu2 %2211 }
 0x68d   :  { %2107 = vrot.lane.b32.xlu1 %v4856_v53, %s3103_s27  ;;  %v2254_v53 = vsel %vm257_vm1, %v4679_v47, %v2080_v7 }
 0x68e   :  { %v2214_v59 = vpop.permute.xlu2 %2213 }
 0x68f   :  { %v2206_v17 = vpop.permute.xlu1 %2205 }
 0x696   :  { %v2216_v5 = vpop.permute.xlu2 %2215 }
 0x697   :  { %v2082_v58 = vpop.permute.xlu1 %2081 }
 0x698   :  { %v2255_v29 = vsel %vm257_vm1, %v4690_v40, %v2082_v58 }
 0x69a   :  { %v2142_v18 = vpop.permute.xlu0 %2141 }
 0x69b   :  { %v2270_v39 = vsel %vm2269_vm2, %v2253_v42, %v2142_v18 }
 0x69c   :  { %v2287_v56 = vsel %vm2286_vm3, %v2270_v39, %v2206_v17 }
 0x69d   :  { %2589 = vmatmul.msk.f32.vlgmr.msra.gmra.mxu2 %vm63_vm0, %v2287_v56 }
 0x69e   :  { %v2218_v19 = vpop.permute.xlu2 %2217 }
 0x69f   :  { %v2084_v15 = vpop.permute.xlu1 %2083 }
 0x6a0   :  { %v2256_v3 = vsel %vm257_vm1, %v4697_v20, %v2084_v15 }
 0x6a1   :  { %v2037_v10 = vpop.f32.mrf.mxu0 }
 0x6a2   :  { %v2144_v57 = vpop.permute.xlu0 %2143  ;;  %2221 = vrot.lane.b32.xlu2 %v2037_v10, %s3115_s29 }
 0x6a3   :  { %v2271_v33 = vsel %vm2269_vm2, %v2254_v53, %v2144_v57 }
 0x6a4   :  { %v2288_v0 = vsel %vm2286_vm3, %v2271_v33, %v2208_v14 }
 0x6a5   :  { %2590 = vmatmul.msk.f32.gmra.mxu2 %vm63_vm0, %v2288_v0 }
 0x6a7   :  { %v2086_v41 = vpop.permute.xlu1 %2085 }
 0x6a8   :  { %v2257_v30 = vsel %vm257_vm1, %v4708_v23, %v2086_v41 }
 0x6a9   :  { %v1573_v11 = vpop.f32.mrf.mxu1  ;;  %v2040_v16 = vpop.f32.mrf.mxu0 }
 0x6aa   :  { %v2146_v45 = vpop.permute.xlu0 %2145  ;;  %2159 = vrot.lane.b32.xlu0 %v1573_v11, %s3116_s30  ;;  %2223 = vrot.lane.b32.xlu2 %v2040_v16, %s3115_s29 }
 0x6ab   :  { %v2272_v47 = vsel %vm2269_vm2, %v2255_v29, %v2146_v45 }
 0x6ac   :  { %v2289_v50 = vsel %vm2286_vm3, %v2272_v47, %v2210_v9 }
 0x6ad   :  { %2591 = vmatmul.msk.f32.gmra.mxu2 %vm63_vm0, %v2289_v50 }
 0x6af   :  { %v2088_v20 = vpop.permute.xlu1 %2087 }
 0x6b0   :  { %v2258_v31 = vsel %vm257_vm1, %v4720_v36, %v2088_v20 }
 0x6b1   :  { %v1576_v44 = vpop.f32.mrf.mxu1  ;;  %v2043_v34 = vpop.f32.mrf.mxu0 }
 0x6b2   :  { %v2148_v32 = vpop.permute.xlu0 %2147  ;;  %2161 = vrot.lane.b32.xlu0 %v1576_v44, %s3116_s30  ;;  %2225 = vrot.lane.b32.xlu2 %v2043_v34, %s3115_s29 }
 0x6b3   :  { %v2273_v40 = vsel %vm2269_vm2, %v2256_v3, %v2148_v32 }
 0x6b4   :  { %v2290_v51 = vsel %vm2286_vm3, %v2273_v40, %v2212_v4 }
 0x6b5   :  { %2592 = vmatmul.msk.f32.gmra.mxu2 %vm63_vm0, %v2290_v51 }
 0x6b7   :  { %v2090_v46 = vpop.permute.xlu1 %2089 }
 0x6b8   :  { %v2259_v22 = vsel %vm257_vm1, %v4868_v48, %v2090_v46 }
 0x6b9   :  { %v1579_v8 = vpop.f32.mrf.mxu1  ;;  %v2046_v38 = vpop.f32.mrf.mxu0 }
 0x6ba   :  { %v2150_v28 = vpop.permute.xlu0 %2149  ;;  %2163 = vrot.lane.b32.xlu0 %v1579_v8, %s3116_s30  ;;  %2227 = vrot.lane.b32.xlu2 %v2046_v38, %s3115_s29  ;;  %v2220_v12 = vpop.permute.xlu2 %2219 }
 0x6bb   :  { %v2274_v25 = vsel %vm2269_vm2, %v2257_v30, %v2150_v28 }
 0x6bc   :  { %v2291_v61 = vsel %vm2286_vm3, %v2274_v25, %v2214_v59 }
 0x6bd   :  { %2593 = vmatmul.msk.f32.gmra.mxu2 %vm63_vm0, %v2291_v61 }
 0x6bf   :  { %v2092_v13 = vpop.permute.xlu1 %2091 }
 0x6c0   :  { %v2260_v54 = vsel %vm257_vm1, %v4872_v21, %v2092_v13 }
 0x6c1   :  { %v1582_v52 = vpop.f32.mrf.mxu1  ;;  %v2049_v1 = vpop.f32.mrf.mxu0 }
 0x6c2   :  { %v2152_v24 = vpop.permute.xlu0 %2151  ;;  %2165 = vrot.lane.b32.xlu0 %v1582_v52, %s3116_s30  ;;  %2229 = vrot.lane.b32.xlu2 %v2049_v1, %s3115_s29 }
 0x6c3   :  { %v2275_v23 = vsel %vm2269_vm2, %v2258_v31, %v2152_v24 }
 0x6c4   :  { %v2292_v6 = vsel %vm2286_vm3, %v2275_v23, %v2216_v5 }
 0x6c5   :  { %2594 = vmatmul.msk.f32.gmra.mxu2 %vm63_vm0, %v2292_v6 }
 0x6c7   :  { %v2094_v21 = vpop.permute.xlu1 %2093 }
 0x6c8   :  { %v2261_v39 = vsel %vm257_vm1, %v4547_v62, %v2094_v21  ;;  %v5009_v62 = vld [vmem:[%s5128_s5] ss:$0 sm:$0xff] }
 0x6ca   :  { %v2154_v43 = vpop.permute.xlu0 %2153 }
 0x6cb   :  { %v2276_v27 = vsel %vm2269_vm2, %v2259_v22, %v2154_v43 }
 0x6cc   :  { %v2293_v36 = vsel %vm2286_vm3, %v2276_v27, %v2218_v19 }
 0x6cd   :  { %2595 = vmatmul.msk.f32.gmra.mxu2 %vm63_vm0, %v2293_v36  ;;  %v2052_v63 = vpop.f32.mrf.mxu0 }
 0x6ce   :  { %2231 = vrot.lane.b32.xlu2 %v2052_v63, %s3115_s29  ;;  %v5238_v63 = vld [vmem:[#allocation29_spill] sm:$0xff] }
 0x6cf   :  { %v2096_v9 = vpop.permute.xlu1 %2095 }
 0x6d0   :  { %v2262_v33 = vsel %vm257_vm1, %v4552_v60, %v2096_v9 }
 0x6d2   :  { %v2156_v49 = vpop.permute.xlu0 %2155 }
 0x6d3   :  { %v2277_v37 = vsel %vm2269_vm2, %v2260_v54, %v2156_v49 }
 0x6d4   :  { %v2294_v48 = vsel %vm2286_vm3, %v2277_v37, %v2220_v12 }
 0x6d5   :  { %2596 = vmatmul.msk.f32.gmra.mxu2 %vm63_vm0, %v2294_v48  ;;  %v1585_v7 = vpop.f32.mrf.mxu1 }
 0x6d6   :  { %2167 = vrot.lane.b32.xlu0 %v1585_v7, %s3116_s30 }
 0x6d7   :  { %v2098_v15 = vpop.permute.xlu1 %2097 }
 0x6d8   :  { %v2263_v60 = vsel %vm257_vm1, %v4557_v2, %v2098_v15 }
 0x6de   :  { %v1588_v17 = vpop.f32.mrf.mxu1 }
 0x6df   :  { %2169 = vrot.lane.b32.xlu0 %v1588_v17, %s3116_s30  ;;  %v2100_v44 = vpop.permute.xlu1 %2099 }
 0x6e0   :  { %v2264_v2 = vsel %vm257_vm1, %v4561_v55, %v2100_v44 }
 0x6e5   :  { %v2055_v14 = vpop.f32.mrf.mxu0 }
 0x6e6   :  { %2233 = vrot.lane.b32.xlu2 %v2055_v14, %s3115_s29  ;;  %v5239_v14 = vld [vmem:[#allocation26_spill] sm:$0xff] }
 0x6e7   :  { %v2102_v38 = vpop.permute.xlu1 %2101 }
 0x6e8   :  { %v2265_v28 = vsel %vm257_vm1, %v4566_v26, %v2102_v38 }
 0x6ea   :  { %v2158_v18 = vpop.permute.xlu0 %2157 }
 0x6eb   :  { %v2278_v58 = vsel %vm2269_vm2, %v2261_v39, %v2158_v18 }
 0x6ed   :  { %v1591_v42 = vpop.f32.mrf.mxu1 }
 0x6ee   :  { %2171 = vrot.lane.b32.xlu0 %v1591_v42, %s3116_s30 }
 0x6ef   :  { %v2104_v26 = vpop.permute.xlu1 %2103 }
 0x6f0   :  { %v2266_v24 = vsel %vm257_vm1, %v4574_v35, %v2104_v26 }
 0x6f7   :  { %v2106_v27 = vpop.permute.xlu1 %2105 }
 0x6f8   :  { %v2267_v35 = vsel %vm257_vm1, %v5238_v63, %v2106_v27 }
 0x6fc   :  { %v2222_v56 = vpop.permute.xlu2 %2221 }
 0x6fd   :  { %v2295_v10 = vsel %vm2286_vm3, %v2278_v58, %v2222_v56 }
 0x6fe   :  { %v2058_v53 = vpop.f32.mrf.mxu0  ;;  %2597 = vmatmul.msk.f32.gmra.mxu2 %vm63_vm0, %v2295_v10 }
 0x6ff   :  { %2235 = vrot.lane.b32.xlu2 %v2058_v53, %s3115_s29  ;;  %v2108_v17 = vpop.permute.xlu1 %2107 }
 0x700   :  { %v2268_v42 = vsel %vm257_vm1, %v5239_v14, %v2108_v17 }
 0x704   :  { %v2224_v57 = vpop.permute.xlu2 %2223 }
 0x70c   :  { %v2226_v45 = vpop.permute.xlu2 %2225 }
 0x714   :  { %v2228_v32 = vpop.permute.xlu2 %2227 }
 0x71c   :  { %v2160_v0 = vpop.permute.xlu0 %2159  ;;  %v2230_v20 = vpop.permute.xlu2 %2229 }
 0x71d   :  { %v2279_v11 = vsel %vm2269_vm2, %v2262_v33, %v2160_v0 }
 0x71e   :  { %v2296_v16 = vsel %vm2286_vm3, %v2279_v11, %v2224_v57 }
 0x71f   :  { %2598 = vmatmul.msk.f32.gmra.mxu2 %vm63_vm0, %v2296_v16 }
 0x720   :  { %v2376_v29 = vpop.f32.mrf.mxu2 }
 0x721   :  { %v2377_v47 = vadd.f32 %v5009_v62, %v2376_v29 }
 0x723   :  { %2424 = vst.msk [vmem:[%s5129_s6] sm:$0xff] %vm63_vm0, %v2377_v47 }
 0x724   :  { %v2162_v4 = vpop.permute.xlu0 %2161 }
 0x725   :  { %v2280_v50 = vsel %vm2269_vm2, %v2263_v60, %v2162_v4 }
 0x726   :  { %v2297_v41 = vsel %vm2286_vm3, %v2280_v50, %v2226_v45 }
 0x727   :  { %2599 = vmatmul.msk.f32.gmra.mxu2 %vm63_vm0, %v2297_v41 }
 0x728   :  { %v2379_v34 = vpop.f32.mrf.mxu2  ;;  %v2232_v46 = vpop.permute.xlu2 %2231 }
 0x729   :  { %v2380_v3 = vadd.f32 %v5009_v62, %v2379_v34 }
 0x72b   :  { %2425 = vst.msk [vmem:[%s5129_s6 + $0x8] sm:$0xff] %vm63_vm0, %v2380_v3 }
 0x72c   :  { %v2164_v40 = vpop.permute.xlu0 %2163 }
 0x72d   :  { %v2281_v51 = vsel %vm2269_vm2, %v2264_v2, %v2164_v40 }
 0x72e   :  { %v2298_v59 = vsel %vm2286_vm3, %v2281_v51, %v2228_v32 }
 0x72f   :  { %2600 = vmatmul.msk.f32.gmra.mxu2 %vm63_vm0, %v2298_v59 }
 0x730   :  { %v2382_v8 = vpop.f32.mrf.mxu2 }
 0x731   :  { %v2383_v30 = vadd.f32 %v5009_v62, %v2382_v8 }
 0x733   :  { %2426 = vst.msk [vmem:[%s5129_s6 + $0x10] sm:$0xff] %vm63_vm0, %v2383_v30 }
 0x734   :  { %v2166_v55 = vpop.permute.xlu0 %2165 }
 0x735   :  { %v2282_v25 = vsel %vm2269_vm2, %v2265_v28, %v2166_v55 }
 0x736   :  { %v2299_v61 = vsel %vm2286_vm3, %v2282_v25, %v2230_v20 }
 0x737   :  { %2601 = vmatmul.msk.f32.gmra.mxu2 %vm63_vm0, %v2299_v61 }
 0x738   :  { %v2385_v5 = vpop.f32.mrf.mxu2 }
 0x739   :  { %v2386_v52 = vadd.f32 %v5009_v62, %v2385_v5 }
 0x73b   :  { %2427 = vst.msk [vmem:[%s5129_s6 + $0x18] sm:$0xff] %vm63_vm0, %v2386_v52 }
 0x740   :  { %v2388_v1 = vpop.f32.mrf.mxu2  ;;  %v2234_v49 = vpop.permute.xlu2 %2233 }
 0x741   :  { %v2389_v31 = vadd.f32 %v5009_v62, %v2388_v1 }
 0x743   :  { %2428 = vst.msk [vmem:[%s5129_s6 + $0x20] sm:$0xff] %vm63_vm0, %v2389_v31 }
 0x748   :  { %v2391_v23 = vpop.f32.mrf.mxu2  ;;  %v2168_v6 = vpop.permute.xlu0 %2167 }
 0x749   :  { %v2392_v22 = vadd.f32 %v5009_v62, %v2391_v23  ;;  %v2283_v43 = vsel %vm2269_vm2, %v2266_v24, %v2168_v6 }
 0x74a   :  { %v2300_v19 = vsel %vm2286_vm3, %v2283_v43, %v2232_v46 }
 0x74b   :  { %2429 = vst.msk [vmem:[%s5129_s6 + $0x28] sm:$0xff] %vm63_vm0, %v2392_v22  ;;  %2602 = vmatmul.msk.f32.gmra.mxu2 %vm63_vm0, %v2300_v19 }
 0x750   :  { %v2394_v36 = vpop.f32.mrf.mxu2 }
 0x751   :  { %v2395_v13 = vadd.f32 %v5009_v62, %v2394_v36  ;;  %v2170_v54 = vpop.permute.xlu0 %2169 }
 0x752   :  { %v2284_v12 = vsel %vm2269_vm2, %v2267_v35, %v2170_v54 }
 0x753   :  { %2430 = vst.msk [vmem:[%s5129_s6 + $0x30] sm:$0xff] %vm63_vm0, %v2395_v13  ;;  %v2301_v37 = vsel %vm2286_vm3, %v2284_v12, %v2234_v49 }
 0x754   :  { %2603 = vmatmul.msk.f32.gmra.mxu2 %vm63_vm0, %v2301_v37 }
 0x758   :  { %v2397_v48 = vpop.f32.mrf.mxu2 }
 0x759   :  { %v2398_v7 = vadd.f32 %v5009_v62, %v2397_v48  ;;  %v2236_v18 = vpop.permute.xlu2 %2235 }
 0x75b   :  { %2431 = vst.msk [vmem:[%s5129_s6 + $0x38] sm:$0xff] %vm63_vm0, %v2398_v7 }
 0x760   :  { %v2172_v21 = vpop.permute.xlu0 %2171 }
 0x761   :  { %v2285_v39 = vsel %vm2269_vm2, %v2268_v42, %v2172_v21 }
 0x762   :  { %v2302_v58 = vsel %vm2286_vm3, %v2285_v39, %v2236_v18 }
 0x763   :  { %2604 = vmatmul.msk.f32.gmra.mxu2 %vm63_vm0, %v2302_v58 }
 0x781   :  { %v2400_v56 = vpop.f32.mrf.mxu2 }
 0x782   :  { %v2401_v10 = vadd.f32 %v5009_v62, %v2400_v56 }
 0x784   :  { %2432 = vst.msk [vmem:[%s5129_s6 + $0x40] sm:$0xff] %vm63_vm0, %v2401_v10 }
 0x7a2   :  { %v2403_v53 = vpop.f32.mrf.mxu2 }
 0x7a3   :  { %v2404_v9 = vadd.f32 %v5009_v62, %v2403_v53 }
 0x7a5   :  { %2433 = vst.msk [vmem:[%s5129_s6 + $0x48] sm:$0xff] %vm63_vm0, %v2404_v9 }
 0x7aa   :  { %v2406_v57 = vpop.f32.mrf.mxu2 }
 0x7ab   :  { %v2407_v33 = vadd.f32 %v5009_v62, %v2406_v57 }
 0x7ad   :  { %2434 = vst.msk [vmem:[%s5129_s6 + $0x50] sm:$0xff] %vm63_vm0, %v2407_v33 }
 0x7b2   :  { %v2409_v0 = vpop.f32.mrf.mxu2 }
 0x7b3   :  { %v2410_v15 = vadd.f32 %v5009_v62, %v2409_v0 }
 0x7b5   :  { %2435 = vst.msk [vmem:[%s5129_s6 + $0x58] sm:$0xff] %vm63_vm0, %v2410_v15 }
 0x7ba   :  { %v2412_v11 = vpop.f32.mrf.mxu2 }
 0x7bb   :  { %v2413_v16 = vadd.f32 %v5009_v62, %v2412_v11 }
 0x7bd   :  { %2436 = vst.msk [vmem:[%s5129_s6 + $0x60] sm:$0xff] %vm63_vm0, %v2413_v16 }
 0x7ce   :  { %v2415_v29 = vpop.f32.mrf.mxu2 }
 0x7cf   :  { %v2416_v45 = vadd.f32 %v5009_v62, %v2415_v29 }
 0x7d1   :  { %2437 = vst.msk [vmem:[%s5129_s6 + $0x68] sm:$0xff] %vm63_vm0, %v2416_v45 }
 0x7d7   :  { %v2418_v47 = vpop.f32.mrf.mxu2 }
 0x7d8   :  { %v2419_v60 = vadd.f32 %v5009_v62, %v2418_v47 }
 0x7da   :  { %2438 = vst.msk [vmem:[%s5129_s6 + $0x70] sm:$0xff] %vm63_vm0, %v2419_v60 }
 0x7e6   :  { %v2421_v4 = vpop.f32.mrf.mxu2 }
 0x7e7   :  { %v2422_v50 = vadd.f32 %v5009_v62, %v2421_v4 }
 0x7e9   :  { %2439 = vst.msk [vmem:[%s5129_s6 + $0x78] sm:$0xff] %vm63_vm0, %v2422_v50 }
 0x7ea   :  { %2444 = vsyncpa [#allocation3], 1 }

</bundles_post_ra>
